<compile_context>
chip_gen: v7x
topology: tpu7x:2x2x1
jax: 0.10.0
libtpu: 0.0.40
codegen_flags: <defaults>
</compile_context>

<pallas_src>
import math

import jax
import jax.numpy as jnp
from jax import lax
from jax.experimental import pallas as pl
from jax.experimental.pallas import tpu as pltpu

INPUT_SHAPE = (4, 16, 16)              # (C, H, W) like the PyTorch module
OUTPUT_DIM = 32
IN_FEATURES = math.prod(INPUT_SHAPE)   # 1024

_VMEM_LIMIT = 48 * 1024 * 1024         # tile footprint is <~25 MiB even at tb=512;
                                       # 48 MiB stays inside v7x's 64 MiB physical VMEM.


def _max_batch_tile():
    """Generation-aware batch-tile cap (review: 512 on v6e, <=256 on v7x/v5e)."""
    try:
        kind = jax.devices()[0].device_kind.lower()
    except Exception:
        return 256
    return 512 if "v6" in kind else 256


_MAX_BATCH_TILE = _max_batch_tile()


# --------------------------------------------------------------------------
# Fused kernel: conv1+ReLU -> conv2+ReLU -> flatten -> linear, one batch tile
# --------------------------------------------------------------------------
def _fused_cnn_kernel(x_ref, m1_ref, b1_ref, m2_ref, b2_ref, w3_ref, b3_ref,
                      o_ref):
    # x_ref : (tb, 4, 16, 16) f32  NCHW input tile
    # m1_ref: (192, 128) bf16  conv1 per-row matrix, rows=(tap, cin, w), cols=(c1, w)
    # b1_ref: (1, 128)   f32   conv1 bias expanded over w          (c1, w)
    # m2_ref: (384, 128) bf16  conv2 per-row matrix, rows=(tap, c1, w), cols=(c2, w2)
    # b2_ref: (1, 128)   f32   conv2 bias expanded over w2         (c2, w2)
    # w3_ref: (1024, 32) bf16  Linear weight, rows in kernel order (h2, c2, w2)
    # b3_ref: (1, 32)    f32
    # o_ref : (tb, 128)  f32   lane-dense output slab (cols 0..31 valid)
    tb = x_ref.shape[0]
    x = x_ref[...].astype(jnp.bfloat16)                     # (tb, 4, 16, 16)
    zrow = jnp.zeros((tb, 1, 16), jnp.bfloat16)

    # ---- conv1 + ReLU ------------------------------------------------------
    # im2row over H: output row h reads input rows h-1, h, h+1 (zero padded).
    pieces = []
    for tap in range(3):                                    # rows h-1, h, h+1
        for c in range(4):
            xc = x[:, c, :, :]                              # (tb, 16, 16)
            if tap == 0:                                    # row h-1
                xc = jnp.concatenate([zrow, xc[:, :15, :]], axis=1)
            elif tap == 2:                                  # row h+1
                xc = jnp.concatenate([xc[:, 1:, :], zrow], axis=1)
            pieces.append(xc)
    p1 = jnp.concatenate(pieces, axis=-1)                   # (tb, 16, 192)  (tap, cin, w)
    h1 = jnp.dot(p1.reshape(tb * 16, 192), m1_ref[...],
                 preferred_element_type=jnp.float32)        # (tb*16, 128)   (c1, w)
    h1 = jnp.maximum(h1 + b1_ref[...], 0.0).astype(jnp.bfloat16)
    h1 = h1.reshape(tb, 16, 128)

    # ---- conv2 (stride 2) + ReLU ---------------------------------------------
    # Output row i reads conv1 rows 2i-1, 2i, 2i+1 — gathered by static slices.
    zrow2 = jnp.zeros((tb, 1, 128), jnp.bfloat16)
    even = jnp.concatenate([h1[:, 2 * i:2 * i + 1, :] for i in range(8)],
                           axis=1)                          # rows 0,2,...,14
    odd = jnp.concatenate([h1[:, 2 * i + 1:2 * i + 2, :] for i in range(8)],
                          axis=1)                           # rows 1,3,...,15
    prev = jnp.concatenate([zrow2, odd[:, :7, :]], axis=1)  # rows -1,1,...,13
    p2 = jnp.concatenate([prev, even, odd], axis=-1)        # (tb, 8, 384)   (tap, c1, w)
    h2 = jnp.dot(p2.reshape(tb * 8, 384), m2_ref[...],
                 preferred_element_type=jnp.float32)        # (tb*8, 128)    (c2, w2)
    h2 = jnp.maximum(h2 + b2_ref[...], 0.0).astype(jnp.bfloat16)
    h2 = h2.reshape(tb, 8, 128)

    # ---- Flatten(-3) + Linear -------------------------------------------------
    # Kernel flatten order is (h2, c2, w2); the (c2,h2,w2) torch order is folded
    # into w3's row permutation at init.
    h2_flat = jnp.concatenate([h2[:, h, :] for h in range(8)], axis=-1)   # (tb, 1024)
    y = jnp.dot(h2_flat, w3_ref[...],
                preferred_element_type=jnp.float32) + b3_ref[...]         # (tb, 32)
    # Lane-dense 128-wide store (review item); wrapper slices [:, :32].
    o_ref[...] = jnp.concatenate([y, jnp.zeros((tb, 96), jnp.float32)], axis=-1)


# --------------------------------------------------------------------------
# Batch tiling helpers + pallas_call wrapper
# --------------------------------------------------------------------------
def _round_up(n, m):
    return -(-n // m) * m


def _choose_tiles(batch, max_tile):
    """Balanced tiles (pad < 16 rows), even tile count for 2-TC megacore."""
    n_tiles = max(1, -(-batch // max_tile))
    if n_tiles > 1 and n_tiles % 2 == 1:
        n_tiles += 1
    tile = _round_up(-(-batch // n_tiles), 16)
    return tile, n_tiles


def _fused_forward(x4, kp, tb, n_tiles):
    bp = x4.shape[0]
    const2 = lambda i: (0, 0)       # resident weights/biases: fetched once
    semantics = ("parallel",) if n_tiles >= 2 else ("arbitrary",)
    return pl.pallas_call(
        _fused_cnn_kernel,
        out_shape=jax.ShapeDtypeStruct((bp, 128), jnp.float32),
        grid=(n_tiles,),
        in_specs=[
            pl.BlockSpec((tb, 4, 16, 16), lambda i: (i, 0, 0, 0)),
            pl.BlockSpec((192, 128), const2),
            pl.BlockSpec((1, 128), const2),
            pl.BlockSpec((384, 128), const2),
            pl.BlockSpec((1, 128), const2),
            pl.BlockSpec((1024, 32), const2),
            pl.BlockSpec((1, 32), const2),
        ],
        out_specs=pl.BlockSpec((tb, 128), lambda i: (i, 0)),
        compiler_params=pltpu.CompilerParams(
            dimension_semantics=semantics,
            vmem_limit_bytes=_VMEM_LIMIT,
        ),
    )(x4, kp["m1"], kp["b1"], kp["m2"], kp["b2"], kp["w3"], kp["b3"])


# --------------------------------------------------------------------------
# One-time parameter lowering (PyTorch layout -> kernel layout)
# --------------------------------------------------------------------------
def _rowconv_matrix(w_oihw, cin, width, stride_w):
    """Dense (3*cin*width, cout*w_out) matrix: one 3-row input band -> one output row.

    Row index = tap*cin*width + c*width + w  (tap 0/1/2 = input rows h-1/h/h+1);
    col index = cout*w_out + w_out.  Built exactly by pushing one-hot bands
    through lax.conv (W padding / stride are baked in; zero entries are exact).
    """
    n_in = 3 * cin * width
    eye = jnp.eye(n_in, dtype=jnp.float32).reshape(n_in, 3, cin, width)
    eye = jnp.transpose(eye, (0, 2, 1, 3))                 # NCHW (n, cin, 3, width)
    cols = lax.conv_general_dilated(
        eye, w_oihw, window_strides=(1, stride_w),
        padding=((0, 0), (1, 1)),
        dimension_numbers=("NCHW", "OIHW", "NCHW"))        # (n, cout, 1, w_out)
    return cols.reshape(n_in, -1)


def prepare_kernel_params(params):
    """Call once at init: lowers PyTorch-convention params to kernel layout."""
    c, h, w = INPUT_SHAPE
    c1 = params["w1"].shape[0]                             # 8
    c2 = params["w2"].shape[0]                             # 16
    h2, w2 = h // 2, w // 2                                # 8, 8

    m1 = _rowconv_matrix(params["w1"], c, w, stride_w=1)   # (192, 128)
    m2 = _rowconv_matrix(params["w2"], c1, w, stride_w=2)  # (384, 128)
    b1 = jnp.repeat(params["b1"], w).reshape(1, -1)        # (1, 128)  (c1, w)
    b2 = jnp.repeat(params["b2"], w2).reshape(1, -1)       # (1, 128)  (c2, w2)

    # Final Linear: torch flatten order is (c2, h2, w2); kernel order is
    # (h2, c2, w2) -> permute wl's columns once here.
    wl = params["wl"].reshape(OUTPUT_DIM, c2, h2, w2)
    w3 = jnp.transpose(wl, (0, 2, 1, 3)).reshape(OUTPUT_DIM, -1).T   # (1024, 32)

    return {
        "m1": m1.astype(jnp.bfloat16),
        "b1": b1.astype(jnp.float32),
        "m2": m2.astype(jnp.bfloat16),
        "b2": b2.astype(jnp.float32),
        "w3": w3.astype(jnp.bfloat16),
        "b3": params["bl"].reshape(1, -1).astype(jnp.float32),
    }


# --------------------------------------------------------------------------
# Parameters (deterministic, PyTorch-convention shapes) and forward pass
# --------------------------------------------------------------------------
def init_params(key):
    c, h, w = INPUT_SHAPE
    c1, c2 = 8, 16
    keys = jax.random.split(key, 6)

    def u(k, shape, fan_in):
        bound = 1.0 / math.sqrt(fan_in)
        return jax.random.uniform(k, shape, jnp.float32, -bound, bound)

    feat = c2 * (h // 2) * (w // 2)
    return {
        "w1": u(keys[0], (c1, c, 3, 3), c * 9),        # OIHW
        "b1": u(keys[1], (c1,), c * 9),
        "w2": u(keys[2], (c2, c1, 3, 3), c1 * 9),      # OIHW
        "b2": u(keys[3], (c2,), c1 * 9),
        "wl": u(keys[4], (OUTPUT_DIM, feat), feat),    # (out, in) like nn.Linear
        "bl": u(keys[5], (OUTPUT_DIM,), feat),
    }


def cnn_forward(x_flat, kparams):
    """Cnn.forward with input_flattened=True, output_dim=OUTPUT_DIM."""
    batch_dims = x_flat.shape[:-1]
    x4 = x_flat.reshape((-1,) + INPUT_SHAPE)       # free metadata reshape (CHW-flat)
    b = x4.shape[0]
    tb, n_tiles = _choose_tiles(b, _MAX_BATCH_TILE)
    bp = tb * n_tiles
    if bp != b:
        x4 = jnp.pad(x4, ((0, bp - b), (0, 0), (0, 0), (0, 0)))
    out = _fused_forward(x4, kparams, tb, n_tiles)
    out = out[:b, :OUTPUT_DIM]
    return out.reshape(batch_dims + (OUTPUT_DIM,))


def cnn_reference(x_flat, params):
    """Pure-JAX f32 reference mirroring the PyTorch NCHW semantics."""
    batch_dims = x_flat.shape[:-1]
    x = x_flat.reshape((-1,) + INPUT_SHAPE)

    def conv(x, w, b, s):
        y = lax.conv_general_dilated(
            x, w, window_strides=(s, s), padding=((1, 1), (1, 1)),
            dimension_numbers=("NCHW", "OIHW", "NCHW"),
            precision=lax.Precision.HIGHEST)
        return jnp.maximum(y + b[None, :, None, None], 0.0)

    y = conv(x, params["w1"], params["b1"], 1)
    y = conv(y, params["w2"], params["b2"], 2)
    y = y.reshape(y.shape[0], -1)
    out = jnp.dot(y, params["wl"].T,
                  precision=lax.Precision.HIGHEST) + params["bl"]
    return out.reshape(batch_dims + (OUTPUT_DIM,))


if __name__ == "__main__":
    key = jax.random.PRNGKey(0)
    pkey, xkey = jax.random.split(key)
    params = init_params(pkey)
    kparams = prepare_kernel_params(params)    # one-time layout lowering

    batch = 2
    x_flat = jax.random.normal(xkey, (batch, IN_FEATURES), jnp.float32)

    fwd = jax.jit(cnn_forward)
    out = jax.block_until_ready(fwd(x_flat, kparams))
    ref = jax.block_until_ready(cnn_reference(x_flat, params))

    assert out.shape == (batch, OUTPUT_DIM), out.shape
    err = float(jnp.max(jnp.abs(out - ref)))
    # bf16 MXU matmuls vs the f32 HIGHEST-precision reference -> loosened tol.
    assert err < 2e-2, f"max abs err {err}"
    print("KERNEL_OK")
</pallas_src>

<mosaic_0001>
module attributes {stable_mosaic.version = 11 : i64} {
  func.func @_fused_cnn_kernel(%arg0: i32, %arg1: memref<16x4x16x16xf32, #tpu.memory_space<vmem>>, %arg2: memref<192x128xbf16, #tpu.memory_space<vmem>>, %arg3: memref<1x128xf32, #tpu.memory_space<vmem>>, %arg4: memref<384x128xbf16, #tpu.memory_space<vmem>>, %arg5: memref<1x128xf32, #tpu.memory_space<vmem>>, %arg6: memref<1024x32xbf16, #tpu.memory_space<vmem>>, %arg7: memref<1x32xf32, #tpu.memory_space<vmem>>, %arg8: memref<16x128xf32, #tpu.memory_space<vmem>>) attributes {dimension_semantics = [#tpu.dimension_semantics<arbitrary>], iteration_bounds = array<i64: 1>, scalar_prefetch = 0 : i64, scratch_operands = 0 : i64, tpu.core_type = #tpu.core_type<tc>, window_params = [{transform_indices = @transform_0, window_bounds = array<i64: 16, 4, 16, 16>}, {pipeline_mode = #tpu.pipeline_mode<synchronous>, transform_indices = @transform_1, window_bounds = array<i64: 192, 128>}, {pipeline_mode = #tpu.pipeline_mode<synchronous>, transform_indices = @transform_2, window_bounds = array<i64: 1, 128>}, {pipeline_mode = #tpu.pipeline_mode<synchronous>, transform_indices = @transform_3, window_bounds = array<i64: 384, 128>}, {pipeline_mode = #tpu.pipeline_mode<synchronous>, transform_indices = @transform_4, window_bounds = array<i64: 1, 128>}, {pipeline_mode = #tpu.pipeline_mode<synchronous>, transform_indices = @transform_5, window_bounds = array<i64: 1024, 32>}, {pipeline_mode = #tpu.pipeline_mode<synchronous>, transform_indices = @transform_6, window_bounds = array<i64: 1, 32>}, {transform_indices = @transform_7, window_bounds = array<i64: 16, 128>}]} {
    %c0 = arith.constant 0 : index
    %c0_0 = arith.constant 0 : index
    %c0_1 = arith.constant 0 : index
    %c0_2 = arith.constant 0 : index
    %0 = vector.load %arg1[%c0, %c0_0, %c0_1, %c0_2] : memref<16x4x16x16xf32, #tpu.memory_space<vmem>>, vector<16x4x16x16xf32>
    %1 = arith.truncf %0 : vector<16x4x16x16xf32> to vector<16x4x16x16xbf16>
    %cst = arith.constant 0.000000e+00 : bf16
    %2 = vector.broadcast %cst : bf16 to vector<16x1x16xbf16>
    %3 = vector.extract_strided_slice %1 {offsets = [0, 0, 0, 0], sizes = [16, 1, 16, 16], strides = [1, 1, 1, 1]} : vector<16x4x16x16xbf16> to vector<16x1x16x16xbf16>
    %4 = vector.shape_cast %3 : vector<16x1x16x16xbf16> to vector<16x16x16xbf16>
    %5 = vector.extract_strided_slice %4 {offsets = [0, 0, 0], sizes = [16, 15, 16], strides = [1, 1, 1]} : vector<16x16x16xbf16> to vector<16x15x16xbf16>
    %6 = tpu.concatenate %2, %5 in 1 : vector<16x1x16xbf16>, vector<16x15x16xbf16> -> vector<16x16x16xbf16>
    %7 = vector.extract_strided_slice %1 {offsets = [0, 1, 0, 0], sizes = [16, 1, 16, 16], strides = [1, 1, 1, 1]} : vector<16x4x16x16xbf16> to vector<16x1x16x16xbf16>
    %8 = vector.shape_cast %7 : vector<16x1x16x16xbf16> to vector<16x16x16xbf16>
    %9 = vector.extract_strided_slice %8 {offsets = [0, 0, 0], sizes = [16, 15, 16], strides = [1, 1, 1]} : vector<16x16x16xbf16> to vector<16x15x16xbf16>
    %10 = tpu.concatenate %2, %9 in 1 : vector<16x1x16xbf16>, vector<16x15x16xbf16> -> vector<16x16x16xbf16>
    %11 = vector.extract_strided_slice %1 {offsets = [0, 2, 0, 0], sizes = [16, 1, 16, 16], strides = [1, 1, 1, 1]} : vector<16x4x16x16xbf16> to vector<16x1x16x16xbf16>
    %12 = vector.shape_cast %11 : vector<16x1x16x16xbf16> to vector<16x16x16xbf16>
    %13 = vector.extract_strided_slice %12 {offsets = [0, 0, 0], sizes = [16, 15, 16], strides = [1, 1, 1]} : vector<16x16x16xbf16> to vector<16x15x16xbf16>
    %14 = tpu.concatenate %2, %13 in 1 : vector<16x1x16xbf16>, vector<16x15x16xbf16> -> vector<16x16x16xbf16>
    %15 = vector.extract_strided_slice %1 {offsets = [0, 3, 0, 0], sizes = [16, 1, 16, 16], strides = [1, 1, 1, 1]} : vector<16x4x16x16xbf16> to vector<16x1x16x16xbf16>
    %16 = vector.shape_cast %15 : vector<16x1x16x16xbf16> to vector<16x16x16xbf16>
    %17 = vector.extract_strided_slice %16 {offsets = [0, 0, 0], sizes = [16, 15, 16], strides = [1, 1, 1]} : vector<16x16x16xbf16> to vector<16x15x16xbf16>
    %18 = tpu.concatenate %2, %17 in 1 : vector<16x1x16xbf16>, vector<16x15x16xbf16> -> vector<16x16x16xbf16>
    %19 = vector.extract_strided_slice %1 {offsets = [0, 0, 0, 0], sizes = [16, 1, 16, 16], strides = [1, 1, 1, 1]} : vector<16x4x16x16xbf16> to vector<16x1x16x16xbf16>
    %20 = vector.shape_cast %19 : vector<16x1x16x16xbf16> to vector<16x16x16xbf16>
    %21 = vector.extract_strided_slice %1 {offsets = [0, 1, 0, 0], sizes = [16, 1, 16, 16], strides = [1, 1, 1, 1]} : vector<16x4x16x16xbf16> to vector<16x1x16x16xbf16>
    %22 = vector.shape_cast %21 : vector<16x1x16x16xbf16> to vector<16x16x16xbf16>
    %23 = vector.extract_strided_slice %1 {offsets = [0, 2, 0, 0], sizes = [16, 1, 16, 16], strides = [1, 1, 1, 1]} : vector<16x4x16x16xbf16> to vector<16x1x16x16xbf16>
    %24 = vector.shape_cast %23 : vector<16x1x16x16xbf16> to vector<16x16x16xbf16>
    %25 = vector.extract_strided_slice %1 {offsets = [0, 3, 0, 0], sizes = [16, 1, 16, 16], strides = [1, 1, 1, 1]} : vector<16x4x16x16xbf16> to vector<16x1x16x16xbf16>
    %26 = vector.shape_cast %25 : vector<16x1x16x16xbf16> to vector<16x16x16xbf16>
    %27 = vector.extract_strided_slice %1 {offsets = [0, 0, 0, 0], sizes = [16, 1, 16, 16], strides = [1, 1, 1, 1]} : vector<16x4x16x16xbf16> to vector<16x1x16x16xbf16>
    %28 = vector.shape_cast %27 : vector<16x1x16x16xbf16> to vector<16x16x16xbf16>
    %29 = vector.extract_strided_slice %28 {offsets = [0, 1, 0], sizes = [16, 15, 16], strides = [1, 1, 1]} : vector<16x16x16xbf16> to vector<16x15x16xbf16>
    %30 = tpu.concatenate %29, %2 in 1 : vector<16x15x16xbf16>, vector<16x1x16xbf16> -> vector<16x16x16xbf16>
    %31 = vector.extract_strided_slice %1 {offsets = [0, 1, 0, 0], sizes = [16, 1, 16, 16], strides = [1, 1, 1, 1]} : vector<16x4x16x16xbf16> to vector<16x1x16x16xbf16>
    %32 = vector.shape_cast %31 : vector<16x1x16x16xbf16> to vector<16x16x16xbf16>
    %33 = vector.extract_strided_slice %32 {offsets = [0, 1, 0], sizes = [16, 15, 16], strides = [1, 1, 1]} : vector<16x16x16xbf16> to vector<16x15x16xbf16>
    %34 = tpu.concatenate %33, %2 in 1 : vector<16x15x16xbf16>, vector<16x1x16xbf16> -> vector<16x16x16xbf16>
    %35 = vector.extract_strided_slice %1 {offsets = [0, 2, 0, 0], sizes = [16, 1, 16, 16], strides = [1, 1, 1, 1]} : vector<16x4x16x16xbf16> to vector<16x1x16x16xbf16>
    %36 = vector.shape_cast %35 : vector<16x1x16x16xbf16> to vector<16x16x16xbf16>
    %37 = vector.extract_strided_slice %36 {offsets = [0, 1, 0], sizes = [16, 15, 16], strides = [1, 1, 1]} : vector<16x16x16xbf16> to vector<16x15x16xbf16>
    %38 = tpu.concatenate %37, %2 in 1 : vector<16x15x16xbf16>, vector<16x1x16xbf16> -> vector<16x16x16xbf16>
    %39 = vector.extract_strided_slice %1 {offsets = [0, 3, 0, 0], sizes = [16, 1, 16, 16], strides = [1, 1, 1, 1]} : vector<16x4x16x16xbf16> to vector<16x1x16x16xbf16>
    %40 = vector.shape_cast %39 : vector<16x1x16x16xbf16> to vector<16x16x16xbf16>
    %41 = vector.extract_strided_slice %40 {offsets = [0, 1, 0], sizes = [16, 15, 16], strides = [1, 1, 1]} : vector<16x16x16xbf16> to vector<16x15x16xbf16>
    %42 = tpu.concatenate %41, %2 in 1 : vector<16x15x16xbf16>, vector<16x1x16xbf16> -> vector<16x16x16xbf16>
    %43 = tpu.concatenate %6, %10, %14, %18, %20, %22, %24, %26, %30, %34, %38, %42 in 2 : vector<16x16x16xbf16>, vector<16x16x16xbf16>, vector<16x16x16xbf16>, vector<16x16x16xbf16>, vector<16x16x16xbf16>, vector<16x16x16xbf16>, vector<16x16x16xbf16>, vector<16x16x16xbf16>, vector<16x16x16xbf16>, vector<16x16x16xbf16>, vector<16x16x16xbf16>, vector<16x16x16xbf16> -> vector<16x16x192xbf16>
    %44 = vector.shape_cast %43 : vector<16x16x192xbf16> to vector<256x192xbf16>
    %c0_3 = arith.constant 0 : index
    %c0_4 = arith.constant 0 : index
    %45 = vector.load %arg2[%c0_3, %c0_4] : memref<192x128xbf16, #tpu.memory_space<vmem>>, vector<192x128xbf16>
    %cst_5 = arith.constant dense<0.000000e+00> : vector<256x128xf32>
    %46 = tpu.matmul %44, %45, %cst_5 {dimension_numbers = #tpu.dot_dimension_numbers<[1], [0], [0], [1], [0, 0, 1, 1], [], []>} : vector<256x192xbf16>, vector<192x128xbf16>, vector<256x128xf32> -> vector<256x128xf32>
    %c0_6 = arith.constant 0 : index
    %c0_7 = arith.constant 0 : index
    %47 = vector.load %arg3[%c0_6, %c0_7] : memref<1x128xf32, #tpu.memory_space<vmem>>, vector<1x128xf32>
    %48 = vector.broadcast %47 : vector<1x128xf32> to vector<256x128xf32>
    %49 = arith.addf %46, %48 : vector<256x128xf32>
    %cst_8 = arith.constant 0.000000e+00 : f32
    %50 = vector.broadcast %cst_8 : f32 to vector<256x128xf32>
    %51 = arith.maximumf %49, %50 : vector<256x128xf32>
    %52 = arith.truncf %51 : vector<256x128xf32> to vector<256x128xbf16>
    %53 = vector.shape_cast %52 : vector<256x128xbf16> to vector<16x16x128xbf16>
    %cst_9 = arith.constant 0.000000e+00 : bf16
    %54 = vector.broadcast %cst_9 : bf16 to vector<16x1x128xbf16>
    %55 = vector.extract_strided_slice %53 {offsets = [0, 0, 0], sizes = [16, 1, 128], strides = [1, 1, 1]} : vector<16x16x128xbf16> to vector<16x1x128xbf16>
    %56 = vector.extract_strided_slice %53 {offsets = [0, 2, 0], sizes = [16, 1, 128], strides = [1, 1, 1]} : vector<16x16x128xbf16> to vector<16x1x128xbf16>
    %57 = vector.extract_strided_slice %53 {offsets = [0, 4, 0], sizes = [16, 1, 128], strides = [1, 1, 1]} : vector<16x16x128xbf16> to vector<16x1x128xbf16>
    %58 = vector.extract_strided_slice %53 {offsets = [0, 6, 0], sizes = [16, 1, 128], strides = [1, 1, 1]} : vector<16x16x128xbf16> to vector<16x1x128xbf16>
    %59 = vector.extract_strided_slice %53 {offsets = [0, 8, 0], sizes = [16, 1, 128], strides = [1, 1, 1]} : vector<16x16x128xbf16> to vector<16x1x128xbf16>
    %60 = vector.extract_strided_slice %53 {offsets = [0, 10, 0], sizes = [16, 1, 128], strides = [1, 1, 1]} : vector<16x16x128xbf16> to vector<16x1x128xbf16>
    %61 = vector.extract_strided_slice %53 {offsets = [0, 12, 0], sizes = [16, 1, 128], strides = [1, 1, 1]} : vector<16x16x128xbf16> to vector<16x1x128xbf16>
    %62 = vector.extract_strided_slice %53 {offsets = [0, 14, 0], sizes = [16, 1, 128], strides = [1, 1, 1]} : vector<16x16x128xbf16> to vector<16x1x128xbf16>
    %63 = tpu.concatenate %55, %56, %57, %58, %59, %60, %61, %62 in 1 : vector<16x1x128xbf16>, vector<16x1x128xbf16>, vector<16x1x128xbf16>, vector<16x1x128xbf16>, vector<16x1x128xbf16>, vector<16x1x128xbf16>, vector<16x1x128xbf16>, vector<16x1x128xbf16> -> vector<16x8x128xbf16>
    %64 = vector.extract_strided_slice %53 {offsets = [0, 1, 0], sizes = [16, 1, 128], strides = [1, 1, 1]} : vector<16x16x128xbf16> to vector<16x1x128xbf16>
    %65 = vector.extract_strided_slice %53 {offsets = [0, 3, 0], sizes = [16, 1, 128], strides = [1, 1, 1]} : vector<16x16x128xbf16> to vector<16x1x128xbf16>
    %66 = vector.extract_strided_slice %53 {offsets = [0, 5, 0], sizes = [16, 1, 128], strides = [1, 1, 1]} : vector<16x16x128xbf16> to vector<16x1x128xbf16>
    %67 = vector.extract_strided_slice %53 {offsets = [0, 7, 0], sizes = [16, 1, 128], strides = [1, 1, 1]} : vector<16x16x128xbf16> to vector<16x1x128xbf16>
    %68 = vector.extract_strided_slice %53 {offsets = [0, 9, 0], sizes = [16, 1, 128], strides = [1, 1, 1]} : vector<16x16x128xbf16> to vector<16x1x128xbf16>
    %69 = vector.extract_strided_slice %53 {offsets = [0, 11, 0], sizes = [16, 1, 128], strides = [1, 1, 1]} : vector<16x16x128xbf16> to vector<16x1x128xbf16>
    %70 = vector.extract_strided_slice %53 {offsets = [0, 13, 0], sizes = [16, 1, 128], strides = [1, 1, 1]} : vector<16x16x128xbf16> to vector<16x1x128xbf16>
    %71 = vector.extract_strided_slice %53 {offsets = [0, 15, 0], sizes = [16, 1, 128], strides = [1, 1, 1]} : vector<16x16x128xbf16> to vector<16x1x128xbf16>
    %72 = tpu.concatenate %64, %65, %66, %67, %68, %69, %70, %71 in 1 : vector<16x1x128xbf16>, vector<16x1x128xbf16>, vector<16x1x128xbf16>, vector<16x1x128xbf16>, vector<16x1x128xbf16>, vector<16x1x128xbf16>, vector<16x1x128xbf16>, vector<16x1x128xbf16> -> vector<16x8x128xbf16>
    %73 = vector.extract_strided_slice %72 {offsets = [0, 0, 0], sizes = [16, 7, 128], strides = [1, 1, 1]} : vector<16x8x128xbf16> to vector<16x7x128xbf16>
    %74 = tpu.concatenate %54, %73 in 1 : vector<16x1x128xbf16>, vector<16x7x128xbf16> -> vector<16x8x128xbf16>
    %75 = tpu.concatenate %74, %63, %72 in 2 : vector<16x8x128xbf16>, vector<16x8x128xbf16>, vector<16x8x128xbf16> -> vector<16x8x384xbf16>
    %76 = vector.shape_cast %75 : vector<16x8x384xbf16> to vector<128x384xbf16>
    %c0_10 = arith.constant 0 : index
    %c0_11 = arith.constant 0 : index
    %77 = vector.load %arg4[%c0_10, %c0_11] : memref<384x128xbf16, #tpu.memory_space<vmem>>, vector<384x128xbf16>
    %cst_12 = arith.constant dense<0.000000e+00> : vector<128x128xf32>
    %78 = tpu.matmul %76, %77, %cst_12 {dimension_numbers = #tpu.dot_dimension_numbers<[1], [0], [0], [1], [0, 0, 1, 1], [], []>} : vector<128x384xbf16>, vector<384x128xbf16>, vector<128x128xf32> -> vector<128x128xf32>
    %c0_13 = arith.constant 0 : index
    %c0_14 = arith.constant 0 : index
    %79 = vector.load %arg5[%c0_13, %c0_14] : memref<1x128xf32, #tpu.memory_space<vmem>>, vector<1x128xf32>
    %80 = vector.broadcast %79 : vector<1x128xf32> to vector<128x128xf32>
    %81 = arith.addf %78, %80 : vector<128x128xf32>
    %cst_15 = arith.constant 0.000000e+00 : f32
    %82 = vector.broadcast %cst_15 : f32 to vector<128x128xf32>
    %83 = arith.maximumf %81, %82 : vector<128x128xf32>
    %84 = arith.truncf %83 : vector<128x128xf32> to vector<128x128xbf16>
    %85 = vector.shape_cast %84 : vector<128x128xbf16> to vector<16x8x128xbf16>
    %86 = vector.extract_strided_slice %85 {offsets = [0, 0, 0], sizes = [16, 1, 128], strides = [1, 1, 1]} : vector<16x8x128xbf16> to vector<16x1x128xbf16>
    %87 = vector.shape_cast %86 : vector<16x1x128xbf16> to vector<16x128xbf16>
    %88 = vector.extract_strided_slice %85 {offsets = [0, 1, 0], sizes = [16, 1, 128], strides = [1, 1, 1]} : vector<16x8x128xbf16> to vector<16x1x128xbf16>
    %89 = vector.shape_cast %88 : vector<16x1x128xbf16> to vector<16x128xbf16>
    %90 = vector.extract_strided_slice %85 {offsets = [0, 2, 0], sizes = [16, 1, 128], strides = [1, 1, 1]} : vector<16x8x128xbf16> to vector<16x1x128xbf16>
    %91 = vector.shape_cast %90 : vector<16x1x128xbf16> to vector<16x128xbf16>
    %92 = vector.extract_strided_slice %85 {offsets = [0, 3, 0], sizes = [16, 1, 128], strides = [1, 1, 1]} : vector<16x8x128xbf16> to vector<16x1x128xbf16>
    %93 = vector.shape_cast %92 : vector<16x1x128xbf16> to vector<16x128xbf16>
    %94 = vector.extract_strided_slice %85 {offsets = [0, 4, 0], sizes = [16, 1, 128], strides = [1, 1, 1]} : vector<16x8x128xbf16> to vector<16x1x128xbf16>
    %95 = vector.shape_cast %94 : vector<16x1x128xbf16> to vector<16x128xbf16>
    %96 = vector.extract_strided_slice %85 {offsets = [0, 5, 0], sizes = [16, 1, 128], strides = [1, 1, 1]} : vector<16x8x128xbf16> to vector<16x1x128xbf16>
    %97 = vector.shape_cast %96 : vector<16x1x128xbf16> to vector<16x128xbf16>
    %98 = vector.extract_strided_slice %85 {offsets = [0, 6, 0], sizes = [16, 1, 128], strides = [1, 1, 1]} : vector<16x8x128xbf16> to vector<16x1x128xbf16>
    %99 = vector.shape_cast %98 : vector<16x1x128xbf16> to vector<16x128xbf16>
    %100 = vector.extract_strided_slice %85 {offsets = [0, 7, 0], sizes = [16, 1, 128], strides = [1, 1, 1]} : vector<16x8x128xbf16> to vector<16x1x128xbf16>
    %101 = vector.shape_cast %100 : vector<16x1x128xbf16> to vector<16x128xbf16>
    %102 = tpu.concatenate %87, %89, %91, %93, %95, %97, %99, %101 in 1 : vector<16x128xbf16>, vector<16x128xbf16>, vector<16x128xbf16>, vector<16x128xbf16>, vector<16x128xbf16>, vector<16x128xbf16>, vector<16x128xbf16>, vector<16x128xbf16> -> vector<16x1024xbf16>
    %c0_16 = arith.constant 0 : index
    %c0_17 = arith.constant 0 : index
    %103 = vector.load %arg6[%c0_16, %c0_17] : memref<1024x32xbf16, #tpu.memory_space<vmem>>, vector<1024x32xbf16>
    %cst_18 = arith.constant dense<0.000000e+00> : vector<16x32xf32>
    %104 = tpu.matmul %102, %103, %cst_18 {dimension_numbers = #tpu.dot_dimension_numbers<[1], [0], [0], [1], [0, 0, 1, 1], [], []>} : vector<16x1024xbf16>, vector<1024x32xbf16>, vector<16x32xf32> -> vector<16x32xf32>
    %c0_19 = arith.constant 0 : index
    %c0_20 = arith.constant 0 : index
    %105 = vector.load %arg7[%c0_19, %c0_20] : memref<1x32xf32, #tpu.memory_space<vmem>>, vector<1x32xf32>
    %106 = vector.broadcast %105 : vector<1x32xf32> to vector<16x32xf32>
    %107 = arith.addf %104, %106 : vector<16x32xf32>
    %cst_21 = arith.constant 0.000000e+00 : f32
    %108 = vector.broadcast %cst_21 : f32 to vector<16x96xf32>
    %109 = tpu.concatenate %107, %108 in 1 : vector<16x32xf32>, vector<16x96xf32> -> vector<16x128xf32>
    %c0_22 = arith.constant 0 : index
    %c0_23 = arith.constant 0 : index
    %110 = vector.load %arg8[%c0_22, %c0_23] : memref<16x128xf32, #tpu.memory_space<vmem>>, vector<16x128xf32>
    tpu.vector_store %arg8[%c0_22, %c0_23], %109 {strides = array<i32>} : memref<16x128xf32, #tpu.memory_space<vmem>>, vector<16x128xf32>,
    return
  }
  func.func @transform_0(%arg0: i32) -> (i32, i32, i32, i32) {
    %c0_i32 = arith.constant 0 : i32
    %c0_i32_0 = arith.constant 0 : i32
    %c0_i32_1 = arith.constant 0 : i32
    %c0_i32_2 = arith.constant 0 : i32
    return %arg0, %c0_i32, %c0_i32_0, %c0_i32_1 : i32, i32, i32, i32
  }
  func.func @transform_1(%arg0: i32) -> (i32, i32) {
    %c0_i32 = arith.constant 0 : i32
    %c0_i32_0 = arith.constant 0 : i32
    %c0_i32_1 = arith.constant 0 : i32
    return %c0_i32, %c0_i32_0 : i32, i32
  }
  func.func @transform_2(%arg0: i32) -> (i32, i32) {
    %c0_i32 = arith.constant 0 : i32
    %c0_i32_0 = arith.constant 0 : i32
    %c0_i32_1 = arith.constant 0 : i32
    return %c0_i32, %c0_i32_0 : i32, i32
  }
  func.func @transform_3(%arg0: i32) -> (i32, i32) {
    %c0_i32 = arith.constant 0 : i32
    %c0_i32_0 = arith.constant 0 : i32
    %c0_i32_1 = arith.constant 0 : i32
    return %c0_i32, %c0_i32_0 : i32, i32
  }
  func.func @transform_4(%arg0: i32) -> (i32, i32) {
    %c0_i32 = arith.constant 0 : i32
    %c0_i32_0 = arith.constant 0 : i32
    %c0_i32_1 = arith.constant 0 : i32
    return %c0_i32, %c0_i32_0 : i32, i32
  }
  func.func @transform_5(%arg0: i32) -> (i32, i32) {
    %c0_i32 = arith.constant 0 : i32
    %c0_i32_0 = arith.constant 0 : i32
    %c0_i32_1 = arith.constant 0 : i32
    return %c0_i32, %c0_i32_0 : i32, i32
  }
  func.func @transform_6(%arg0: i32) -> (i32, i32) {
    %c0_i32 = arith.constant 0 : i32
    %c0_i32_0 = arith.constant 0 : i32
    %c0_i32_1 = arith.constant 0 : i32
    return %c0_i32, %c0_i32_0 : i32, i32
  }
  func.func @transform_7(%arg0: i32) -> (i32, i32) {
    %c0_i32 = arith.constant 0 : i32
    %c0_i32_0 = arith.constant 0 : i32
    return %arg0, %c0_i32 : i32, i32
  }
}

</mosaic_0001>

<bundles_post_ra>
// kernel: cnn_forward.1
= control target key start
LH: loop header
LB: loop body
LE: loop exit
PB: predicated region body
PF: predicated region fallthrough
CT: control target
= control target key end

     0   :  { %v5379_v6 = vmov 0   ;;  %s5380_s17 = smov 64   ;;  %vm347_vm0 = vcmask 1040384   ;;  %vm348_vm1 = vsmask.f32 256  ;;  %s5381_s22 = smov 80   ;;  %s8150_s0 = inlined_call_operand.vmem [shape: f32[16,4,16,16], index: 0, kind: input, shape index: {}]   ;;  %s8151_s1 = inlined_call_operand.vmem [shape: bf16[192,128], index: 1, kind: input, shape index: {}]   ;;  %s8152_s3 = inlined_call_operand.vmem [shape: bf16[384,128], index: 3, kind: input, shape index: {}]   ;;  %s8153_s2 = inlined_call_operand.vmem [shape: f32[1,128], index: 2, kind: input, shape index: {}]   ;;  %s8154_s5 = inlined_call_operand.vmem [shape: bf16[1024,32], index: 5, kind: input, shape index: {}]   ;;  %s8155_s4 = inlined_call_operand.vmem [shape: f32[1,128], index: 4, kind: input, shape index: {}]   ;;  %s8156_s6 = inlined_call_operand.vmem [shape: f32[1,32], index: 6, kind: input, shape index: {}]   ;;  %s8157_s7 = inlined_call_operand.vmem [shape: f32[16,128], index: 7, kind: output, shape index: {}]  }
   0x1   :  { %v27_v0 = vld [vmem:[%s8150_s0] sm:$0xff]  ;;  %v28_v1 = vld [vmem:[%s8150_s0 + $0x8] sm:$0xff]  ;;  %v29_v2 = vld [vmem:[%s8150_s0 + $0x10] sm:$0xff]  ;;  %2047 = vmatprep.subr.bf16.mxu0 %v5379_v6  ;;  %vm846_vm3 = vcmask 1047552   ;;  %vm847_vm4 = vsmask.f32 7424 }
   0x2   :  { %v5436_v3 = vpack.c.bf16 %v28_v1, %v27_v0  ;;  %v30_v4 = vld [vmem:[%s8150_s0 + $0x18] sm:$0xff]  ;;  %v33_v5 = vld [vmem:[%s8150_s0 + $0x30] sm:$0xff]  ;;  %v31_v9 = vld [vmem:[%s8150_s0 + $0x20] sm:$0xff]  ;;  %s5382_s27 = smov 16   ;;  %s5383_s28 = smov 48   ;;  %vm1537_vm6 = vcmask 130048  }
   0x3   :  { %v156_v7 = vpack.c.bf16 %v30_v4, %v29_v2  ;;  %v34_v8 = vld [vmem:[%s8150_s0 + $0x38] sm:$0xff]  ;;  %v32_v10 = vld [vmem:[%s8150_s0 + $0x28] sm:$0xff]  ;;  %v39_v13 = vld [vmem:[%s8150_s0 + $0x60] sm:$0xff]  ;;  %s5384_s10 = smov 32   ;;  %s5385_s13 = smov 96   ;;  %vm1586_vm7 = vcmask 261120  }
   0x4   :  { %1217 = vrot.lane.b32.xlu1 %v5436_v3, %s5380_s17  ;;  %v158_v11 = vpack.c.bf16 %v34_v8, %v33_v5  ;;  %v157_v12 = vpack.c.bf16 %v32_v10, %v31_v9  ;;  %v40_v14 = vld [vmem:[%s8150_s0 + $0x68] sm:$0xff]  ;;  %vm5466_vm2 = vmand %vm347_vm0, %vm348_vm1  ;;  %v37_v31 = vld [vmem:[%s8150_s0 + $0x50] sm:$0xff]  ;;  %s5386_s19 = smov 112   ;;  %vm1619_vm8 = vcmask 392192   ;;  %vm1652_vm9 = vcmask 523264  }
   0x5   :  { %v367_v15 = vshrl.u32 %v156_v7, 16  ;;  %v370_v16 = vshll.u32 %v156_v7, 16  ;;  %v5462_v17 = vpack.c.bf16 %v40_v14, %v39_v13  ;;  %v38_v32 = vld [vmem:[%s8150_s0 + $0x58] sm:$0xff]  ;;  %vm5487_vm5 = vmand %vm846_vm3, %vm847_vm4  ;;  %v41_v42 = vld [vmem:[%s8150_s0 + $0x70] sm:$0xff]  ;;  %vm8158_vm10 = vcmask 654336  }
   0x6   :  { %v655_v18 = vshrl.u32 %v158_v11, 16  ;;  %v658_v19 = vshll.u32 %v158_v11, 16  ;;  %v511_v20 = vshrl.u32 %v157_v12, 16  ;;  %v514_v21 = vshll.u32 %v157_v12, 16  ;;  %v42_v43 = vld [vmem:[%s8150_s0 + $0x78] sm:$0xff]  ;;  %v5278_v45 = vld [vmem:[%s8151_s1] sm:$0xff]  }
   0x7   :  { %v369_v22 = vrot.slane %v367_v15, 7  ;;  %v865_v27 = vrot.slane %v370_v16, 1  ;;  %v518_v30 = vshrl.u32 %v5462_v17, 16  ;;  %v5485_v38 = vpack.c.bf16 %v38_v32, %v37_v31  ;;  %2048 = vmatpush1.bf16.msra.mxu0 %v5278_v45  ;;  %v5279_v51 = vld [vmem:[%s8151_s1 + $0x8] sm:$0xff]   ;;  %v35_v53 = vld [vmem:[%s8150_s0 + $0x40] sm:$0xff]  ;;  %v5280_v60 = vld [vmem:[%s8151_s1 + $0x10] sm:$0xff]  }
   0x8   :  { %1265 = vrot.lane.b32.xlu1 %v156_v7, %s5381_s22  ;;  %v657_v24 = vrot.slane %v655_v18, 7  ;;  %v513_v25 = vrot.slane %v511_v20, 7  ;;  %v929_v37 = vrot.slane %v514_v21, 1  ;;  %v521_v41 = vshll.u32 %v5462_v17, 16  ;;  %2049 = vmatprep.subr.bf16.mxu0 %v5379_v6  ;;  %v36_v59 = vld [vmem:[%s8150_s0 + $0x48] sm:$0xff]  ;;  %v47_v61 = vld [vmem:[%s8150_s0 + $0xa0] sm:$0xff] }
   0x9   :  { %v372_v26 = vor.u32 %v370_v16, %v369_v22  ;;  %v866_v36 = vor.u32 %v865_v27, %v367_v15  ;;  %v520_v40 = vrot.slane %v518_v30, 7  ;;  %v993_v44 = vrot.slane %v658_v19, 1  ;;  %v48_v62 = vld [vmem:[%s8150_s0 + $0xa8] sm:$0xff]  ;;  %v5281_v7 = vld [vmem:[%s8151_s1 + $0x18] sm:$0xff]   ;;  %v45_v8 = vld [vmem:[%s8150_s0 + $0x90] sm:$0xff] }
   0xa   :  { %v660_v28 = vor.u32 %v658_v19, %v657_v24  ;;  %v516_v29 = vor.u32 %v514_v21, %v513_v25  ;;  %v930_v47 = vor.u32 %v929_v37, %v511_v20  ;;  %v374_v48 = vshrl.u32 %v5485_v38, 16  ;;  %v46_v13 = vld [vmem:[%s8150_s0 + $0x98] sm:$0xff]  ;;  %v5282_v14 = vld [vmem:[%s8151_s1 + $0x20] sm:$0xff]   ;;  %v49_v20 = vld [vmem:[%s8150_s0 + $0xb0] sm:$0xff] }
   0xb   :  { %v494_v33 = vsel %vm5466_vm2, 0, %v372_v26  ;;  %v913_v46 = vsel %vm5487_vm5, %v866_v36, 0  ;;  %v5508_v49 = vpack.c.bf16 %v42_v43, %v41_v42  ;;  %v523_v50 = vor.u32 %v521_v41, %v520_v40  ;;  %2050 = vmatpush1.bf16.msra.mxu0 %v5279_v51  ;;  %v50_v24 = vld [vmem:[%s8150_s0 + $0xb8] sm:$0xff]  ;;  %v5283_v25 = vld [vmem:[%s8151_s1 + $0x28] sm:$0xff]   ;;  %v55_v42 = vld [vmem:[%s8150_s0 + $0xe0] sm:$0xff] }
   0xc   :  { %1073 = vrot.lane.b32.xlu0 %v494_v33, %s5382_s27  ;;  %v782_v34 = vsel %vm5466_vm2, 0, %v660_v28  ;;  %v638_v35 = vsel %vm5466_vm2, 0, %v516_v29  ;;  %v994_v52 = vor.u32 %v993_v44, %v655_v18  ;;  %v977_v54 = vsel %vm5487_vm5, %v930_v47, 0  ;;  %2051 = vmatprep.subr.bf16.mxu0 %v5379_v6  ;;  %v5284_v33 = vld [vmem:[%s8151_s1 + $0x30] sm:$0xff]   ;;  %v56_v43 = vld [vmem:[%s8150_s0 + $0xe8] sm:$0xff] }
   0xd   :  { %1169 = vrot.lane.b32.xlu1 %v782_v34, %s5383_s28  ;;  %v376_v55 = vrot.slane %v374_v48, 7  ;;  %v377_v56 = vshll.u32 %v5485_v38, 16  ;;  %v662_v57 = vshrl.u32 %v5508_v49, 16  ;;  %v639_v58 = vsel %vm5466_vm2, 0, %v523_v50  ;;  %v43_v34 = vld [vmem:[%s8150_s0 + $0x80] sm:$0xff] }
   0xe   :  { %v1041_v63 = vsel %vm5487_vm5, %v994_v52, 0  ;;  %v5542_v0 = vpack.c.bf16 %v36_v59, %v35_v53  ;;  %v665_v4 = vshll.u32 %v5508_v49, 16  ;;  %v5545_v5 = vpack.c.bf16 %v48_v62, %v47_v61  ;;  %v5286_v50 = vld [vmem:[%s8151_s1 + $0x40] sm:$0xff]  }
   0xf   :  { %v379_v1 = vor.u32 %v377_v56, %v376_v55  ;;  %v664_v2 = vrot.slane %v662_v57, 7  ;;  %2052 = vmatpush1.bf16.msra.mxu0 %v5280_v60  ;;  %v931_v15 = vrot.slane %v521_v41, 1  ;;  %v164_v19 = vpack.c.bf16 %v46_v13, %v45_v8  ;;  %v5285_v41 = vld [vmem:[%s8151_s1 + $0x38] sm:$0xff]   ;;  %v53_v55 = vld [vmem:[%s8150_s0 + $0xd0] sm:$0xff] }
  0x10   :  { %1121 = vrot.lane.b32.xlu0 %v638_v35, %s5384_s10  ;;  %2053 = vmatprep.subr.bf16.mxu0 %v5379_v6  ;;  %v528_v22 = vshll.u32 %v5545_v5, 16  ;;  %v995_v28 = vrot.slane %v665_v4, 1  ;;  %v5592_v31 = vpack.c.bf16 %v50_v24, %v49_v20  ;;  %v44_v35 = vld [vmem:[%s8150_s0 + $0x88] sm:$0xff]  ;;  %vm1718_vm11 = vcmask 785408  }
  0x11   :  { %1313 = vrot.lane.b32.xlu1 %v157_v12, %s5385_s13  ;;  %v495_v9 = vsel %vm5466_vm2, 0, %v379_v1  ;;  %v667_v10 = vor.u32 %v665_v4, %v664_v2  ;;  %v525_v12 = vshrl.u32 %v5545_v5, 16  ;;  %v932_v26 = vor.u32 %v931_v15, %v518_v30  ;;  %v57_v1 = vld [vmem:[%s8150_s0 + $0xf0] sm:$0xff]  ;;  %v58_v2 = vld [vmem:[%s8150_s0 + $0xf8] sm:$0xff] }
  0x12   :  { %v381_v29 = vshrl.u32 %v164_v19, 16  ;;  %v996_v30 = vor.u32 %v995_v28, %v662_v57  ;;  %v384_v37 = vshll.u32 %v164_v19, 16  ;;  %v5623_v44 = vpack.c.bf16 %v44_v35, %v43_v34  ;;  %v5287_v57 = vld [vmem:[%s8151_s1 + $0x48] sm:$0xff]   ;;  %v5288_v4 = vld [vmem:[%s8151_s1 + $0x50] sm:$0xff]   ;;  %v62_v34 = vld [vmem:[%s8150_s0 + $0x118] sm:$0xff] }
  0x13   :  { %2054 = vmatpush1.bf16.msra.mxu0 %v5281_v7  ;;  %v783_v16 = vsel %vm5466_vm2, 0, %v667_v10  ;;  %v527_v21 = vrot.slane %v525_v12, 7  ;;  %v933_v60 = vrot.slane %v528_v22, 1  ;;  %vm1751_vm12 = vcmask 916480  }
  0x14   :  { %1409 = vrot.lane.b32.xlu0 %v913_v46, %s5382_s27  ;;  %2055 = vmatprep.subr.bf16.mxu0 %v5379_v6  ;;  %v383_v36 = vrot.slane %v381_v29, 7  ;;  %v1042_v45 = vsel %vm5487_vm5, %v996_v30, 0  ;;  %v869_v53 = vrot.slane %v384_v37, 1  ;;  %v61_v30 = vld [vmem:[%s8150_s0 + $0x110] sm:$0xff]  ;;  %vm2577_vm13 = vcmask 1041408  }
  0x15   :  { %1361 = vrot.lane.b32.xlu1 %v158_v11, %s5386_s19  ;;  %v867_v11 = vrot.slane %v377_v56, 1  ;;  %v530_v32 = vor.u32 %v528_v22, %v527_v21  ;;  %v54_v56 = vld [vmem:[%s8150_s0 + $0xd8] sm:$0xff]  ;;  %v63_v21 = vld [vmem:[%s8150_s0 + $0x120] sm:$0xff]  ;;  %v64_v22 = vld [vmem:[%s8150_s0 + $0x128] sm:$0xff]  ;;  %vm2578_vm14 = vsmask.f32 1280 }
  0x16   :  { %v386_v46 = vor.u32 %v384_v37, %v383_v36  ;;  %v870_v59 = vor.u32 %v869_v53, %v381_v29  ;;  %v168_v61 = vpack.c.bf16 %v54_v56, %v53_v55  ;;  %v5704_v29 = vpack.c.bf16 %v64_v22, %v63_v21  ;;  %vm6911_vm15 = vmand %vm2577_vm13, %vm2578_vm14 }
  0x17   :  { %v868_v18 = vor.u32 %v867_v11, %v374_v48  ;;  %2056 = vmatpush1.bf16.msra.mxu0 %v5282_v14  ;;  %v640_v40 = vsel %vm5466_vm2, 0, %v530_v32  ;;  %v672_v48 = vshll.u32 %v5592_v31, 16  ;;  %v170_v11 = vpack.c.bf16 %v58_v2, %v57_v1  ;;  %v5289_v14 = vld [vmem:[%s8151_s1 + $0x58] sm:$0xff]  }
  0x18   :  { %1457 = vrot.lane.b32.xlu0 %v977_v54, %s5384_s10  ;;  %2057 = vmatprep.subr.bf16.mxu0 %v5379_v6  ;;  %v496_v51 = vsel %vm5466_vm2, 0, %v386_v46  ;;  %v915_v8 = vsel %vm5487_vm5, %v870_v59, 0  ;;  %v388_v10 = vshrl.u32 %v168_v61, 16  ;;  %v71_v59 = vld [vmem:[%s8150_s0 + $0x160] sm:$0xff]  ;;  %vm2661_vm1 = vcmask 1042432  }
  0x19   :  { %1123 = vrot.lane.b32.xlu1 %v639_v58, %s5384_s10  ;;  %v914_v27 = vsel %vm5487_vm5, %v868_v18, 0  ;;  %v997_v7 = vrot.slane %v672_v48, 1  ;;  %v679_v28 = vshll.u32 %v170_v11, 16  ;;  %vm2662_vm3 = vsmask.f32 2304 }
  0x1a   :  { %v390_v18 = vrot.slane %v388_v10, 7  ;;  %vm6929_vm4 = vmand %vm2661_vm1, %vm2662_vm3  ;;  %vm2745_vm14 = vcmask 1043456   ;;  %vm2746_vm3 = vsmask.f32 3328 }
  0x1b   :  { %2058 = vmatpush1.bf16.msra.mxu0 %v5283_v25 }
  0x1c   :  { %1505 = vrot.lane.b32.xlu0 %v1041_v63, %s5383_s28  ;;  %2059 = vmatprep.subr.bf16.mxu0 %v5379_v6 }
  0x1d   :  { %1219 = vrot.lane.b32.xlu1 %v5542_v0, %s5380_s17 }
  0x1f   :  { %2060 = vmatpush1.bf16.msra.mxu0 %v5284_v33 }
  0x20   :  { %1075 = vrot.lane.b32.xlu0 %v495_v9, %s5382_s27  ;;  %2061 = vmatprep.subr.bf16.mxu0 %v5379_v6  ;;  %v934_v9 = vor.u32 %v933_v60, %v525_v12  ;;  %v51_v12 = vld [vmem:[%s8150_s0 + $0xc0] sm:$0xff]  ;;  %v72_v60 = vld [vmem:[%s8150_s0 + $0x168] sm:$0xff] }
  0x21   :  { %1267 = vrot.lane.b32.xlu1 %v5485_v38, %s5381_s22  ;;  %v669_v38 = vshrl.u32 %v5592_v31, 16 }
  0x23   :  { %v671_v47 = vrot.slane %v669_v38, 7  ;;  %2062 = vmatpush1.bf16.msra.mxu0 %v5285_v41  ;;  %v998_v15 = vor.u32 %v997_v7, %v669_v38  ;;  %v172_v38 = vpack.c.bf16 %v62_v34, %v61_v30  ;;  %v542_v41 = vshll.u32 %v5704_v29, 16 }
  0x24   :  { %1171 = vrot.lane.b32.xlu0 %v783_v16, %s5383_s28  ;;  %2063 = vmatprep.subr.bf16.mxu0 %v5379_v6  ;;  %v52_v16 = vld [vmem:[%s8150_s0 + $0xc8] sm:$0xff] }
  0x25   :  { %1315 = vrot.lane.b32.xlu1 %v5462_v17, %s5385_s13  ;;  %v978_v17 = vsel %vm5487_vm5, %v932_v26, 0  ;;  %v674_v52 = vor.u32 %v672_v48, %v671_v47  ;;  %v5699_v24 = vpack.c.bf16 %v52_v16, %v51_v12  ;;  %v1043_v25 = vsel %vm5487_vm5, %v998_v15, 0 }
  0x26   :  { %v999_v47 = vrot.slane %v679_v28, 1  ;;  %v395_v48 = vshrl.u32 %v172_v38, 16  ;;  %v398_v56 = vshll.u32 %v172_v38, 16 }
  0x27   :  { %2064 = vmatpush1.bf16.msra.mxu0 %v5286_v50  ;;  %v784_v58 = vsel %vm5466_vm2, 0, %v674_v52 }
  0x28   :  { %1411 = vrot.lane.b32.xlu0 %v914_v27, %s5382_s27  ;;  %2065 = vmatprep.subr.bf16.mxu0 %v5379_v6  ;;  %v397_v55 = vrot.slane %v395_v48, 7 }
  0x29   :  { %1363 = vrot.lane.b32.xlu1 %v5508_v49, %s5386_s19  ;;  %v5629_v49 = vpack.c.bf16 %v56_v43, %v55_v42  ;;  %v65_v42 = vld [vmem:[%s8150_s0 + $0x130] sm:$0xff]  ;;  %v66_v43 = vld [vmem:[%s8150_s0 + $0x138] sm:$0xff] }
  0x2a   :  { %v174_v50 = vpack.c.bf16 %v66_v43, %v65_v42 }
  0x2b   :  { %v532_v54 = vshrl.u32 %v5629_v49, 16  ;;  %v535_v63 = vshll.u32 %v5629_v49, 16  ;;  %2066 = vmatpush1.bf16.msra.mxu0 %v5287_v57 }
  0x2c   :  { %1459 = vrot.lane.b32.xlu0 %v978_v17, %s5384_s10  ;;  %2067 = vmatprep.subr.bf16.mxu0 %v5379_v6  ;;  %v539_v17 = vshrl.u32 %v5704_v29, 16  ;;  %v683_v57 = vshrl.u32 %v174_v50, 16  ;;  %v686_v2 = vshll.u32 %v174_v50, 16 }
  0x2d   :  { %1125 = vrot.lane.b32.xlu1 %v640_v40, %s5384_s10  ;;  %v534_v62 = vrot.slane %v532_v54, 7  ;;  %v935_v35 = vrot.slane %v535_v63, 1 }
  0x2e   :  { %v541_v40 = vrot.slane %v539_v17, 7  ;;  %v685_v1 = vrot.slane %v683_v57, 7  ;;  %v1001_v22 = vrot.slane %v686_v2, 1 }
  0x2f   :  { %v537_v13 = vor.u32 %v535_v63, %v534_v62  ;;  %2068 = vmatpush1.bf16.msra.mxu0 %v5288_v4  ;;  %v400_v63 = vor.u32 %v398_v56, %v397_v55  ;;  %v5760_v4 = vpack.c.bf16 %v72_v60, %v71_v59  ;;  %v220_v59 = vshrl.u32 %v5436_v3, 16 }
  0x30   :  { %1507 = vrot.lane.b32.xlu0 %v1042_v45, %s5383_s28  ;;  %2069 = vmatprep.subr.bf16.mxu0 %v5379_v6  ;;  %v676_v6 = vshrl.u32 %v170_v11, 16  ;;  %v936_v45 = vor.u32 %v935_v35, %v532_v54  ;;  %v59_v54 = vld [vmem:[%s8150_s0 + $0x100] sm:$0xff] }
  0x31   :  { %1221 = vrot.lane.b32.xlu1 %v5623_v44, %s5380_s17  ;;  %v641_v20 = vsel %vm5466_vm2, 0, %v537_v13  ;;  %v498_v7 = vsel %vm5466_vm2, 0, %v400_v63  ;;  %v70_v13 = vld [vmem:[%s8150_s0 + $0x158] sm:$0xff]  ;;  %v79_v35 = vld [vmem:[%s8150_s0 + $0x1a0] sm:$0xff] }
  0x32   :  { %v678_v27 = vrot.slane %v676_v6, 7  ;;  %v980_v52 = vsel %vm5487_vm5, %v936_v45, 0  ;;  %v1000_v53 = vor.u32 %v999_v47, %v676_v6  ;;  %v74_v6 = vld [vmem:[%s8150_s0 + $0x178] sm:$0xff] }
  0x33   :  { %2070 = vmatpush1.bf16.msra.mxu0 %v5289_v14  ;;  %v937_v14 = vrot.slane %v542_v41, 1 }
  0x34   :  { %1077 = vrot.lane.b32.xlu0 %v496_v51, %s5382_s27  ;;  %v681_v32 = vor.u32 %v679_v28, %v678_v27  ;;  %v544_v51 = vor.u32 %v542_v41, %v541_v40  ;;  %v1044_v62 = vsel %vm5487_vm5, %v1000_v53, 0 }
  0x35   :  { %1269 = vrot.lane.b32.xlu1 %v164_v19, %s5381_s22  ;;  %v391_v19 = vshll.u32 %v168_v61, 16 }
  0x36   :  { %v785_v36 = vsel %vm5466_vm2, 0, %v681_v32  ;;  %v67_v32 = vld [vmem:[%s8150_s0 + $0x140] sm:$0xff] }
  0x37   :  { %v393_v26 = vor.u32 %v391_v19, %v390_v18  ;;  %v871_v33 = vrot.slane %v391_v19, 1  ;;  %v549_v18 = vshll.u32 %v5760_v4, 16  ;;  %v73_v19 = vld [vmem:[%s8150_s0 + $0x170] sm:$0xff] }
  0x38   :  { %1173 = vrot.lane.b32.xlu0 %v784_v58, %s5383_s28  ;;  %v642_v58 = vsel %vm5466_vm2, 0, %v544_v51  ;;  %v78_v51 = vld [vmem:[%s8150_s0 + $0x198] sm:$0xff] }
  0x39   :  { %1317 = vrot.lane.b32.xlu1 %v5545_v5, %s5385_s13  ;;  %v979_v5 = vsel %vm5487_vm5, %v934_v9, 0  ;;  %v872_v37 = vor.u32 %v871_v33, %v388_v10  ;;  %v873_v9 = vrot.slane %v398_v56, 1  ;;  %v546_v10 = vshrl.u32 %v5760_v4, 16 }
  0x3b   :  { %v916_v46 = vsel %vm5487_vm5, %v872_v37, 0  ;;  %v548_v16 = vrot.slane %v546_v10, 7 }
  0x3c   :  { %1413 = vrot.lane.b32.xlu0 %v915_v8, %s5382_s27  ;;  %v688_v8 = vor.u32 %v686_v2, %v685_v1 }
  0x3d   :  { %1365 = vrot.lane.b32.xlu1 %v5592_v31, %s5386_s19  ;;  %v497_v31 = vsel %vm5466_vm2, 0, %v393_v26  ;;  %v178_v26 = vpack.c.bf16 %v74_v6, %v73_v19  ;;  %v551_v27 = vor.u32 %v549_v18, %v548_v16  ;;  %v87_v6 = vld [vmem:[%s8150_s0 + $0x1e0] sm:$0xff] }
  0x3e   :  { %v786_v15 = vsel %vm5466_vm2, 0, %v688_v8 }
  0x3f   :  { %v690_v30 = vshrl.u32 %v178_v26, 16  ;;  %v643_v34 = vsel %vm5466_vm2, 0, %v551_v27  ;;  %v693_v42 = vshll.u32 %v178_v26, 16 }
  0x40   :  { %1461 = vrot.lane.b32.xlu0 %v979_v5, %s5384_s10  ;;  %v874_v5 = vor.u32 %v873_v9, %v395_v48  ;;  %v222_v9 = vrot.slane %v220_v59, 7 }
  0x41   :  { %1127 = vrot.lane.b32.xlu1 %v641_v20, %s5384_s10  ;;  %v938_v20 = vor.u32 %v937_v14, %v539_v17  ;;  %v692_v41 = vrot.slane %v690_v30, 7  ;;  %v1003_v63 = vrot.slane %v693_v42, 1  ;;  %v76_v14 = vld [vmem:[%s8150_s0 + $0x188] sm:$0xff] }
  0x42   :  { %v917_v21 = vsel %vm5487_vm5, %v874_v5, 0 }
  0x43   :  { %v981_v28 = vsel %vm5487_vm5, %v938_v20, 0  ;;  %v88_v20 = vld [vmem:[%s8150_s0 + $0x1e8] sm:$0xff] }
  0x44   :  { %1509 = vrot.lane.b32.xlu0 %v1043_v25, %s5383_s28 }
  0x45   :  { %1223 = vrot.lane.b32.xlu1 %v5699_v24, %s5380_s17 }
  0x48   :  { %1079 = vrot.lane.b32.xlu0 %v497_v31, %s5382_s27  ;;  %v1002_v31 = vor.u32 %v1001_v22, %v683_v57  ;;  %v81_v57 = vld [vmem:[%s8150_s0 + $0x1b0] sm:$0xff] }
  0x49   :  { %1271 = vrot.lane.b32.xlu1 %v168_v61, %s5381_s22 }
  0x4c   :  { %1175 = vrot.lane.b32.xlu0 %v785_v36, %s5383_s28  ;;  %v80_v36 = vld [vmem:[%s8150_s0 + $0x1a8] sm:$0xff] }
  0x4d   :  { %1319 = vrot.lane.b32.xlu1 %v5629_v49, %s5385_s13  ;;  %v60_v49 = vld [vmem:[%s8150_s0 + $0x108] sm:$0xff]  ;;  %v5814_v43 = vpack.c.bf16 %v80_v36, %v79_v35 }
  0x4e   :  { %v5755_v61 = vpack.c.bf16 %v60_v49, %v59_v54 }
  0x4f   :  { %v553_v48 = vshrl.u32 %v5814_v43, 16  ;;  %v556_v56 = vshll.u32 %v5814_v43, 16 }
  0x50   :  { %1415 = vrot.lane.b32.xlu0 %v916_v46, %s5382_s27  ;;  %v695_v46 = vor.u32 %v693_v42, %v692_v41  ;;  %v86_v41 = vld [vmem:[%s8150_s0 + $0x1d8] sm:$0xff] }
  0x51   :  { %1367 = vrot.lane.b32.xlu1 %v170_v11, %s5386_s19  ;;  %v69_v11 = vld [vmem:[%s8150_s0 + $0x150] sm:$0xff]  ;;  %v555_v55 = vrot.slane %v553_v48, 7 }
  0x52   :  { %v176_v12 = vpack.c.bf16 %v70_v13, %v69_v11  ;;  %v787_v53 = vsel %vm5466_vm2, 0, %v695_v46  ;;  %v223_v11 = vshll.u32 %v5436_v3, 16  ;;  %v75_v13 = vld [vmem:[%s8150_s0 + $0x180] sm:$0xff]  ;;  %v227_v46 = vshrl.u32 %v5542_v0, 16 }
  0x53   :  { %v558_v8 = vor.u32 %v556_v56, %v555_v55 }
  0x54   :  { %1463 = vrot.lane.b32.xlu0 %v980_v52, %s5384_s10  ;;  %v402_v25 = vshrl.u32 %v176_v12, 16  ;;  %v405_v17 = vshll.u32 %v176_v12, 16  ;;  %v939_v52 = vrot.slane %v549_v18, 1  ;;  %v225_v19 = vor.u32 %v223_v11, %v222_v9 }
  0x55   :  { %1129 = vrot.lane.b32.xlu1 %v642_v58, %s5384_s10  ;;  %v82_v58 = vld [vmem:[%s8150_s0 + $0x1b8] sm:$0xff]  ;;  %v644_v18 = vsel %vm5466_vm2, 0, %v558_v8  ;;  %v798_v36 = vrot.slane %v223_v11, 1 }
  0x56   :  { %v404_v33 = vrot.slane %v402_v25, 7  ;;  %v875_v47 = vrot.slane %v405_v17, 1  ;;  %v940_v60 = vor.u32 %v939_v52, %v546_v10  ;;  %v5850_v2 = vpack.c.bf16 %v82_v58, %v81_v57 }
  0x57   :  { %v1004_v10 = vor.u32 %v1003_v63, %v690_v30  ;;  %v799_v55 = vor.u32 %v798_v36, %v220_v59  ;;  %v229_v59 = vrot.slane %v227_v46, 7  ;;  %v230_v63 = vshll.u32 %v5542_v0, 16 }
  0x58   :  { %1511 = vrot.lane.b32.xlu0 %v1044_v62, %s5383_s28  ;;  %v407_v40 = vor.u32 %v405_v17, %v404_v33  ;;  %v876_v54 = vor.u32 %v875_v47, %v402_v25  ;;  %v700_v27 = vshll.u32 %v5850_v2, 16 }
  0x59   :  { %1225 = vrot.lane.b32.xlu1 %v5755_v61, %s5380_s17  ;;  %v1046_v22 = vsel %vm5487_vm5, %v1004_v10, 0 }
  0x5a   :  { %v499_v45 = vsel %vm5466_vm2, 0, %v407_v40  ;;  %v918_v62 = vsel %vm5487_vm5, %v876_v54, 0  ;;  %v85_v40 = vld [vmem:[%s8150_s0 + $0x1d0] sm:$0xff] }
  0x5c   :  { %1081 = vrot.lane.b32.xlu0 %v498_v7, %s5382_s27 }
  0x5d   :  { %1273 = vrot.lane.b32.xlu1 %v172_v38, %s5381_s22  ;;  %v1045_v38 = vsel %vm5487_vm5, %v1002_v31, 0  ;;  %v5884_v31 = vpack.c.bf16 %v88_v20, %v87_v6  ;;  %v84_v6 = vld [vmem:[%s8150_s0 + $0x1c8] sm:$0xff] }
  0x5f   :  { %v563_v58 = vshll.u32 %v5884_v31, 16 }
  0x60   :  { %1177 = vrot.lane.b32.xlu0 %v786_v15, %s5383_s28 }
  0x61   :  { %1321 = vrot.lane.b32.xlu1 %v5704_v29, %s5385_s13  ;;  %v68_v29 = vld [vmem:[%s8150_s0 + $0x148] sm:$0xff] }
  0x62   :  { %v5809_v37 = vpack.c.bf16 %v68_v29, %v67_v32  ;;  %v350_v32 = vsel %vm5466_vm2, 0, %v225_v19  ;;  %v83_v19 = vld [vmem:[%s8150_s0 + $0x1c0] sm:$0xff] }
  0x64   :  { %1417 = vrot.lane.b32.xlu0 %v917_v21, %s5382_s27  ;;  %v5876_v21 = vpack.c.bf16 %v76_v14, %v75_v13  ;;  %v232_v14 = vor.u32 %v230_v63, %v229_v59  ;;  %v943_v59 = vrot.slane %v563_v58, 1 }
  0x65   :  { %1369 = vrot.lane.b32.xlu1 %v174_v50, %s5386_s19  ;;  %v77_v50 = vld [vmem:[%s8150_s0 + $0x190] sm:$0xff] }
  0x66   :  { %v5832_v49 = vpack.c.bf16 %v78_v51, %v77_v50  ;;  %v941_v50 = vrot.slane %v556_v56, 1  ;;  %v89_v56 = vld [vmem:[%s8150_s0 + $0x1f0] sm:$0xff] }
  0x68   :  { %1465 = vrot.lane.b32.xlu0 %v981_v28, %s5384_s10  ;;  %v409_v1 = vshrl.u32 %v5832_v49, 16  ;;  %v412_v5 = vshll.u32 %v5832_v49, 16  ;;  %v942_v3 = vor.u32 %v941_v50, %v553_v48  ;;  %v849_v48 = vsel %vm5487_vm5, %v799_v55, 0 }
  0x69   :  { %1131 = vrot.lane.b32.xlu1 %v643_v34, %s5384_s10 }
  0x6a   :  { %v411_v15 = vrot.slane %v409_v1, 7  ;;  %v877_v30 = vrot.slane %v412_v5, 1 }
  0x6c   :  { %1513 = vrot.lane.b32.xlu0 %v1045_v38, %s5383_s28  ;;  %v414_v25 = vor.u32 %v412_v5, %v411_v15  ;;  %v560_v38 = vshrl.u32 %v5884_v31, 16  ;;  %v878_v52 = vor.u32 %v877_v30, %v409_v1  ;;  %v1005_v1 = vrot.slane %v700_v27, 1 }
  0x6d   :  { %1227 = vrot.lane.b32.xlu1 %v5809_v37, %s5380_s17 }
  0x6e   :  { %v500_v33 = vsel %vm5466_vm2, 0, %v414_v25  ;;  %v562_v57 = vrot.slane %v560_v38, 7  ;;  %v919_v8 = vsel %vm5487_vm5, %v878_v52, 0  ;;  %v944_v0 = vor.u32 %v943_v59, %v560_v38 }
  0x70   :  { %1083 = vrot.lane.b32.xlu0 %v499_v45, %s5382_s27  ;;  %v565_v10 = vor.u32 %v563_v58, %v562_v57  ;;  %v93_v57 = vld [vmem:[%s8150_s0 + $0x210] sm:$0xff] }
  0x71   :  { %1275 = vrot.lane.b32.xlu1 %v176_v12, %s5381_s22  ;;  %v697_v12 = vshrl.u32 %v5850_v2, 16  ;;  %v97_v58 = vld [vmem:[%s8150_s0 + $0x230] sm:$0xff] }
  0x73   :  { %v1006_v15 = vor.u32 %v1005_v1, %v697_v12 }
  0x74   :  { %1179 = vrot.lane.b32.xlu0 %v787_v53, %s5383_s28  ;;  %v5909_v53 = vpack.c.bf16 %v86_v41, %v85_v40 }
  0x75   :  { %1323 = vrot.lane.b32.xlu1 %v5760_v4, %s5385_s13  ;;  %v982_v4 = vsel %vm5487_vm5, %v940_v60, 0  ;;  %v1047_v30 = vsel %vm5487_vm5, %v1006_v15, 0 }
  0x76   :  { %v1218_v7 = vpop.permute.xlu1 %1217  ;;  %v419_v5 = vshll.u32 %v5909_v53, 16 }
  0x78   :  { %1419 = vrot.lane.b32.xlu0 %v918_v62, %s5382_s27 }
  0x79   :  { %1371 = vrot.lane.b32.xlu1 %v178_v26, %s5386_s19  ;;  %v699_v26 = vrot.slane %v697_v12, 7 }
  0x7a   :  { %v1266_v16 = vpop.permute.xlu1 %1265 }
  0x7b   :  { %v702_v17 = vor.u32 %v700_v27, %v699_v26  ;;  %v645_v26 = vsel %vm5466_vm2, 0, %v565_v10 }
  0x7c   :  { %1467 = vrot.lane.b32.xlu0 %v982_v4, %s5384_s10 }
  0x7d   :  { %1133 = vrot.lane.b32.xlu1 %v644_v18, %s5384_s10  ;;  %v788_v51 = vsel %vm5466_vm2, 0, %v702_v17  ;;  %v5973_v17 = vpack.c.bf16 %v84_v6, %v83_v19 }
  0x7e   :  { %v1074_v28 = vpop.permute.xlu0 %1073 }
  0x7f   :  { %v1170_v29 = vpop.permute.xlu1 %1169  ;;  %v1540_v34 = vsel %vm1537_vm6, %v350_v32, %v1074_v28  ;;  %v95_v28 = vld [vmem:[%s8150_s0 + $0x220] sm:$0xff]  ;;  %v96_v32 = vld [vmem:[%s8150_s0 + $0x228] sm:$0xff] }
  0x80   :  { %1515 = vrot.lane.b32.xlu0 %v1046_v22, %s5383_s28  ;;  %v5981_v41 = vpack.c.bf16 %v96_v32, %v95_v28  ;;  %v91_v28 = vld [vmem:[%s8150_s0 + $0x200] sm:$0xff]  ;;  %v92_v32 = vld [vmem:[%s8150_s0 + $0x208] sm:$0xff] }
  0x81   :  { %1229 = vrot.lane.b32.xlu1 %v5876_v21, %s5380_s17 }
  0x82   :  { %v1122_v35 = vpop.permute.xlu0 %1121  ;;  %v567_v55 = vshrl.u32 %v5981_v41, 16  ;;  %v570_v10 = vshll.u32 %v5981_v41, 16 }
  0x83   :  { %v1588_v42 = vsel %vm1586_vm7, %v1540_v34, %v1122_v35  ;;  %v1314_v45 = vpop.permute.xlu1 %1313 }
  0x84   :  { %v1621_v47 = vsel %vm1619_vm8, %v1588_v42, %v1170_v29  ;;  %1085 = vrot.lane.b32.xlu0 %v500_v33, %s5382_s27  ;;  %v351_v33 = vsel %vm5466_vm2, 0, %v232_v14 }
  0x85   :  { %1277 = vrot.lane.b32.xlu1 %v5832_v49, %s5381_s22  ;;  %v90_v49 = vld [vmem:[%s8150_s0 + $0x1f8] sm:$0xff]  ;;  %v1654_v60 = vsel %vm1652_vm9, %v1621_v47, %v1218_v7  ;;  %v416_v7 = vshrl.u32 %v5909_v53, 16 }
  0x86   :  { %v1410_v54 = vpop.permute.xlu0 %1409  ;;  %v5934_v9 = vpack.c.bf16 %v90_v49, %v89_v56  ;;  %v1687_v11 = vsel %vm8158_vm10, %v1654_v60, %v1266_v16  ;;  %v94_v56 = vld [vmem:[%s8150_s0 + $0x218] sm:$0xff] }
  0x87   :  { %v1362_v62 = vpop.permute.xlu1 %1361  ;;  %v1720_v16 = vsel %vm1718_vm11, %v1687_v11, %v1314_v45  ;;  %v1802_v18 = vsel %vm1537_vm6, %v849_v48, %v1410_v54  ;;  %v418_v20 = vrot.slane %v416_v7, 7  ;;  %v800_v54 = vrot.slane %v230_v63, 1 }
  0x88   :  { %1181 = vrot.lane.b32.xlu0 %v788_v51, %s5383_s28  ;;  %v704_v12 = vshrl.u32 %v5934_v9, 16  ;;  %v1753_v29 = vsel %vm1751_vm12, %v1720_v16, %v1362_v62  ;;  %v707_v36 = vshll.u32 %v5934_v9, 16  ;;  %v879_v51 = vrot.slane %v419_v5, 1 }
  0x89   :  { %1325 = vrot.lane.b32.xlu1 %v5814_v43, %s5385_s13  ;;  %v983_v43 = vsel %vm5487_vm5, %v942_v3, 0  ;;  %v421_v34 = vor.u32 %v419_v5, %v418_v20  ;;  %v234_v62 = vshrl.u32 %v5623_v44, 16  ;;  %v801_v11 = vor.u32 %v800_v54, %v227_v46 }
  0x8a   :  { %v1458_v4 = vpop.permute.xlu0 %1457  ;;  %v706_v35 = vrot.slane %v704_v12, 7  ;;  %v880_v1 = vor.u32 %v879_v51, %v416_v7  ;;  %v1007_v14 = vrot.slane %v707_v36, 1 }
  0x8b   :  { %v1124_v13 = vpop.permute.xlu1 %1123  ;;  %v1849_v22 = vsel %vm1586_vm7, %v1802_v18, %v1458_v4  ;;  %v501_v47 = vsel %vm5466_vm2, 0, %v421_v34  ;;  %v569_v4 = vrot.slane %v567_v55, 7  ;;  %v236_v46 = vrot.slane %v234_v62, 7 }
  0x8c   :  { %1421 = vrot.lane.b32.xlu0 %v919_v8, %s5382_s27  ;;  %v709_v50 = vor.u32 %v707_v36, %v706_v35  ;;  %v6006_v8 = vpack.c.bf16 %v94_v56, %v93_v57  ;;  %v920_v15 = vsel %vm5487_vm5, %v880_v1, 0  ;;  %v850_v38 = vsel %vm5487_vm5, %v801_v11, 0  ;;  %v103_v36 = vld [vmem:[%s8150_s0 + $0x260] sm:$0xff] }
  0x8d   :  { %1373 = vrot.lane.b32.xlu1 %v5850_v2, %s5386_s19  ;;  %v572_v6 = vor.u32 %v570_v10, %v569_v4  ;;  %v101_v4 = vld [vmem:[%s8150_s0 + $0x250] sm:$0xff] }
  0x8e   :  { %v1506_v25 = vpop.permute.xlu0 %1505  ;;  %v789_v63 = vsel %vm5466_vm2, 0, %v709_v50  ;;  %v423_v5 = vshrl.u32 %v6006_v8, 16 }
  0x8f   :  { %v1220_v27 = vpop.permute.xlu1 %1219  ;;  %v1881_v2 = vsel %vm1619_vm8, %v1849_v22, %v1506_v25  ;;  %v1008_v25 = vor.u32 %v1007_v14, %v704_v12  ;;  %v646_v34 = vsel %vm5466_vm2, 0, %v572_v6 }
  0x90   :  { %1469 = vrot.lane.b32.xlu0 %v983_v43, %s5384_s10  ;;  %4908 = vmatprep.mubr.msk.bf16.mxu0 %vm1652_vm9, %v1881_v2  ;;  %v237_v43 = vshll.u32 %v5623_v44, 16 }
  0x91   :  { %1135 = vrot.lane.b32.xlu1 %v645_v26, %s5384_s10  ;;  %2080 = vmatmul.mubr.bf16.vlgmr.msra.gmra.mrb[0].mxu0 %v1753_v29  ;;  %v426_v26 = vshll.u32 %v6006_v8, 16  ;;  %v425_v29 = vrot.slane %v423_v5, 7  ;;  %v1048_v50 = vsel %vm5487_vm5, %v1008_v25, 0 }
  0x92   :  { %v1076_v40 = vpop.permute.xlu0 %1075  ;;  %v239_v22 = vor.u32 %v237_v43, %v236_v46  ;;  %v802_v11 = vrot.slane %v237_v43, 1  ;;  %v945_v46 = vrot.slane %v570_v10, 1  ;;  %v105_v10 = vld [vmem:[%s8150_s0 + $0x270] sm:$0xff] }
  0x93   :  { %v1268_v42 = vpop.permute.xlu1 %1267  ;;  %v1543_v45 = vsel %vm1537_vm6, %v351_v33, %v1076_v40  ;;  %v104_v40 = vld [vmem:[%s8150_s0 + $0x268] sm:$0xff]  ;;  %v428_v51 = vor.u32 %v426_v26, %v425_v29 }
  0x94   :  { %1517 = vrot.lane.b32.xlu0 %v1047_v30, %s5383_s28  ;;  %v1590_v49 = vsel %vm1586_vm7, %v1543_v45, %v1124_v13  ;;  %v352_v45 = vsel %vm5466_vm2, 0, %v239_v22  ;;  %v6078_v56 = vpack.c.bf16 %v104_v40, %v103_v36  ;;  %v946_v44 = vor.u32 %v945_v46, %v567_v55  ;;  %v99_v36 = vld [vmem:[%s8150_s0 + $0x240] sm:$0xff]  ;;  %v100_v40 = vld [vmem:[%s8150_s0 + $0x248] sm:$0xff] }
  0x95   :  { %1231 = vrot.lane.b32.xlu1 %v5973_v17, %s5380_s17 }
  0x96   :  { %v1172_v52 = vpop.permute.xlu0 %1171  ;;  %v577_v6 = vshll.u32 %v6078_v56, 16 }
  0x97   :  { %v1316_v60 = vpop.permute.xlu1 %1315  ;;  %v1623_v3 = vsel %vm1619_vm8, %v1590_v49, %v1172_v52 }
  0x98   :  { %1087 = vrot.lane.b32.xlu0 %v501_v47, %s5382_s27  ;;  %v1656_v7 = vsel %vm1652_vm9, %v1623_v3, %v1220_v27  ;;  %v6070_v47 = vpack.c.bf16 %v92_v32, %v91_v28  ;;  %v502_v3 = vsel %vm5466_vm2, 0, %v428_v51 }
  0x99   :  { %1279 = vrot.lane.b32.xlu1 %v5909_v53, %s5381_s22  ;;  %v98_v53 = vld [vmem:[%s8150_s0 + $0x238] sm:$0xff]  ;;  %v1689_v18 = vsel %vm8158_vm10, %v1656_v7, %v1268_v42 }
  0x9a   :  { %v1412_v48 = vpop.permute.xlu0 %1411  ;;  %v6031_v16 = vpack.c.bf16 %v98_v53, %v97_v58  ;;  %v1722_v27 = vsel %vm1718_vm11, %v1689_v18, %v1316_v60  ;;  %v102_v58 = vld [vmem:[%s8150_s0 + $0x258] sm:$0xff]  ;;  %v803_v18 = vor.u32 %v802_v11, %v234_v62 }
  0x9b   :  { %v1364_v13 = vpop.permute.xlu1 %1363  ;;  %v1805_v2 = vsel %vm1537_vm6, %v850_v38, %v1412_v48  ;;  %v574_v48 = vshrl.u32 %v6078_v56, 16 }
  0x9c   :  { %1183 = vrot.lane.b32.xlu0 %v789_v63, %s5383_s28  ;;  %v711_v12 = vshrl.u32 %v6031_v16, 16  ;;  %v1756_v42 = vsel %vm1751_vm12, %v1722_v27, %v1364_v13  ;;  %v714_v54 = vshll.u32 %v6031_v16, 16  ;;  %v881_v63 = vrot.slane %v426_v26, 1 }
  0x9d   :  { %1327 = vrot.lane.b32.xlu1 %v5884_v31, %s5385_s13  ;;  %v984_v31 = vsel %vm5487_vm5, %v944_v0, 0  ;;  %v241_v13 = vshrl.u32 %v5699_v24, 16  ;;  %v851_v55 = vsel %vm5487_vm5, %v803_v18, 0 }
  0x9e   :  { %v1460_v19 = vpop.permute.xlu0 %1459  ;;  %v713_v52 = vrot.slane %v711_v12, 7  ;;  %v882_v14 = vor.u32 %v881_v63, %v423_v5  ;;  %v1009_v22 = vrot.slane %v714_v54, 1 }
  0x9f   :  { %v1126_v20 = vpop.permute.xlu1 %1125  ;;  %v1851_v33 = vsel %vm1586_vm7, %v1805_v2, %v1460_v19  ;;  %v576_v19 = vrot.slane %v574_v48, 7  ;;  %v243_v62 = vrot.slane %v241_v13, 7 }
  0xa0   :  { %1423 = vrot.lane.b32.xlu0 %v920_v15, %s5382_s27  ;;  %v716_v59 = vor.u32 %v714_v54, %v713_v52  ;;  %v6103_v15 = vpack.c.bf16 %v102_v58, %v101_v4  ;;  %v921_v25 = vsel %vm5487_vm5, %v882_v14, 0  ;;  %v111_v54 = vld [vmem:[%s8150_s0 + $0x2a0] sm:$0xff] }
  0xa1   :  { %1375 = vrot.lane.b32.xlu1 %v5934_v9, %s5386_s19  ;;  %v579_v32 = vor.u32 %v577_v6, %v576_v19  ;;  %v109_v19 = vld [vmem:[%s8150_s0 + $0x290] sm:$0xff] }
  0xa2   :  { %v1508_v30 = vpop.permute.xlu0 %1507  ;;  %v790_v43 = vsel %vm5466_vm2, 0, %v716_v59  ;;  %v430_v26 = vshrl.u32 %v6103_v15, 16 }
  0xa3   :  { %v1883_v35 = vsel %vm1619_vm8, %v1851_v33, %v1508_v30  ;;  %v1222_v9 = vpop.permute.xlu1 %1221  ;;  %v1010_v30 = vor.u32 %v1009_v22, %v711_v12  ;;  %v647_v51 = vsel %vm5466_vm2, 0, %v579_v32 }
  0xa4   :  { %1471 = vrot.lane.b32.xlu0 %v984_v31, %s5384_s10  ;;  %4909 = vmatprep.mubr.msk.bf16.mxu0 %vm1652_vm9, %v1883_v35  ;;  %v244_v31 = vshll.u32 %v5699_v24, 16 }
  0xa5   :  { %1137 = vrot.lane.b32.xlu1 %v646_v34, %s5384_s10  ;;  %2088 = vmatmul.mubr.bf16.gmra.mrb[4].mxu0 %v1756_v42  ;;  %v433_v34 = vshll.u32 %v6103_v15, 16  ;;  %v432_v42 = vrot.slane %v430_v26, 7  ;;  %v1049_v59 = vsel %vm5487_vm5, %v1010_v30, 0 }
  0xa6   :  { %v1078_v57 = vpop.permute.xlu0 %1077  ;;  %v246_v33 = vor.u32 %v244_v31, %v243_v62  ;;  %v804_v18 = vrot.slane %v244_v31, 1  ;;  %v947_v62 = vrot.slane %v577_v6, 1  ;;  %v113_v6 = vld [vmem:[%s8150_s0 + $0x2b0] sm:$0xff] }
  0xa7   :  { %v1270_v49 = vpop.permute.xlu1 %1269  ;;  %v1546_v60 = vsel %vm1537_vm6, %v352_v45, %v1078_v57  ;;  %v112_v57 = vld [vmem:[%s8150_s0 + $0x2a8] sm:$0xff]  ;;  %v435_v63 = vor.u32 %v433_v34, %v432_v42 }
  0xa8   :  { %1519 = vrot.lane.b32.xlu0 %v1048_v50, %s5383_s28  ;;  %v1592_v53 = vsel %vm1586_vm7, %v1546_v60, %v1126_v20  ;;  %v353_v60 = vsel %vm5466_vm2, 0, %v246_v33  ;;  %v6175_v58 = vpack.c.bf16 %v112_v57, %v111_v54  ;;  %v948_v24 = vor.u32 %v947_v62, %v574_v48  ;;  %v107_v54 = vld [vmem:[%s8150_s0 + $0x280] sm:$0xff]  ;;  %v108_v57 = vld [vmem:[%s8150_s0 + $0x288] sm:$0xff] }
  0xa9   :  { %1233 = vrot.lane.b32.xlu1 %v6070_v47, %s5380_s17 }
  0xaa   :  { %v1174_v1 = vpop.permute.xlu0 %1173  ;;  %v584_v32 = vshll.u32 %v6175_v58, 16 }
  0xab   :  { %v1318_v7 = vpop.permute.xlu1 %1317  ;;  %v1625_v0 = vsel %vm1619_vm8, %v1592_v53, %v1174_v1 }
  0xac   :  { %1089 = vrot.lane.b32.xlu0 %v502_v3, %s5382_s27  ;;  %v1658_v5 = vsel %vm1652_vm9, %v1625_v0, %v1222_v9  ;;  %v6167_v3 = vpack.c.bf16 %v100_v40, %v99_v36  ;;  %v503_v0 = vsel %vm5466_vm2, 0, %v435_v63 }
  0xad   :  { %1281 = vrot.lane.b32.xlu1 %v6006_v8, %s5381_s22  ;;  %v106_v8 = vld [vmem:[%s8150_s0 + $0x278] sm:$0xff]  ;;  %v1691_v2 = vsel %vm8158_vm10, %v1658_v5, %v1270_v49 }
  0xae   :  { %v1414_v38 = vpop.permute.xlu0 %1413  ;;  %v6128_v27 = vpack.c.bf16 %v106_v8, %v105_v10  ;;  %v1724_v35 = vsel %vm1718_vm11, %v1691_v2, %v1318_v7  ;;  %v110_v10 = vld [vmem:[%s8150_s0 + $0x298] sm:$0xff]  ;;  %v805_v2 = vor.u32 %v804_v18, %v241_v13 }
  0xaf   :  { %v1366_v20 = vpop.permute.xlu1 %1365  ;;  %v1808_v9 = vsel %vm1537_vm6, %v851_v55, %v1414_v38  ;;  %v581_v38 = vshrl.u32 %v6175_v58, 16 }
  0xb0   :  { %1185 = vrot.lane.b32.xlu0 %v790_v43, %s5383_s28  ;;  %v718_v12 = vshrl.u32 %v6128_v27, 16  ;;  %v1759_v49 = vsel %vm1751_vm12, %v1724_v35, %v1366_v20  ;;  %v721_v11 = vshll.u32 %v6128_v27, 16  ;;  %v883_v43 = vrot.slane %v433_v34, 1 }
  0xb1   :  { %1329 = vrot.lane.b32.xlu1 %v5981_v41, %s5385_s13  ;;  %v985_v41 = vsel %vm5487_vm5, %v946_v44, 0  ;;  %v248_v20 = vshrl.u32 %v5755_v61, 16  ;;  %v852_v48 = vsel %vm5487_vm5, %v805_v2, 0 }
  0xb2   :  { %v1462_v28 = vpop.permute.xlu0 %1461  ;;  %v720_v1 = vrot.slane %v718_v12, 7  ;;  %v884_v22 = vor.u32 %v883_v43, %v430_v26  ;;  %v1011_v33 = vrot.slane %v721_v11, 1 }
  0xb3   :  { %v1128_v29 = vpop.permute.xlu1 %1127  ;;  %v1853_v45 = vsel %vm1586_vm7, %v1808_v9, %v1462_v28  ;;  %v583_v28 = vrot.slane %v581_v38, 7  ;;  %v250_v13 = vrot.slane %v248_v20, 7 }
  0xb4   :  { %1425 = vrot.lane.b32.xlu0 %v921_v25, %s5382_s27  ;;  %v723_v46 = vor.u32 %v721_v11, %v720_v1  ;;  %v6200_v25 = vpack.c.bf16 %v110_v10, %v109_v19  ;;  %v922_v30 = vsel %vm5487_vm5, %v884_v22, 0  ;;  %v119_v11 = vld [vmem:[%s8150_s0 + $0x2e0] sm:$0xff] }
  0xb5   :  { %1377 = vrot.lane.b32.xlu1 %v6031_v16, %s5386_s19  ;;  %v586_v40 = vor.u32 %v584_v32, %v583_v28  ;;  %v117_v28 = vld [vmem:[%s8150_s0 + $0x2d0] sm:$0xff] }
  0xb6   :  { %v1510_v50 = vpop.permute.xlu0 %1509  ;;  %v791_v31 = vsel %vm5466_vm2, 0, %v723_v46  ;;  %v437_v34 = vshrl.u32 %v6200_v25, 16 }
  0xb7   :  { %v1885_v52 = vsel %vm1619_vm8, %v1853_v45, %v1510_v50  ;;  %v1224_v16 = vpop.permute.xlu1 %1223  ;;  %v1012_v50 = vor.u32 %v1011_v33, %v718_v12  ;;  %v648_v63 = vsel %vm5466_vm2, 0, %v586_v40 }
  0xb8   :  { %1473 = vrot.lane.b32.xlu0 %v985_v41, %s5384_s10  ;;  %4910 = vmatprep.mubr.msk.bf16.mxu0 %vm1652_vm9, %v1885_v52  ;;  %v251_v41 = vshll.u32 %v5755_v61, 16 }
  0xb9   :  { %1139 = vrot.lane.b32.xlu1 %v647_v51, %s5384_s10  ;;  %2096 = vmatmul.mubr.bf16.gmra.mrb[8].mxu0 %v1759_v49  ;;  %v440_v51 = vshll.u32 %v6200_v25, 16  ;;  %v439_v49 = vrot.slane %v437_v34, 7  ;;  %v1050_v46 = vsel %vm5487_vm5, %v1012_v50, 0 }
  0xba   :  { %v1080_v4 = vpop.permute.xlu0 %1079  ;;  %v253_v45 = vor.u32 %v251_v41, %v250_v13  ;;  %v806_v2 = vrot.slane %v251_v41, 1  ;;  %v949_v13 = vrot.slane %v584_v32, 1  ;;  %v121_v32 = vld [vmem:[%s8150_s0 + $0x2f0] sm:$0xff] }
  0xbb   :  { %v1272_v53 = vpop.permute.xlu1 %1271  ;;  %v1549_v7 = vsel %vm1537_vm6, %v353_v60, %v1080_v4  ;;  %v120_v4 = vld [vmem:[%s8150_s0 + $0x2e8] sm:$0xff]  ;;  %v442_v43 = vor.u32 %v440_v51, %v439_v49 }
  0xbc   :  { %1521 = vrot.lane.b32.xlu0 %v1049_v59, %s5383_s28  ;;  %v1594_v8 = vsel %vm1586_vm7, %v1549_v7, %v1128_v29  ;;  %v354_v7 = vsel %vm5466_vm2, 0, %v253_v45  ;;  %v6272_v10 = vpack.c.bf16 %v120_v4, %v119_v11  ;;  %v950_v61 = vor.u32 %v949_v13, %v581_v38 }
  0xbd   :  { %1235 = vrot.lane.b32.xlu1 %v6167_v3, %s5380_s17 }
  0xbe   :  { %v1176_v14 = vpop.permute.xlu0 %1175  ;;  %v591_v40 = vshll.u32 %v6272_v10, 16 }
  0xbf   :  { %v1320_v5 = vpop.permute.xlu1 %1319  ;;  %v1627_v44 = vsel %vm1619_vm8, %v1594_v8, %v1176_v14 }
  0xc0   :  { %1091 = vrot.lane.b32.xlu0 %v503_v0, %s5382_s27  ;;  %v1660_v26 = vsel %vm1652_vm9, %v1627_v44, %v1224_v16  ;;  %v6264_v0 = vpack.c.bf16 %v108_v57, %v107_v54  ;;  %v504_v44 = vsel %vm5466_vm2, 0, %v442_v43 }
  0xc1   :  { %1283 = vrot.lane.b32.xlu1 %v6103_v15, %s5381_s22  ;;  %v114_v15 = vld [vmem:[%s8150_s0 + $0x2b8] sm:$0xff]  ;;  %v1693_v9 = vsel %vm8158_vm10, %v1660_v26, %v1272_v53 }
  0xc2   :  { %v1416_v55 = vpop.permute.xlu0 %1415  ;;  %v6225_v35 = vpack.c.bf16 %v114_v15, %v113_v6  ;;  %v1726_v52 = vsel %vm1718_vm11, %v1693_v9, %v1320_v5  ;;  %v118_v6 = vld [vmem:[%s8150_s0 + $0x2d8] sm:$0xff]  ;;  %v807_v9 = vor.u32 %v806_v2, %v248_v20 }
  0xc3   :  { %v1368_v29 = vpop.permute.xlu1 %1367  ;;  %v1811_v16 = vsel %vm1537_vm6, %v852_v48, %v1416_v55  ;;  %v588_v55 = vshrl.u32 %v6272_v10, 16 }
  0xc4   :  { %1187 = vrot.lane.b32.xlu0 %v791_v31, %s5383_s28  ;;  %v725_v12 = vshrl.u32 %v6225_v35, 16  ;;  %v1762_v53 = vsel %vm1751_vm12, %v1726_v52, %v1368_v29  ;;  %v728_v18 = vshll.u32 %v6225_v35, 16  ;;  %v885_v31 = vrot.slane %v440_v51, 1 }
  0xc5   :  { %1331 = vrot.lane.b32.xlu1 %v6078_v56, %s5385_s13  ;;  %v986_v56 = vsel %vm5487_vm5, %v948_v24, 0  ;;  %v255_v29 = vshrl.u32 %v5809_v37, 16  ;;  %v853_v38 = vsel %vm5487_vm5, %v807_v9, 0 }
  0xc6   :  { %v1464_v36 = vpop.permute.xlu0 %1463  ;;  %v727_v14 = vrot.slane %v725_v12, 7  ;;  %v886_v33 = vor.u32 %v885_v31, %v437_v34  ;;  %v1013_v45 = vrot.slane %v728_v18, 1 }
  0xc7   :  { %v1130_v42 = vpop.permute.xlu1 %1129  ;;  %v1855_v60 = vsel %vm1586_vm7, %v1811_v16, %v1464_v36  ;;  %v590_v36 = vrot.slane %v588_v55, 7  ;;  %v257_v20 = vrot.slane %v255_v29, 7 }
  0xc8   :  { %1427 = vrot.lane.b32.xlu0 %v922_v30, %s5382_s27  ;;  %v730_v62 = vor.u32 %v728_v18, %v727_v14  ;;  %v6297_v30 = vpack.c.bf16 %v118_v6, %v117_v28  ;;  %v923_v50 = vsel %vm5487_vm5, %v886_v33, 0  ;;  %v262_v33 = vshrl.u32 %v5876_v21, 16 }
  0xc9   :  { %1379 = vrot.lane.b32.xlu1 %v6128_v27, %s5386_s19  ;;  %v593_v57 = vor.u32 %v591_v40, %v590_v36 }
  0xca   :  { %v1512_v59 = vpop.permute.xlu0 %1511  ;;  %v792_v41 = vsel %vm5466_vm2, 0, %v730_v62  ;;  %v444_v51 = vshrl.u32 %v6297_v30, 16 }
  0xcb   :  { %v1887_v1 = vsel %vm1619_vm8, %v1855_v60, %v1512_v59  ;;  %v1226_v27 = vpop.permute.xlu1 %1225  ;;  %v1014_v59 = vor.u32 %v1013_v45, %v725_v12  ;;  %v115_v12 = vld [vmem:[%s8150_s0 + $0x2c0] sm:$0xff]  ;;  %v649_v18 = vsel %vm5466_vm2, 0, %v593_v57  ;;  %v951_v45 = vrot.slane %v591_v40, 1 }
  0xcc   :  { %1475 = vrot.lane.b32.xlu0 %v986_v56, %s5384_s10  ;;  %4911 = vmatprep.mubr.msk.bf16.mxu0 %vm1652_vm9, %v1887_v1  ;;  %v258_v56 = vshll.u32 %v5809_v37, 16  ;;  %v127_v1 = vld [vmem:[%s8150_s0 + $0x320] sm:$0xff]  ;;  %v264_v40 = vrot.slane %v262_v33, 7  ;;  %v265_v57 = vshll.u32 %v5876_v21, 16 }
  0xcd   :  { %1141 = vrot.lane.b32.xlu1 %v648_v63, %s5384_s10  ;;  %2104 = vmatmul.mubr.bf16.gmra.mrb[12].mxu0 %v1762_v53  ;;  %v447_v63 = vshll.u32 %v6297_v30, 16  ;;  %v116_v53 = vld [vmem:[%s8150_s0 + $0x2c8] sm:$0xff] }
  0xce   :  { %v1082_v19 = vpop.permute.xlu0 %1081  ;;  %v260_v60 = vor.u32 %v258_v56, %v257_v20  ;;  %v6373_v2 = vpack.c.bf16 %v116_v53, %v115_v12  ;;  %v952_v53 = vor.u32 %v951_v45, %v588_v55  ;;  %v5291_v45 = vld [vmem:[%s8152_s3] sm:$0xff]  }
  0xcf   :  { %v1274_v8 = vpop.permute.xlu1 %1273  ;;  %v1552_v5 = vsel %vm1537_vm6, %v354_v7, %v1082_v19  ;;  %v446_v7 = vrot.slane %v444_v51, 7  ;;  %v126_v19 = vld [vmem:[%s8150_s0 + $0x318] sm:$0xff] }
  0xd0   :  { %1523 = vrot.lane.b32.xlu0 %v1050_v46, %s5383_s28  ;;  %v1596_v15 = vsel %vm1586_vm7, %v1552_v5, %v1130_v42  ;;  %v355_v31 = vsel %vm5466_vm2, 0, %v260_v60 }
  0xd1   :  { %1237 = vrot.lane.b32.xlu1 %v6264_v0, %s5380_s17  ;;  %v449_v28 = vor.u32 %v447_v63, %v446_v7 }
  0xd2   :  { %v1178_v22 = vpop.permute.xlu0 %1177 }
  0xd3   :  { %v1322_v26 = vpop.permute.xlu1 %1321  ;;  %v1629_v24 = vsel %vm1619_vm8, %v1596_v15, %v1178_v22  ;;  %v1051_v22 = vsel %vm5487_vm5, %v1014_v59, 0 }
  0xd4   :  { %1093 = vrot.lane.b32.xlu0 %v504_v44, %s5382_s27  ;;  %v1662_v34 = vsel %vm1652_vm9, %v1629_v24, %v1226_v27  ;;  %v128_v27 = vld [vmem:[%s8150_s0 + $0x328] sm:$0xff] }
  0xd5   :  { %1285 = vrot.lane.b32.xlu1 %v6200_v25, %s5381_s22  ;;  %v122_v25 = vld [vmem:[%s8150_s0 + $0x2f8] sm:$0xff]  ;;  %v1695_v16 = vsel %vm8158_vm10, %v1662_v34, %v1274_v8  ;;  %v6364_v44 = vpack.c.bf16 %v128_v27, %v127_v1 }
  0xd6   :  { %v1418_v48 = vpop.permute.xlu0 %1417  ;;  %v6322_v52 = vpack.c.bf16 %v122_v25, %v121_v32  ;;  %v1728_v11 = vsel %vm1718_vm11, %v1695_v16, %v1322_v26  ;;  %v887_v32 = vrot.slane %v447_v63, 1 }
  0xd7   :  { %v1370_v42 = vpop.permute.xlu1 %1369  ;;  %v1814_v4 = vsel %vm1537_vm6, %v853_v38, %v1418_v48  ;;  %v505_v48 = vsel %vm5466_vm2, 0, %v449_v28  ;;  %v598_v16 = vshll.u32 %v6364_v44, 16  ;;  %v129_v38 = vld [vmem:[%s8150_s0 + $0x330] sm:$0xff] }
  0xd8   :  { %1189 = vrot.lane.b32.xlu0 %v792_v41, %s5383_s28  ;;  %v732_v46 = vshrl.u32 %v6322_v52, 16  ;;  %v1765_v62 = vsel %vm1751_vm12, %v1728_v11, %v1370_v42  ;;  %v735_v15 = vshll.u32 %v6322_v52, 16  ;;  %v595_v41 = vshrl.u32 %v6364_v44, 16 }
  0xd9   :  { %1333 = vrot.lane.b32.xlu1 %v6175_v58, %s5385_s13  ;;  %v987_v58 = vsel %vm5487_vm5, %v950_v61, 0  ;;  %v808_v42 = vrot.slane %v258_v56, 1  ;;  %v888_v60 = vor.u32 %v887_v32, %v444_v51  ;;  %v267_v51 = vor.u32 %v265_v57, %v264_v40  ;;  %v5290_v32 = vld [vmem:[%s8152_s3 + $0x40] sm:$0xff]  }
  0xda   :  { %v1466_v54 = vpop.permute.xlu0 %1465  ;;  %v734_v6 = vrot.slane %v732_v46, 7  ;;  %5070 = vmatprep.subr.bf16.mxu1 %v5290_v32 }
  0xdb   :  { %v1132_v49 = vpop.permute.xlu1 %1131  ;;  %v1857_v43 = vsel %vm1586_vm7, %v1814_v4, %v1466_v54  ;;  %v130_v54 = vld [vmem:[%s8150_s0 + $0x338] sm:$0xff]  ;;  %v809_v1 = vor.u32 %v808_v42, %v255_v29  ;;  %v924_v37 = vsel %vm5487_vm5, %v888_v60, 0  ;;  %5071 = vmatpush3.bf16.msra.mxu1 %v5291_v45  ;;  %v132_v45 = vld [vmem:[%s8150_s0 + $0x348] sm:$0xff] }
  0xdc   :  { %1429 = vrot.lane.b32.xlu0 %v923_v50, %s5382_s27  ;;  %v737_v36 = vor.u32 %v735_v15, %v734_v6  ;;  %v597_v50 = vrot.slane %v595_v41, 7  ;;  %v6416_v11 = vpack.c.bf16 %v130_v54, %v129_v38  ;;  %v133_v54 = vld [vmem:[%s8150_s0 + $0x350] sm:$0xff] }
  0xdd   :  { %1381 = vrot.lane.b32.xlu1 %v6225_v35, %s5386_s19  ;;  %v125_v35 = vld [vmem:[%s8150_s0 + $0x310] sm:$0xff]  ;;  %v854_v55 = vsel %vm5487_vm5, %v809_v1, 0  ;;  %v5293_v1 = vld [vmem:[%s8152_s3 + $0x8] sm:$0xff]  }
  0xde   :  { %v1514_v14 = vpop.permute.xlu0 %1513  ;;  %v6377_v26 = vpack.c.bf16 %v126_v19, %v125_v35  ;;  %v269_v35 = vshrl.u32 %v5973_v17, 16 }
  0xdf   :  { %v1889_v8 = vsel %vm1619_vm8, %v1857_v43, %v1514_v14  ;;  %v1228_v5 = vpop.permute.xlu1 %1227 }
  0xe0   :  { %1477 = vrot.lane.b32.xlu0 %v987_v58, %s5384_s10  ;;  %4912 = vmatprep.mubr.msk.bf16.mxu0 %vm1652_vm9, %v1889_v8  ;;  %v451_v25 = vshrl.u32 %v6377_v26, 16  ;;  %v793_v58 = vsel %vm5466_vm2, 0, %v737_v36  ;;  %v454_v63 = vshll.u32 %v6377_v26, 16  ;;  %v356_v8 = vsel %vm5466_vm2, 0, %v267_v51 }
  0xe1   :  { %1143 = vrot.lane.b32.xlu1 %v649_v18, %s5384_s10  ;;  %2112 = vmatmul.mubr.bf16.gmra.mrb[16].mxu0 %v1765_v62  ;;  %v739_v18 = vshrl.u32 %v6416_v11, 16  ;;  %v810_v62 = vrot.slane %v265_v57, 1 }
  0xe2   :  { %v1084_v24 = vpop.permute.xlu0 %1083  ;;  %v453_v59 = vrot.slane %v451_v25, 7 }
  0xe3   :  { %v1276_v13 = vpop.permute.xlu1 %1275  ;;  %v1555_v9 = vsel %vm1537_vm6, %v355_v31, %v1084_v24  ;;  %v135_v31 = vld [vmem:[%s8150_s0 + $0x360] sm:$0xff]  ;;  %v124_v24 = vld [vmem:[%s8150_s0 + $0x308] sm:$0xff]  ;;  %v6490_v57 = vor.u32 %v810_v62, %v262_v33 }
  0xe4   :  { %1525 = vrot.lane.b32.xlu0 %v1051_v22, %s5383_s28  ;;  %v1598_v61 = vsel %vm1586_vm7, %v1555_v9, %v1132_v49  ;;  %v1015_v49 = vrot.slane %v735_v15, 1  ;;  %v6428_v29 = vor.u32 %v454_v63, %v453_v59  ;;  %v136_v22 = vld [vmem:[%s8150_s0 + $0x368] sm:$0xff]  ;;  %v123_v15 = vld [vmem:[%s8150_s0 + $0x300] sm:$0xff]  ;;  %v742_v9 = vshll.u32 %v6416_v11, 16 }
  0xe5   :  { %1239 = vrot.lane.b32.xlu1 %v6373_v2, %s5380_s17  ;;  %v6480_v38 = vpack.c.bf16 %v124_v24, %v123_v15  ;;  %v5297_v15 = vld [vmem:[%s8152_s3 + $0x18] sm:$0xff]  }
  0xe6   :  { %v1180_v34 = vpop.permute.xlu0 %1179  ;;  %v1016_v7 = vor.u32 %v1015_v49, %v732_v46  ;;  %v988_v46 = vsel %vm5487_vm5, %v952_v53, 0  ;;  %v953_v49 = vrot.slane %v598_v16, 1  ;;  %v137_v53 = vld [vmem:[%s8150_s0 + $0x370] sm:$0xff] }
  0xe7   :  { %v1324_v20 = vpop.permute.xlu1 %1323  ;;  %v1631_v56 = vsel %vm1619_vm8, %v1598_v61, %v1180_v34  ;;  %v889_v61 = vrot.slane %v454_v63, 1 }
  0xe8   :  { %1095 = vrot.lane.b32.xlu0 %v505_v48, %s5382_s27  ;;  %v1664_v4 = vsel %vm1652_vm9, %v1631_v56, %v1228_v5  ;;  %v1052_v5 = vsel %vm5487_vm5, %v1016_v7, 0  ;;  %v134_v56 = vld [vmem:[%s8150_s0 + $0x358] sm:$0xff] }
  0xe9   :  { %1287 = vrot.lane.b32.xlu1 %v6297_v30, %s5381_s22  ;;  %v600_v30 = vor.u32 %v598_v16, %v597_v50  ;;  %v1697_v43 = vsel %vm8158_vm10, %v1664_v4, %v1276_v13  ;;  %v506_v13 = vsel %vm5466_vm2, 0, %v6428_v29  ;;  %v890_v33 = vor.u32 %v889_v61, %v451_v25  ;;  %v5294_v25 = vld [vmem:[%s8152_s3 + $0x50] sm:$0xff]   ;;  %v131_v61 = vld [vmem:[%s8150_s0 + $0x340] sm:$0xff] }
  0xea   :  { %v1420_v27 = vpop.permute.xlu0 %1419  ;;  %v1730_v28 = vsel %vm1718_vm11, %v1697_v43, %v1324_v20  ;;  %v6471_v20 = vpack.c.bf16 %v136_v22, %v135_v31  ;;  %v954_v4 = vor.u32 %v953_v49, %v595_v41  ;;  %v5295_v41 = vld [vmem:[%s8152_s3 + $0x10] sm:$0xff]   ;;  %v138_v43 = vld [vmem:[%s8150_s0 + $0x378] sm:$0xff]  ;;  %v1017_v22 = vrot.slane %v742_v9, 1  ;;  %v5300_v49 = vld [vmem:[%s8152_s3 + $0x68] sm:$0xff]  }
  0xeb   :  { %v1372_v12 = vpop.permute.xlu1 %1371  ;;  %v1817_v6 = vsel %vm1537_vm6, %v854_v55, %v1420_v27  ;;  %v855_v27 = vsel %vm5487_vm5, %v6490_v57, 0  ;;  %v925_v29 = vsel %vm5487_vm5, %v890_v33, 0 }
  0xec   :  { %1191 = vrot.lane.b32.xlu0 %v793_v58, %s5383_s28  ;;  %v1768_v50 = vsel %vm1751_vm12, %v1730_v28, %v1372_v12  ;;  %v5292_v58 = vld [vmem:[%s8152_s3 + $0x48] sm:$0xff]   ;;  %v602_v63 = vshrl.u32 %v6471_v20, 16  ;;  %v6512_v12 = vpack.c.bf16 %v134_v56, %v133_v54 }
  0xed   :  { %1335 = vrot.lane.b32.xlu1 %v6272_v10, %s5385_s13  ;;  %v650_v10 = vsel %vm5466_vm2, 0, %v600_v30  ;;  %5072 = vmatprep.subr.bf16.mxu1 %v5292_v58 }
  0xee   :  { %v1468_v14 = vpop.permute.xlu0 %1467  ;;  %5073 = vmatpush3.bf16.msra.mxu1 %v5293_v1  ;;  %v604_v55 = vrot.slane %v602_v63, 7  ;;  %v461_v28 = vshll.u32 %v6512_v12, 16 }
  0xef   :  { %v1134_v19 = vpop.permute.xlu1 %1133  ;;  %v1859_v48 = vsel %vm1586_vm7, %v1817_v6, %v1468_v14  ;;  %5074 = vmatprep.subr.bf16.mxu1 %v5294_v25  ;;  %v605_v14 = vshll.u32 %v6471_v20, 16  ;;  %v6549_v6 = vpack.c.bf16 %v138_v43, %v137_v53 }
  0xf0   :  { %1431 = vrot.lane.b32.xlu0 %v924_v37, %s5382_s27 }
  0xf1   :  { %1383 = vrot.lane.b32.xlu1 %v6322_v52, %s5386_s19  ;;  %v741_v52 = vrot.slane %v739_v18, 7  ;;  %v746_v32 = vshrl.u32 %v6549_v6, 16  ;;  %v749_v53 = vshll.u32 %v6549_v6, 16 }
  0xf2   :  { %v1516_v36 = vpop.permute.xlu0 %1515  ;;  %5075 = vmatpush3.bf16.msra.mxu1 %v5295_v41  ;;  %v5303_v41 = vld [vmem:[%s8152_s3 + $0x30] sm:$0xff]  }
  0xf3   :  { %v1891_v34 = vsel %vm1619_vm8, %v1859_v48, %v1516_v36  ;;  %v1230_v42 = vpop.permute.xlu1 %1229  ;;  %v744_v59 = vor.u32 %v742_v9, %v741_v52  ;;  %v607_v9 = vor.u32 %v605_v14, %v604_v55  ;;  %v5298_v36 = vld [vmem:[%s8152_s3 + $0x60] sm:$0xff]   ;;  %v891_v55 = vrot.slane %v461_v28, 1 }
  0xf4   :  { %1479 = vrot.lane.b32.xlu0 %v988_v46, %s5384_s10  ;;  %4913 = vmatprep.mubr.msk.bf16.mxu0 %vm1652_vm9, %v1891_v34  ;;  %v989_v46 = vsel %vm5487_vm5, %v954_v4, 0  ;;  %v748_v4 = vrot.slane %v746_v32, 7 }
  0xf5   :  { %1145 = vrot.lane.b32.xlu1 %v650_v10, %s5384_s10  ;;  %2120 = vmatmul.mubr.bf16.gmra.mrb[20].mxu0 %v1768_v50  ;;  %v794_v7 = vsel %vm5466_vm2, 0, %v744_v59  ;;  %v271_v10 = vrot.slane %v269_v35, 7  ;;  %v651_v57 = vsel %vm5466_vm2, 0, %v607_v9  ;;  %v5301_v59 = vld [vmem:[%s8152_s3 + $0x28] sm:$0xff]  }
  0xf6   :  { %v1086_v40 = vpop.permute.xlu0 %1085  ;;  %v751_v43 = vor.u32 %v749_v53, %v748_v4 }
  0xf7   :  { %v1278_v60 = vpop.permute.xlu1 %1277  ;;  %v1558_v21 = vsel %vm1537_vm6, %v356_v8, %v1086_v40  ;;  %v272_v8 = vshll.u32 %v5973_v17, 16 }
  0xf8   :  { %1527 = vrot.lane.b32.xlu0 %v1052_v5, %s5383_s28  ;;  %v1600_v30 = vsel %vm1586_vm7, %v1558_v21, %v1134_v19  ;;  %v458_v5 = vshrl.u32 %v6512_v12, 16  ;;  %v795_v9 = vsel %vm5466_vm2, 0, %v751_v43 }
  0xf9   :  { %1241 = vrot.lane.b32.xlu1 %v6480_v38, %s5380_s17  ;;  %v274_v34 = vor.u32 %v272_v8, %v271_v10 }
  0xfa   :  { %v1182_v16 = vpop.permute.xlu0 %1181  ;;  %v460_v48 = vrot.slane %v458_v5, 7 }
  0xfb   :  { %v1326_v51 = vpop.permute.xlu1 %1325  ;;  %v1633_v37 = vsel %vm1619_vm8, %v1600_v30, %v1182_v16  ;;  %v357_v21 = vsel %vm5466_vm2, 0, %v274_v34  ;;  %v6608_v16 = vpack.c.bf16 %v132_v45, %v131_v61  ;;  %v279_v45 = vshll.u32 %v6070_v47, 16 }
  0xfc   :  { %1097 = vrot.lane.b32.xlu0 %v506_v13, %s5382_s27  ;;  %v1666_v62 = vsel %vm1652_vm9, %v1633_v37, %v1230_v42  ;;  %v1018_v42 = vor.u32 %v1017_v22, %v739_v18  ;;  %v143_v18 = vld [vmem:[%s8150_s0 + $0x3a0] sm:$0xff] }
  0xfd   :  { %1289 = vrot.lane.b32.xlu1 %v6377_v26, %s5381_s22  ;;  %v5296_v26 = vld [vmem:[%s8152_s3 + $0x58] sm:$0xff]   ;;  %v1699_v24 = vsel %vm8158_vm10, %v1666_v62, %v1278_v60 }
  0xfe   :  { %v1422_v19 = vpop.permute.xlu0 %1421  ;;  %5076 = vmatprep.subr.bf16.mxu1 %v5296_v26  ;;  %v1732_v50 = vsel %vm1718_vm11, %v1699_v24, %v1326_v51  ;;  %v1053_v33 = vsel %vm5487_vm5, %v1018_v42, 0  ;;  %v5302_v51 = vld [vmem:[%s8152_s3 + $0x70] sm:$0xff]   ;;  %v812_v26 = vrot.slane %v272_v8, 1  ;;  %v5304_v8 = vld [vmem:[%s8152_s3 + $0x78] sm:$0xff]  }
  0xff   :  { %v1374_v31 = vpop.permute.xlu1 %1373  ;;  %5077 = vmatpush3.bf16.msra.mxu1 %v5297_v15  ;;  %v1820_v54 = vsel %vm1537_vm6, %v855_v27, %v1422_v19  ;;  %v463_v27 = vor.u32 %v461_v28, %v460_v48  ;;  %v141_v19 = vld [vmem:[%s8150_s0 + $0x390] sm:$0xff]  ;;  %v955_v28 = vrot.slane %v605_v14, 1  ;;  %v276_v15 = vshrl.u32 %v6070_v47, 16  ;;  %v5305_v48 = vld [vmem:[%s8152_s3 + $0x38] sm:$0xff]  }
 0x100   :  { %1193 = vrot.lane.b32.xlu0 %v794_v7, %s5383_s28  ;;  %5078 = vmatprep.subr.bf16.mxu1 %v5298_v36  ;;  %v1771_v1 = vsel %vm1751_vm12, %v1732_v50, %v1374_v31  ;;  %v892_v14 = vor.u32 %v891_v55, %v458_v5  ;;  %v813_v36 = vor.u32 %v812_v26, %v269_v35  ;;  %v145_v42 = vld [vmem:[%s8150_s0 + $0x3b0] sm:$0xff]  ;;  %v1019_v50 = vrot.slane %v749_v53, 1 }
 0x101   :  { %1337 = vrot.lane.b32.xlu1 %v6364_v44, %s5385_s13  ;;  %v5299_v44 = vld [vmem:[%s8152_s3 + $0x20] sm:$0xff]   ;;  %v956_v17 = vor.u32 %v955_v28, %v602_v63  ;;  %v278_v35 = vrot.slane %v276_v15, 7 }
 0x102   :  { %v1470_v13 = vpop.permute.xlu0 %1469 }
 0x103   :  { %v1136_v52 = vpop.permute.xlu1 %1135  ;;  %v1861_v56 = vsel %vm1586_vm7, %v1820_v54, %v1470_v13  ;;  %5079 = vmatpush3.bf16.msra.mxu1 %v5299_v44 }
 0x104   :  { %1433 = vrot.lane.b32.xlu0 %v925_v29, %s5382_s27  ;;  %5080 = vmatprep.subr.bf16.mxu1 %v5300_v49  ;;  %v507_v29 = vsel %vm5466_vm2, 0, %v463_v27 }
 0x105   :  { %1385 = vrot.lane.b32.xlu1 %v6416_v11, %s5386_s19  ;;  %v144_v11 = vld [vmem:[%s8150_s0 + $0x3a8] sm:$0xff] }
 0x106   :  { %v1518_v40 = vpop.permute.xlu0 %1517  ;;  %v6613_v30 = vpack.c.bf16 %v144_v11, %v143_v18  ;;  %v926_v18 = vsel %vm5487_vm5, %v892_v14, 0  ;;  %v1020_v11 = vor.u32 %v1019_v50, %v746_v32  ;;  %v139_v32 = vld [vmem:[%s8150_s0 + $0x380] sm:$0xff] }
 0x107   :  { %v1893_v58 = vsel %vm1619_vm8, %v1861_v56, %v1518_v40  ;;  %v1232_v60 = vpop.permute.xlu1 %1231  ;;  %5081 = vmatpush3.bf16.msra.mxu1 %v5301_v59  ;;  %v856_v40 = vsel %vm5487_vm5, %v813_v36, 0  ;;  %v150_v36 = vld [vmem:[%s8150_s0 + $0x3d8] sm:$0xff] }
 0x108   :  { %1481 = vrot.lane.b32.xlu0 %v989_v46, %s5384_s10  ;;  %4914 = vmatprep.mubr.msk.bf16.mxu0 %vm1652_vm9, %v1893_v58  ;;  %v142_v46 = vld [vmem:[%s8150_s0 + $0x398] sm:$0xff]  ;;  %v609_v62 = vshrl.u32 %v6613_v30, 16  ;;  %v612_v34 = vshll.u32 %v6613_v30, 16  ;;  %v1054_v55 = vsel %vm5487_vm5, %v1020_v11, 0 }
 0x109   :  { %1147 = vrot.lane.b32.xlu1 %v651_v57, %s5384_s10  ;;  %2128 = vmatmul.mubr.bf16.gmra.mrb[24].mxu0 %v1771_v1  ;;  %v6642_v13 = vpack.c.bf16 %v142_v46, %v141_v19 }
 0x10a   :  { %v1088_v25 = vpop.permute.xlu0 %1087  ;;  %5082 = vmatprep.subr.bf16.mxu1 %v5302_v51  ;;  %v611_v44 = vrot.slane %v609_v62, 7  ;;  %v140_v51 = vld [vmem:[%s8150_s0 + $0x388] sm:$0xff] }
 0x10b   :  { %v1280_v7 = vpop.permute.xlu1 %1279  ;;  %v1561_v37 = vsel %vm1537_vm6, %v357_v21, %v1088_v25  ;;  %5083 = vmatpush3.bf16.msra.mxu1 %v5303_v41  ;;  %v465_v54 = vshrl.u32 %v6642_v13, 16  ;;  %v151_v41 = vld [vmem:[%s8150_s0 + $0x3e0] sm:$0xff]  ;;  %v6721_v19 = vpack.c.bf16 %v140_v51, %v139_v32 }
 0x10c   :  { %1529 = vrot.lane.b32.xlu0 %v1053_v33, %s5383_s28  ;;  %v1602_v31 = vsel %vm1586_vm7, %v1561_v37, %v1136_v52  ;;  %5084 = vmatprep.subr.bf16.mxu1 %v5304_v8  ;;  %v614_v49 = vor.u32 %v612_v34, %v611_v44  ;;  %v468_v33 = vshll.u32 %v6642_v13, 16  ;;  %v152_v37 = vld [vmem:[%s8150_s0 + $0x3e8] sm:$0xff]  ;;  %v814_v44 = vrot.slane %v279_v45, 1 }
 0x10d   :  { %1243 = vrot.lane.b32.xlu1 %v6608_v16, %s5380_s17  ;;  %v467_v59 = vrot.slane %v465_v54, 7 }
 0x10e   :  { %v1184_v10 = vpop.permute.xlu0 %1183  ;;  %v652_v25 = vsel %vm5466_vm2, 0, %v614_v49  ;;  %v893_v14 = vrot.slane %v468_v33, 1  ;;  %v153_v49 = vld [vmem:[%s8150_s0 + $0x3f0] sm:$0xff] }
 0x10f   :  { %v1328_v22 = vpop.permute.xlu1 %1327  ;;  %v1635_v24 = vsel %vm1619_vm8, %v1602_v31, %v1184_v10  ;;  %5085 = vmatpush3.bf16.msra.mxu1 %v5305_v48  ;;  %v470_v46 = vor.u32 %v468_v33, %v467_v59  ;;  %v149_v48 = vld [vmem:[%s8150_s0 + $0x3d0] sm:$0xff] }
 0x110   :  { %1099 = vrot.lane.b32.xlu0 %v507_v29, %s5382_s27  ;;  %v1668_v5 = vsel %vm1652_vm9, %v1635_v24, %v1232_v60  ;;  %v281_v60 = vor.u32 %v279_v45, %v278_v35  ;;  %v6747_v50 = vpack.c.bf16 %v150_v36, %v149_v48 }
 0x111   :  { %1291 = vrot.lane.b32.xlu1 %v6512_v12, %s5381_s22  ;;  %v146_v12 = vld [vmem:[%s8150_s0 + $0x3b8] sm:$0xff]  ;;  %v1701_v63 = vsel %vm8158_vm10, %v1668_v5, %v1280_v7  ;;  %v508_v8 = vsel %vm5466_vm2, 0, %v470_v46  ;;  %v148_v46 = vld [vmem:[%s8150_s0 + $0x3c8] sm:$0xff] }
 0x112   :  { %v1424_v52 = vpop.permute.xlu0 %1423  ;;  %v6679_v56 = vpack.c.bf16 %v146_v12, %v145_v42  ;;  %v1734_v1 = vsel %vm1718_vm11, %v1701_v63, %v1328_v22  ;;  %v358_v43 = vsel %vm5466_vm2, 0, %v281_v60  ;;  %v6726_v22 = vpack.c.bf16 %v152_v37, %v151_v41 }
 0x113   :  { %v1376_v61 = vpop.permute.xlu1 %1375  ;;  %v1823_v21 = vsel %vm1537_vm6, %v856_v40, %v1424_v52  ;;  %v815_v63 = vor.u32 %v814_v44, %v276_v15  ;;  %v472_v11 = vshrl.u32 %v6747_v50, 16  ;;  %v475_v41 = vshll.u32 %v6747_v50, 16 }
 0x114   :  { %1195 = vrot.lane.b32.xlu0 %v795_v9, %s5383_s28  ;;  %v753_v27 = vshrl.u32 %v6679_v56, 16  ;;  %v1774_v29 = vsel %vm1751_vm12, %v1734_v1, %v1376_v61  ;;  %v756_v26 = vshll.u32 %v6679_v56, 16  ;;  %v616_v42 = vshrl.u32 %v6726_v22, 16 }
 0x115   :  { %1339 = vrot.lane.b32.xlu1 %v6471_v20, %s5385_s13  ;;  %v990_v20 = vsel %vm5487_vm5, %v956_v17, 0  ;;  %v957_v61 = vrot.slane %v612_v34, 1  ;;  %v283_v17 = vshrl.u32 %v6167_v3, 16  ;;  %v474_v51 = vrot.slane %v472_v11, 7 }
 0x116   :  { %v1472_v57 = vpop.permute.xlu0 %1471  ;;  %v755_v10 = vrot.slane %v753_v27, 7  ;;  %v618_v34 = vrot.slane %v616_v42, 7  ;;  %v1021_v60 = vrot.slane %v756_v26, 1 }
 0x117   :  { %v1138_v58 = vpop.permute.xlu1 %1137  ;;  %v1863_v4 = vsel %vm1586_vm7, %v1823_v21, %v1472_v57  ;;  %v619_v57 = vshll.u32 %v6726_v22, 16  ;;  %v958_v47 = vor.u32 %v957_v61, %v609_v62  ;;  %v285_v15 = vrot.slane %v283_v17, 7 }
 0x118   :  { %1435 = vrot.lane.b32.xlu0 %v926_v18, %s5382_s27  ;;  %v758_v9 = vor.u32 %v756_v26, %v755_v10  ;;  %v894_v18 = vor.u32 %v893_v14, %v465_v54  ;;  %v857_v21 = vsel %vm5487_vm5, %v815_v63, 0 }
 0x119   :  { %1387 = vrot.lane.b32.xlu1 %v6549_v6, %s5386_s19 }
 0x11a   :  { %v1520_v53 = vpop.permute.xlu0 %1519  ;;  %v796_v45 = vsel %vm5466_vm2, 0, %v758_v9  ;;  %v927_v59 = vsel %vm5487_vm5, %v894_v18, 0 }
 0x11b   :  { %v1895_v6 = vsel %vm1619_vm8, %v1863_v4, %v1520_v53  ;;  %v1234_v7 = vpop.permute.xlu1 %1233  ;;  %v621_v4 = vor.u32 %v619_v57, %v618_v34 }
 0x11c   :  { %1483 = vrot.lane.b32.xlu0 %v990_v20, %s5384_s10  ;;  %4915 = vmatprep.mubr.msk.bf16.mxu0 %vm1652_vm9, %v1895_v6  ;;  %v286_v20 = vshll.u32 %v6167_v3, 16 }
 0x11d   :  { %1149 = vrot.lane.b32.xlu1 %v652_v25, %s5384_s10  ;;  %2136 = vmatmul.mubr.bf16.gmra.mrb[28].mxu0 %v1774_v29  ;;  %v991_v25 = vsel %vm5487_vm5, %v958_v47, 0 }
 0x11e   :  { %v1090_v31 = vpop.permute.xlu0 %1089  ;;  %v288_v32 = vor.u32 %v286_v20, %v285_v15 }
 0x11f   :  { %v1282_v28 = vpop.permute.xlu1 %1281  ;;  %v1564_v24 = vsel %vm1537_vm6, %v358_v43, %v1090_v31 }
 0x120   :  { %1531 = vrot.lane.b32.xlu0 %v1054_v55, %s5383_s28  ;;  %v1604_v12 = vsel %vm1586_vm7, %v1564_v24, %v1138_v58  ;;  %v653_v55 = vsel %vm5466_vm2, 0, %v621_v4  ;;  %v359_v31 = vsel %vm5466_vm2, 0, %v288_v32 }
 0x121   :  { %1245 = vrot.lane.b32.xlu1 %v6721_v19, %s5380_s17 }
 0x122   :  { %v1186_v52 = vpop.permute.xlu0 %1185 }
 0x123   :  { %v1330_v5 = vpop.permute.xlu1 %1329  ;;  %v1637_v35 = vsel %vm1619_vm8, %v1604_v12, %v1186_v52 }
 0x124   :  { %1101 = vrot.lane.b32.xlu0 %v508_v8, %s5382_s27  ;;  %v1670_v58 = vsel %vm1652_vm9, %v1637_v35, %v1234_v7  ;;  %v477_v8 = vor.u32 %v475_v41, %v474_v51  ;;  %v816_v35 = vrot.slane %v286_v20, 1 }
 0x125   :  { %1293 = vrot.lane.b32.xlu1 %v6642_v13, %s5381_s22  ;;  %v154_v13 = vld [vmem:[%s8150_s0 + $0x3f8] sm:$0xff]  ;;  %v1703_v62 = vsel %vm8158_vm10, %v1670_v58, %v1282_v28 }
 0x126   :  { %v1426_v40 = vpop.permute.xlu0 %1425  ;;  %v6776_v1 = vpack.c.bf16 %v154_v13, %v153_v49  ;;  %v1736_v6 = vsel %vm1718_vm11, %v1703_v62, %v1330_v5  ;;  %v509_v44 = vsel %vm5466_vm2, 0, %v477_v8  ;;  %v895_v5 = vrot.slane %v475_v41, 1 }
 0x127   :  { %v1378_v54 = vpop.permute.xlu1 %1377  ;;  %v1826_v7 = vsel %vm1537_vm6, %v857_v21, %v1426_v40  ;;  %v959_v40 = vrot.slane %v619_v57, 1  ;;  %v290_v13 = vshrl.u32 %v6264_v0, 16  ;;  %v817_v58 = vor.u32 %v816_v35, %v283_v17 }
 0x128   :  { %1197 = vrot.lane.b32.xlu0 %v796_v45, %s5383_s28  ;;  %v760_v37 = vshrl.u32 %v6776_v1, 16  ;;  %v1777_v26 = vsel %vm1751_vm12, %v1736_v6, %v1378_v54  ;;  %v763_v14 = vshll.u32 %v6776_v1, 16  ;;  %v896_v49 = vor.u32 %v895_v5, %v472_v11 }
 0x129   :  { %1341 = vrot.lane.b32.xlu1 %v6613_v30, %s5385_s13  ;;  %v1022_v30 = vor.u32 %v1021_v60, %v753_v27  ;;  %v147_v27 = vld [vmem:[%s8150_s0 + $0x3c0] sm:$0xff]  ;;  %v960_v57 = vor.u32 %v959_v40, %v616_v42  ;;  %v292_v20 = vrot.slane %v290_v13, 7  ;;  %v293_v60 = vshll.u32 %v6264_v0, 16 }
 0x12a   :  { %v1474_v33 = vpop.permute.xlu0 %1473  ;;  %v6810_v24 = vpack.c.bf16 %v148_v46, %v147_v27  ;;  %v762_v9 = vrot.slane %v760_v37, 7  ;;  %v1023_v3 = vrot.slane %v763_v14, 1  ;;  %v858_v11 = vsel %vm5487_vm5, %v817_v58, 0 }
 0x12b   :  { %v1140_v53 = vpop.permute.xlu1 %1139  ;;  %v1865_v29 = vsel %vm1586_vm7, %v1826_v7, %v1474_v33  ;;  %v1055_v28 = vsel %vm5487_vm5, %v1022_v30, 0  ;;  %v992_v42 = vsel %vm5487_vm5, %v960_v57, 0  ;;  %v295_v0 = vor.u32 %v293_v60, %v292_v20  ;;  %v6882_v20 = vld [vmem:[%s8153_s2] ss:$0 sm:$0xff] }
 0x12c   :  { %1437 = vrot.lane.b32.xlu0 %v927_v59, %s5382_s27  ;;  %v765_v12 = vor.u32 %v763_v14, %v762_v9  ;;  %v1024_v33 = vor.u32 %v1023_v3, %v760_v37  ;;  %v297_v46 = vshrl.u32 %v6373_v2, 16  ;;  %v300_v8 = vshll.u32 %v6373_v2, 16 }
 0x12d   :  { %1389 = vrot.lane.b32.xlu1 %v6679_v56, %s5386_s19  ;;  %v360_v51 = vsel %vm5466_vm2, 0, %v295_v0 }
 0x12e   :  { %v1522_v43 = vpop.permute.xlu0 %1521  ;;  %v797_v34 = vsel %vm5466_vm2, 0, %v765_v12 }
 0x12f   :  { %v1897_v56 = vsel %vm1619_vm8, %v1865_v29, %v1522_v43  ;;  %v1236_v10 = vpop.permute.xlu1 %1235  ;;  %v818_v29 = vrot.slane %v293_v60, 1 }
 0x130   :  { %1485 = vrot.lane.b32.xlu0 %v991_v25, %s5384_s10  ;;  %4916 = vmatprep.mubr.msk.bf16.mxu0 %vm1652_vm9, %v1897_v56 }
 0x131   :  { %1151 = vrot.lane.b32.xlu1 %v653_v55, %s5384_s10  ;;  %2144 = vmatmul.mubr.bf16.gmra.mrb[32].mxu0 %v1777_v26  ;;  %v819_v56 = vor.u32 %v818_v29, %v290_v13  ;;  %v820_v13 = vrot.slane %v300_v8, 1 }
 0x132   :  { %v1092_v48 = vpop.permute.xlu0 %1091 }
 0x133   :  { %v1284_v36 = vpop.permute.xlu1 %1283  ;;  %v1567_v52 = vsel %vm1537_vm6, %v359_v31, %v1092_v48  ;;  %v859_v14 = vsel %vm5487_vm5, %v819_v56, 0  ;;  %v821_v57 = vor.u32 %v820_v13, %v297_v46 }
 0x134   :  { %1533 = vrot.lane.b32.xlu0 %v1055_v28, %s5383_s28  ;;  %v1606_v45 = vsel %vm1586_vm7, %v1567_v52, %v1140_v53  ;;  %v299_v28 = vrot.slane %v297_v46, 7 }
 0x135   :  { %1247 = vrot.lane.b32.xlu1 %v6810_v24, %s5380_s17 }
 0x136   :  { %v1188_v61 = vpop.permute.xlu0 %1187  ;;  %v302_v12 = vor.u32 %v300_v8, %v299_v28 }
 0x137   :  { %v1332_v18 = vpop.permute.xlu1 %1331  ;;  %v1639_v63 = vsel %vm1619_vm8, %v1606_v45, %v1188_v61 }
 0x138   :  { %1103 = vrot.lane.b32.xlu0 %v509_v44, %s5382_s27  ;;  %v1672_v47 = vsel %vm1652_vm9, %v1639_v63, %v1236_v10 }
 0x139   :  { %1295 = vrot.lane.b32.xlu1 %v6747_v50, %s5381_s22  ;;  %v928_v50 = vsel %vm5487_vm5, %v896_v49, 0  ;;  %v1705_v17 = vsel %vm8158_vm10, %v1672_v47, %v1284_v36 }
 0x13a   :  { %v1428_v54 = vpop.permute.xlu0 %1427 }
 0x13b   :  { %v1380_v15 = vpop.permute.xlu1 %1379  ;;  %v1829_v21 = vsel %vm1537_vm6, %v858_v11, %v1428_v54 }
 0x13c   :  { %1199 = vrot.lane.b32.xlu0 %v797_v34, %s5383_s28 }
 0x13d   :  { %1343 = vrot.lane.b32.xlu1 %v6726_v22, %s5385_s13  ;;  %v1738_v22 = vsel %vm1718_vm11, %v1705_v17, %v1332_v18  ;;  %v361_v18 = vsel %vm5466_vm2, 0, %v302_v12 }
 0x13e   :  { %v1476_v59 = vpop.permute.xlu0 %1475  ;;  %v1780_v30 = vsel %vm1751_vm12, %v1738_v22, %v1380_v15  ;;  %v304_v15 = vshrl.u32 %v6480_v38, 16 }
 0x13f   :  { %v1142_v62 = vpop.permute.xlu1 %1141  ;;  %v1867_v4 = vsel %vm1586_vm7, %v1829_v21, %v1476_v59  ;;  %v307_v59 = vshll.u32 %v6480_v38, 16  ;;  %v860_v21 = vsel %vm5487_vm5, %v821_v57, 0 }
 0x140   :  { %1439 = vrot.lane.b32.xlu0 %v928_v50, %s5382_s27  ;;  %v306_v11 = vrot.slane %v304_v15, 7 }
 0x141   :  { %1391 = vrot.lane.b32.xlu1 %v6776_v1, %s5386_s19  ;;  %v1056_v1 = vsel %vm5487_vm5, %v1024_v33, 0 }
 0x142   :  { %v1524_v53 = vpop.permute.xlu0 %1523 }
 0x143   :  { %v1899_v25 = vsel %vm1619_vm8, %v1867_v4, %v1524_v53  ;;  %v1238_v32 = vpop.permute.xlu1 %1237 }
 0x144   :  { %1487 = vrot.lane.b32.xlu0 %v992_v42, %s5384_s10  ;;  %4917 = vmatprep.mubr.msk.bf16.mxu0 %vm1652_vm9, %v1899_v25 }
 0x145   :  { %2152 = vmatmul.mubr.bf16.gmra.mrb[36].mxu0 %v1780_v30 }
 0x146   :  { %v1094_v6 = vpop.permute.xlu0 %1093 }
 0x147   :  { %v1286_v7 = vpop.permute.xlu1 %1285  ;;  %v1570_v41 = vsel %vm1537_vm6, %v360_v51, %v1094_v6 }
 0x148   :  { %1535 = vrot.lane.b32.xlu0 %v1056_v1, %s5383_s28  ;;  %v1608_v43 = vsel %vm1586_vm7, %v1570_v41, %v1142_v62 }
 0x14a   :  { %v1190_v37 = vpop.permute.xlu0 %1189 }
 0x14b   :  { %v1334_v55 = vpop.permute.xlu1 %1333  ;;  %v1641_v27 = vsel %vm1619_vm8, %v1608_v43, %v1190_v37 }
 0x14c   :  { %v1674_v26 = vsel %vm1652_vm9, %v1641_v27, %v1238_v32  ;;  %v309_v32 = vor.u32 %v307_v59, %v306_v11 }
 0x14d   :  { %v1707_v9 = vsel %vm8158_vm10, %v1674_v26, %v1286_v7 }
 0x14e   :  { %v1430_v10 = vpop.permute.xlu0 %1429  ;;  %v1740_v52 = vsel %vm1718_vm11, %v1707_v9, %v1334_v55  ;;  %v362_v55 = vsel %vm5466_vm2, 0, %v309_v32 }
 0x14f   :  { %v1382_v31 = vpop.permute.xlu1 %1381  ;;  %v1832_v44 = vsel %vm1537_vm6, %v859_v14, %v1430_v10 }
 0x150   :  { %v1783_v2 = vsel %vm1751_vm12, %v1740_v52, %v1382_v31 }
 0x152   :  { %v1478_v48 = vpop.permute.xlu0 %1477 }
 0x153   :  { %v1144_v36 = vpop.permute.xlu1 %1143  ;;  %v1869_v5 = vsel %vm1586_vm7, %v1832_v44, %v1478_v48  ;;  %v822_v48 = vrot.slane %v307_v59, 1 }
 0x156   :  { %v1526_v61 = vpop.permute.xlu0 %1525 }
 0x157   :  { %v1901_v35 = vsel %vm1619_vm8, %v1869_v5, %v1526_v61  ;;  %v1240_v45 = vpop.permute.xlu1 %1239 }
 0x158   :  { %4918 = vmatprep.mubr.msk.bf16.mxu0 %vm1652_vm9, %v1901_v35  ;;  %v311_v35 = vshrl.u32 %v6608_v16, 16 }
 0x159   :  { %2160 = vmatmul.mubr.bf16.gmra.mrb[40].mxu0 %v1783_v2 }
 0x15a   :  { %v1096_v63 = vpop.permute.xlu0 %1095 }
 0x15b   :  { %v1288_v40 = vpop.permute.xlu1 %1287  ;;  %v1573_v34 = vsel %vm1537_vm6, %v361_v18, %v1096_v63  ;;  %v823_v18 = vor.u32 %v822_v48, %v304_v15 }
 0x15c   :  { %v1610_v58 = vsel %vm1586_vm7, %v1573_v34, %v1144_v36 }
 0x15e   :  { %v1192_v49 = vpop.permute.xlu0 %1191 }
 0x15f   :  { %v1336_v54 = vpop.permute.xlu1 %1335  ;;  %v1643_v47 = vsel %vm1619_vm8, %v1610_v58, %v1192_v49  ;;  %v313_v58 = vrot.slane %v311_v35, 7 }
 0x160   :  { %v1676_v60 = vsel %vm1652_vm9, %v1643_v47, %v1240_v45 }
 0x161   :  { %v1709_v22 = vsel %vm8158_vm10, %v1676_v60, %v1288_v40 }
 0x162   :  { %v1432_v50 = vpop.permute.xlu0 %1431  ;;  %v1742_v30 = vsel %vm1718_vm11, %v1709_v22, %v1336_v54  ;;  %v314_v54 = vshll.u32 %v6608_v16, 16  ;;  %v861_v16 = vsel %vm5487_vm5, %v823_v18, 0 }
 0x163   :  { %v1384_v3 = vpop.permute.xlu1 %1383  ;;  %v1835_v51 = vsel %vm1537_vm6, %v860_v21, %v1432_v50 }
 0x164   :  { %v2081_v17 = vpop.f32.mrb[0].mxu0  ;;  %v1786_v43 = vsel %vm1751_vm12, %v1742_v30, %v1384_v3 }
 0x165   :  { %v2082_v62 = vadd.f32 %v6882_v20, %v2081_v17  ;;  %v2083_v42 = vpop.f32.mrb[1].mxu0 }
 0x166   :  { %v1480_v0 = vpop.permute.xlu0 %1479  ;;  %v2084_v33 = vpop.f32.mrb[2].mxu0 }
 0x167   :  { %v2085_v4 = vadd.f32 %v6882_v20, %v2084_v33  ;;  %v1146_v53 = vpop.permute.xlu1 %1145  ;;  %v2086_v25 = vpop.f32.mrb[3].mxu0  ;;  %v2208_v38 = vmax.f32 %v2082_v62, 0.0  ;;  %v1871_v6 = vsel %vm1586_vm7, %v1835_v51, %v1480_v0 }
 0x169   :  { %v2209_v1 = vmax.f32 %v2085_v4, 0.0  ;;  %v316_v4 = vor.u32 %v314_v54, %v313_v58 }
 0x16a   :  { %v1528_v7 = vpop.permute.xlu0 %1527 }
 0x16b   :  { %v6894_v41 = vpack.c.bf16 %v2209_v1, %v2208_v38  ;;  %v1903_v37 = vsel %vm1619_vm8, %v1871_v6, %v1528_v7  ;;  %v1242_v29 = vpop.permute.xlu1 %1241  ;;  %v824_v6 = vrot.slane %v314_v54, 1 }
 0x16c   :  { %4919 = vmatprep.mubr.msk.bf16.mxu0 %vm1652_vm9, %v1903_v37 }
 0x16d   :  { %2168 = vmatmul.mubr.bf16.gmra.mrb[44].mxu0 %v1786_v43  ;;  %v6902_v27 = vshll.u32 %v6894_v41, 16  ;;  %v2352_v46 = vrot.slane %v6894_v41, 1  ;;  %v2764_v10 = vshrl.u32 %v6894_v41, 16  ;;  %v2400_v5 = vrot.slane %v6894_v41, 2 }
 0x16e   :  { %v1098_v56 = vpop.permute.xlu0 %1097  ;;  %v2448_v17 = vrot.slane %v6894_v41, 3 }
 0x16f   :  { %v1290_v26 = vpop.permute.xlu1 %1289  ;;  %v1576_v31 = vsel %vm1537_vm6, %v362_v55, %v1098_v56  ;;  %v2828_v28 = vrot.slane %v2764_v10, 1  ;;  %v2259_v8 = vrot.slane %v6902_v27, 1  ;;  %v2940_v9 = vsel %vm5466_vm2, %v2764_v10, %v2352_v46 }
 0x170   :  { %v1612_v44 = vsel %vm1586_vm7, %v1576_v31, %v1146_v53  ;;  %v2860_v40 = vrot.slane %v2764_v10, 2  ;;  %v2368_v3 = vrot.slane %v6902_v27, 2  ;;  %v2892_v53 = vrot.slane %v2764_v10, 3 }
 0x171   :  { %v2958_v52 = vsel %vm347_vm0, %v2940_v9, %v2828_v28  ;;  %v2496_v45 = vsel %vm5466_vm2, %v6894_v41, %v2259_v8  ;;  %v2416_v56 = vrot.slane %v6902_v27, 3  ;;  %v2908_v10 = vrot.slane %v6894_v41, 4 }
 0x172   :  { %v1194_v14 = vpop.permute.xlu0 %1193  ;;  %v3020_v2 = vsel %vm6911_vm15, %v2958_v52, %v2400_v5  ;;  %v2515_v47 = vsel %vm347_vm0, %v2496_v45, %v2352_v46  ;;  %v363_v31 = vsel %vm5466_vm2, 0, %v316_v4 }
 0x173   :  { %v1338_v12 = vpop.permute.xlu1 %1337  ;;  %v1645_v61 = vsel %vm1619_vm8, %v1612_v44, %v1194_v14  ;;  %v3038_v50 = vsel %vm2577_vm13, %v3020_v2, %v2860_v40  ;;  %v2580_v0 = vsel %vm6911_vm15, %v2515_v47, %v2368_v3  ;;  %v6968_v44 = vor.u32 %v824_v6, %v311_v35 }
 0x174   :  { %v1678_v34 = vsel %vm1652_vm9, %v1645_v61, %v1242_v29  ;;  %v3100_v33 = vsel %vm6929_vm4, %v3038_v50, %v2448_v17  ;;  %v2599_v7 = vsel %vm2577_vm13, %v2580_v0, %v2400_v5  ;;  %v2464_v5 = vrot.slane %v6902_v27, 4 }
 0x175   :  { %v1711_v11 = vsel %vm8158_vm10, %v1678_v34, %v1290_v26  ;;  %vm6950_vm10 = vmand %vm2745_vm14, %vm2746_vm3  ;;  %v3118_v29 = vsel %vm2661_vm1, %v3100_v33, %v2892_v53  ;;  %v2664_v9 = vsel %vm6929_vm4, %v2599_v7, %v2416_v56  ;;  %v318_v61 = vshrl.u32 %v6721_v19, 16 }
 0x176   :  { %v1434_v63 = vpop.permute.xlu0 %1433  ;;  %v1744_v25 = vsel %vm1718_vm11, %v1711_v11, %v1338_v12  ;;  %v6966_v14 = vsel %vm6950_vm10, %v3118_v29, %v2908_v10  ;;  %v2683_v2 = vsel %vm2661_vm1, %v2664_v9, %v2448_v17  ;;  %v321_v56 = vshll.u32 %v6721_v19, 16 }
 0x177   :  { %v1386_v49 = vpop.permute.xlu1 %1385  ;;  %v1838_v32 = vsel %vm1537_vm6, %v861_v16, %v1434_v63  ;;  %v3197_v63 = vshrl.u32 %v6966_v14, 16  ;;  %vm8169_vm14 = vcmask 654336  }
 0x178   :  { %v2089_v13 = vpop.f32.mrb[4].mxu0  ;;  %v1789_v26 = vsel %vm1751_vm12, %v1744_v25, %v1386_v49  ;;  %vm8170_vm3 = vmmov %vm8169_vm14 }
 0x179   :  { %v2090_v15 = vadd.f32 %v6882_v20, %v2089_v13  ;;  %v2091_v60 = vpop.f32.mrb[5].mxu0  ;;  %v3199_v25 = vrot.slane %v3197_v63, 7 }
 0x17a   :  { %v1482_v59 = vpop.permute.xlu0 %1481  ;;  %v2092_v62 = vpop.f32.mrb[6].mxu0 }
 0x17b   :  { %v2093_v42 = vadd.f32 %v6882_v20, %v2092_v62  ;;  %v1148_v22 = vpop.permute.xlu1 %1147  ;;  %v2094_v21 = vpop.f32.mrb[7].mxu0  ;;  %v2210_v30 = vmax.f32 %v2090_v15, 0.0  ;;  %v1873_v38 = vsel %vm1586_vm7, %v1838_v32, %v1482_v59  ;;  %v320_v32 = vrot.slane %v318_v61, 7 }
 0x17d   :  { %v2211_v51 = vmax.f32 %v2093_v42, 0.0 }
 0x17e   :  { %v1530_v1 = vpop.permute.xlu0 %1529 }
 0x17f   :  { %v2241_v43 = vpack.c.bf16 %v2211_v51, %v2210_v30  ;;  %v1905_v55 = vsel %vm1619_vm8, %v1873_v38, %v1530_v1  ;;  %v1244_v46 = vpop.permute.xlu1 %1243  ;;  %v2748_v38 = vsel %vm6950_vm10, %v2683_v2, %v2464_v5 }
 0x180   :  { %4920 = vmatprep.mubr.msk.bf16.mxu0 %vm1652_vm9, %v1905_v55 }
 0x181   :  { %2176 = vmatmul.mubr.bf16.gmra.mrb[48].mxu0 %v1789_v26  ;;  %v2261_v28 = vshll.u32 %v2241_v43, 16  ;;  %v2353_v8 = vrot.slane %v2241_v43, 1  ;;  %v2766_v52 = vshrl.u32 %v2241_v43, 16  ;;  %v2401_v34 = vrot.slane %v2241_v43, 2 }
 0x182   :  { %v1100_v48 = vpop.permute.xlu0 %1099  ;;  %v2449_v58 = vrot.slane %v2241_v43, 3  ;;  %v2909_v0 = vrot.slane %v2241_v43, 4 }
 0x183   :  { %v1292_v41 = vpop.permute.xlu1 %1291  ;;  %v2263_v12 = vrot.slane %v2261_v28, 1  ;;  %v1579_v45 = vsel %vm1537_vm6, %v363_v31, %v1100_v48  ;;  %v2829_v18 = vrot.slane %v2766_v52, 1  ;;  %v2369_v40 = vrot.slane %v2261_v28, 2 }
 0x184   :  { %v2941_v35 = vsel %vm5466_vm2, %v2766_v52, %v2353_v8  ;;  %v2861_v54 = vrot.slane %v2766_v52, 2  ;;  %v1614_v50 = vsel %vm1586_vm7, %v1579_v45, %v1148_v22  ;;  %v2417_v60 = vrot.slane %v2261_v28, 3 }
 0x185   :  { %v2497_v49 = vsel %vm5466_vm2, %v2241_v43, %v2263_v12  ;;  %v2962_v47 = vsel %vm347_vm0, %v2941_v35, %v2829_v18  ;;  %v2893_v62 = vrot.slane %v2766_v52, 3  ;;  %v2465_v42 = vrot.slane %v2261_v28, 4 }
 0x186   :  { %v1196_v13 = vpop.permute.xlu0 %1195  ;;  %v2519_v27 = vsel %vm347_vm0, %v2497_v49, %v2353_v8  ;;  %v3021_v17 = vsel %vm6911_vm15, %v2962_v47, %v2401_v34  ;;  %v3200_v43 = vshll.u32 %v6966_v14, 16  ;;  %v323_v18 = vor.u32 %v321_v56, %v320_v32 }
 0x187   :  { %v1340_v15 = vpop.permute.xlu1 %1339  ;;  %v2581_v3 = vsel %vm6911_vm15, %v2519_v27, %v2369_v40  ;;  %v1647_v11 = vsel %vm1619_vm8, %v1614_v50, %v1196_v13  ;;  %v3042_v59 = vsel %vm2577_vm13, %v3021_v17, %v2861_v54 }
 0x188   :  { %v2603_v16 = vsel %vm2577_vm13, %v2581_v3, %v2401_v34  ;;  %v3101_v22 = vsel %vm6929_vm4, %v3042_v59, %v2449_v58  ;;  %v1680_v30 = vsel %vm1652_vm9, %v1647_v11, %v1244_v46  ;;  %v862_v46 = vsel %vm5487_vm5, %v6968_v44, 0 }
 0x189   :  { %v2665_v21 = vsel %vm6929_vm4, %v2603_v16, %v2417_v60  ;;  %v3122_v53 = vsel %vm2661_vm1, %v3101_v22, %v2893_v62  ;;  %v1713_v28 = vsel %vm8169_vm14, %v1680_v30, %v1292_v41  ;;  %v3202_v48 = vor.u32 %v3200_v43, %v3199_v25  ;;  %vm8171_vm14 = vmmov %vm8170_vm3 }
 0x18a   :  { %v1436_v33 = vpop.permute.xlu0 %1435  ;;  %v2687_v4 = vsel %vm2661_vm1, %v2665_v21, %v2449_v58  ;;  %v7004_v6 = vsel %vm6950_vm10, %v3122_v53, %v2909_v0  ;;  %v1746_v63 = vsel %vm1718_vm11, %v1713_v28, %v1340_v15  ;;  %v364_v60 = vsel %vm5466_vm2, 0, %v323_v18 }
 0x18b   :  { %v1388_v51 = vpop.permute.xlu1 %1387  ;;  %v2749_v1 = vsel %vm6950_vm10, %v2687_v4, %v2465_v42  ;;  %v3204_v55 = vshrl.u32 %v7004_v6, 16  ;;  %v4927_v31 = vcombine.low %v6966_v14, %v7004_v6  ;;  %v3207_v12 = vshll.u32 %v7004_v6, 16  ;;  %v5314_v14 = vld [vmem:[%s8154_s5 + $0x140] sm:$0xff]  }
 0x18c   :  { %v2097_v7 = vpop.f32.mrb[8].mxu0  ;;  %v4926_v29 = vcombine.low %v2748_v38, %v2749_v1  ;;  %v1841_v40 = vsel %vm1537_vm6, %v862_v46, %v1436_v33  ;;  %v3324_v13 = vsel %vm5466_vm2, 0, %v3202_v48  ;;  %v1792_v15 = vsel %vm1751_vm12, %v1746_v63, %v1388_v51  ;;  %v5315_v6 = vld [vmem:[%s8154_s5 + $0x100] sm:$0xff]   ;;  %5194 = vmatprep.subr.bf16.mxu0 %v5314_v14 }
 0x18d   :  { %v2098_v10 = vadd.f32 %v6882_v20, %v2097_v7  ;;  %v2099_v26 = vpop.f32.mrb[9].mxu0  ;;  %v3206_v52 = vrot.slane %v3204_v55, 7  ;;  %v826_v33 = vrot.slane %v321_v56, 1  ;;  %v325_v51 = vshrl.u32 %v6810_v24, 16  ;;  %5195 = vmatpush3.bf16.msra.mxu0 %v5315_v6 }
 0x18e   :  { %v1484_v8 = vpop.permute.xlu0 %1483  ;;  %v2100_v9 = vpop.f32.mrb[10].mxu0  ;;  %3715 = vmatprep.mubr.bf16.mxu1 %v4926_v29  ;;  %v328_v26 = vshll.u32 %v6810_v24, 16 }
 0x18f   :  { %v2101_v5 = vadd.f32 %v6882_v20, %v2100_v9  ;;  %v1150_v45 = vpop.permute.xlu1 %1149  ;;  %v2102_v2 = vpop.f32.mrb[11].mxu0  ;;  %v3209_v44 = vor.u32 %v3207_v12, %v3206_v52  ;;  %v2212_v34 = vmax.f32 %v2098_v10, 0.0  ;;  %v1875_v41 = vsel %vm1586_vm7, %v1841_v40, %v1484_v8 }
 0x190   :  { %v827_v7 = vor.u32 %v826_v33, %v318_v61  ;;  %v327_v10 = vrot.slane %v325_v51, 7 }
 0x191   :  { %v2213_v49 = vmax.f32 %v2101_v5, 0.0  ;;  %v3325_v58 = vsel %vm5466_vm2, 0, %v3209_v44 }
 0x192   :  { %v1532_v35 = vpop.permute.xlu0 %1531  ;;  %v4925_v50 = vcombine.low %v3324_v13, %v3325_v58  ;;  %v863_v12 = vsel %vm5487_vm5, %v827_v7, 0  ;;  %v330_v40 = vor.u32 %v328_v26, %v327_v10 }
 0x193   :  { %v7025_v27 = vpack.c.bf16 %v2213_v49, %v2212_v34  ;;  %v1907_v54 = vsel %vm1619_vm8, %v1875_v41, %v1532_v35  ;;  %v1246_v47 = vpop.permute.xlu1 %1245 }
 0x194   :  { %4921 = vmatprep.mubr.msk.bf16.mxu0 %vm1652_vm9, %v1907_v54  ;;  %3716 = vmatmul.mubr.bf16.vlgmr.msra.gmra.mrb[0].mxu1 %v4925_v50 }
 0x195   :  { %2184 = vmatmul.mubr.bf16.gmra.mrb[52].mxu0 %v1792_v15  ;;  %v7033_v3 = vshll.u32 %v7025_v27, 16  ;;  %v2354_v17 = vrot.slane %v7025_v27, 1  ;;  %v2768_v16 = vshrl.u32 %v7025_v27, 16  ;;  %v2402_v32 = vrot.slane %v7025_v27, 2 }
 0x196   :  { %v1102_v11 = vpop.permute.xlu0 %1101  ;;  %v2450_v19 = vrot.slane %v7025_v27, 3 }
 0x197   :  { %v1294_v59 = vpop.permute.xlu1 %1293  ;;  %v1582_v62 = vsel %vm1537_vm6, %v364_v60, %v1102_v11  ;;  %v2830_v42 = vrot.slane %v2768_v16, 1  ;;  %v2267_v21 = vrot.slane %v7033_v3, 1  ;;  %v2942_v22 = vsel %vm5466_vm2, %v2768_v16, %v2354_v17 }
 0x198   :  { %v1616_v53 = vsel %vm1586_vm7, %v1582_v62, %v1150_v45  ;;  %v2862_v43 = vrot.slane %v2768_v16, 2  ;;  %v2370_v52 = vrot.slane %v7033_v3, 2  ;;  %v2894_v34 = vrot.slane %v2768_v16, 3 }
 0x199   :  { %v2966_v4 = vsel %vm347_vm0, %v2942_v22, %v2830_v42  ;;  %v2498_v38 = vsel %vm5466_vm2, %v7025_v27, %v2267_v21  ;;  %v2418_v16 = vrot.slane %v7033_v3, 3  ;;  %v365_v42 = vsel %vm5466_vm2, 0, %v330_v40 }
 0x19a   :  { %v1198_v0 = vpop.permute.xlu0 %1197  ;;  %v3022_v1 = vsel %vm6911_vm15, %v2966_v4, %v2402_v32  ;;  %v2523_v28 = vsel %vm347_vm0, %v2498_v38, %v2354_v17 }
 0x19b   :  { %v1342_v25 = vpop.permute.xlu1 %1341  ;;  %v1649_v30 = vsel %vm1619_vm8, %v1616_v53, %v1198_v0  ;;  %v3046_v8 = vsel %vm2577_vm13, %v3022_v1, %v2862_v43  ;;  %v2582_v18 = vsel %vm6911_vm15, %v2523_v28, %v2370_v52 }
 0x19c   :  { %v1682_v55 = vsel %vm1652_vm9, %v1649_v30, %v1246_v47  ;;  %v3102_v63 = vsel %vm6929_vm4, %v3046_v8, %v2450_v19  ;;  %v828_v47 = vrot.slane %v328_v26, 1  ;;  %v2607_v50 = vsel %vm2577_vm13, %v2582_v18, %v2402_v32 }
 0x19d   :  { %v1715_v61 = vsel %vm8170_vm3, %v1682_v55, %v1294_v59  ;;  %v3126_v15 = vsel %vm2661_vm1, %v3102_v63, %v2894_v34  ;;  %v2910_v59 = vrot.slane %v7025_v27, 4  ;;  %v2666_v0 = vsel %vm6929_vm4, %v2607_v50, %v2418_v16 }
 0x19e   :  { %v1438_v29 = vpop.permute.xlu0 %1437  ;;  %v1748_v49 = vsel %vm1718_vm11, %v1715_v61, %v1342_v25  ;;  %v829_v27 = vor.u32 %v828_v47, %v325_v51  ;;  %v2466_v32 = vrot.slane %v7033_v3, 4  ;;  %v2691_v38 = vsel %vm2661_vm1, %v2666_v0, %v2450_v19 }
 0x19f   :  { %v1390_v56 = vpop.permute.xlu1 %1389  ;;  %v1844_v41 = vsel %vm1537_vm6, %v863_v12, %v1438_v29  ;;  %v7084_v33 = vsel %vm6950_vm10, %v3126_v15, %v2910_v59 }
 0x1a0   :  { %v2105_v46 = vpop.f32.mrb[12].mxu0  ;;  %v1795_v62 = vsel %vm1751_vm12, %v1748_v49, %v1390_v56  ;;  %v3211_v7 = vshrl.u32 %v7084_v33, 16  ;;  %v3214_v50 = vshll.u32 %v7084_v33, 16 }
 0x1a1   :  { %v2106_v9 = vadd.f32 %v6882_v20, %v2105_v46  ;;  %v2107_v48 = vpop.f32.mrb[13].mxu0 }
 0x1a2   :  { %v1486_v5 = vpop.permute.xlu0 %1485  ;;  %v2108_v45 = vpop.f32.mrb[14].mxu0  ;;  %v3213_v34 = vrot.slane %v3211_v7, 7 }
 0x1a3   :  { %v2109_v24 = vadd.f32 %v6882_v20, %v2108_v45  ;;  %v1152_v2 = vpop.permute.xlu1 %1151  ;;  %v2110_v44 = vpop.f32.mrb[15].mxu0  ;;  %v2214_v35 = vmax.f32 %v2106_v9, 0.0  ;;  %v1877_v58 = vsel %vm1586_vm7, %v1844_v41, %v1486_v5 }
 0x1a5   :  { %v2215_v13 = vmax.f32 %v2109_v24, 0.0 }
 0x1a6   :  { %v1534_v54 = vpop.permute.xlu0 %1533 }
 0x1a7   :  { %v2243_v60 = vpack.c.bf16 %v2215_v13, %v2214_v35  ;;  %v1909_v17 = vsel %vm1619_vm8, %v1877_v58, %v1534_v54  ;;  %v1248_v11 = vpop.permute.xlu1 %1247  ;;  %v2750_v35 = vsel %vm6950_vm10, %v2691_v38, %v2466_v32 }
 0x1a8   :  { %4922 = vmatprep.mubr.msk.bf16.mxu0 %vm1652_vm9, %v1909_v17 }
 0x1a9   :  { %2192 = vmatmul.mubr.bf16.gmra.mrb[56].mxu0 %v1795_v62  ;;  %v2269_v21 = vshll.u32 %v2243_v60, 16  ;;  %v2355_v22 = vrot.slane %v2243_v60, 1  ;;  %v2770_v53 = vshrl.u32 %v2243_v60, 16  ;;  %v2403_v55 = vrot.slane %v2243_v60, 2 }
 0x1aa   :  { %v1104_v4 = vpop.permute.xlu0 %1103  ;;  %v2451_v10 = vrot.slane %v2243_v60, 3  ;;  %v2911_v44 = vrot.slane %v2243_v60, 4 }
 0x1ab   :  { %v2271_v25 = vrot.slane %v2269_v21, 1  ;;  %v1585_v30 = vsel %vm1537_vm6, %v365_v42, %v1104_v4  ;;  %v2831_v1 = vrot.slane %v2770_v53, 1  ;;  %v1296_v29 = vpop.permute.xlu1 %1295  ;;  %v2371_v43 = vrot.slane %v2269_v21, 2 }
 0x1ac   :  { %v2943_v46 = vsel %vm5466_vm2, %v2770_v53, %v2355_v22  ;;  %v2863_v26 = vrot.slane %v2770_v53, 2  ;;  %v1618_v8 = vsel %vm1586_vm7, %v1585_v30, %v1152_v2  ;;  %v2419_v9 = vrot.slane %v2269_v21, 3 }
 0x1ad   :  { %v2499_v56 = vsel %vm5466_vm2, %v2243_v60, %v2271_v25  ;;  %v2970_v28 = vsel %vm347_vm0, %v2943_v46, %v2831_v1  ;;  %v2895_v12 = vrot.slane %v2770_v53, 3  ;;  %v2467_v45 = vrot.slane %v2269_v21, 4 }
 0x1ae   :  { %v1200_v51 = vpop.permute.xlu0 %1199  ;;  %v2527_v3 = vsel %vm347_vm0, %v2499_v56, %v2355_v22  ;;  %v3023_v52 = vsel %vm6911_vm15, %v2970_v28, %v2403_v55  ;;  %v864_v60 = vsel %vm5487_vm5, %v829_v27, 0  ;;  %v3216_v21 = vor.u32 %v3214_v50, %v3213_v34 }
 0x1af   :  { %v2583_v48 = vsel %vm6911_vm15, %v2527_v3, %v2371_v43  ;;  %v1651_v19 = vsel %vm1619_vm8, %v1618_v8, %v1200_v51  ;;  %v3050_v5 = vsel %vm2577_vm13, %v3023_v52, %v2863_v26  ;;  %v1344_v41 = vpop.permute.xlu1 %1343  ;;  %vm3964_vm5 = vcmask 1043459  }
 0x1b0   :  { %v2611_v61 = vsel %vm2577_vm13, %v2583_v48, %v2403_v55  ;;  %v3103_v2 = vsel %vm6929_vm4, %v3050_v5, %v2451_v10  ;;  %v1684_v49 = vsel %vm1652_vm9, %v1651_v19, %v1248_v11 }
 0x1b1   :  { %v2667_v24 = vsel %vm6929_vm4, %v2611_v61, %v2419_v9  ;;  %v3130_v40 = vsel %vm2661_vm1, %v3103_v2, %v2895_v12  ;;  %v1717_v59 = vsel %vm8171_vm14, %v1684_v49, %v1296_v29  ;;  %v3326_v29 = vsel %vm5466_vm2, 0, %v3216_v21 }
 0x1b2   :  { %v1440_v18 = vpop.permute.xlu0 %1439  ;;  %v2695_v63 = vsel %vm2661_vm1, %v2667_v24, %v2451_v10  ;;  %v7117_v58 = vsel %vm6950_vm10, %v3130_v40, %v2911_v44  ;;  %v1750_v27 = vsel %vm1718_vm11, %v1717_v59, %v1344_v41 }
 0x1b3   :  { %v2751_v13 = vsel %vm6950_vm10, %v2695_v63, %v2467_v45  ;;  %v3218_v15 = vshrl.u32 %v7117_v58, 16  ;;  %v4930_v16 = vcombine.low %v7084_v33, %v7117_v58  ;;  %v3221_v0 = vshll.u32 %v7117_v58, 16  ;;  %v1392_v32 = vpop.permute.xlu1 %1391 }
 0x1b4   :  { %v2113_v54 = vpop.f32.mrb[16].mxu0  ;;  %v4929_v47 = vcombine.low %v2750_v35, %v2751_v13  ;;  %v1847_v25 = vsel %vm1537_vm6, %v864_v60, %v1440_v18  ;;  %v1798_v51 = vsel %vm1751_vm12, %v1750_v27, %v1392_v32  ;;  %vm3970_vm6 = vcmask 1045509  }
 0x1b5   :  { %v2114_v17 = vadd.f32 %v6882_v20, %v2113_v54  ;;  %v2115_v11 = vpop.f32.mrb[17].mxu0  ;;  %v3220_v22 = vrot.slane %v3218_v15, 7 }
 0x1b6   :  { %v1488_v62 = vpop.permute.xlu0 %1487  ;;  %v2116_v42 = vpop.f32.mrb[18].mxu0  ;;  %3723 = vmatprep.mubr.bf16.mxu1 %v4929_v47 }
 0x1b7   :  { %v2117_v4 = vadd.f32 %v6882_v20, %v2116_v42  ;;  %v2118_v53 = vpop.f32.mrb[19].mxu0  ;;  %v3223_v39 = vor.u32 %v3221_v0, %v3220_v22  ;;  %v2216_v30 = vmax.f32 %v2114_v17, 0.0  ;;  %v1879_v1 = vsel %vm1586_vm7, %v1847_v25, %v1488_v62 }
 0x1b9   :  { %v2217_v38 = vmax.f32 %v2117_v4, 0.0  ;;  %v3327_v43 = vsel %vm5466_vm2, 0, %v3223_v39 }
 0x1ba   :  { %v1536_v7 = vpop.permute.xlu0 %1535  ;;  %v4928_v46 = vcombine.low %v3326_v29, %v3327_v43 }
 0x1bb   :  { %v2244_v55 = vpack.c.bf16 %v2217_v38, %v2216_v30  ;;  %v1911_v56 = vsel %vm1619_vm8, %v1879_v1, %v1536_v7  ;;  %vm3967_vm8 = vcmask 1044484  }
 0x1bc   :  { %4923 = vmatprep.mubr.msk.bf16.mxu0 %vm1652_vm9, %v1911_v56  ;;  %3724 = vmatmul.mubr.bf16.gmra.mrb[4].mxu1 %v4928_v46  ;;  %vm3973_vm9 = vcmask 1046534  }
 0x1bd   :  { %2200 = vmatmul.mubr.bf16.gmra.mrb[60].mxu0 %v1798_v51  ;;  %v2356_v10 = vrot.slane %v2244_v55, 1  ;;  %v2772_v3 = vshrl.u32 %v2244_v55, 16  ;;  %v2273_v28 = vshll.u32 %v2244_v55, 16  ;;  %v2404_v52 = vrot.slane %v2244_v55, 2 }
 0x1be   :  { %v2452_v40 = vrot.slane %v2244_v55, 3  ;;  %v2912_v11 = vrot.slane %v2244_v55, 4 }
 0x1bf   :  { %v2832_v26 = vrot.slane %v2772_v3, 1  ;;  %v2944_v8 = vsel %vm5466_vm2, %v2772_v3, %v2356_v10  ;;  %v2275_v48 = vrot.slane %v2273_v28, 1  ;;  %v2864_v12 = vrot.slane %v2772_v3, 2 }
 0x1c0   :  { %v2372_v35 = vrot.slane %v2273_v28, 2  ;;  %v2896_v54 = vrot.slane %v2772_v3, 3  ;;  %v2420_v21 = vrot.slane %v2273_v28, 3  ;;  %v2468_v0 = vrot.slane %v2273_v28, 4 }
 0x1c1   :  { %v2974_v9 = vsel %vm347_vm0, %v2944_v8, %v2832_v26  ;;  %v2500_v24 = vsel %vm5466_vm2, %v2244_v55, %v2275_v48 }
 0x1c2   :  { %v3024_v19 = vsel %vm6911_vm15, %v2974_v9, %v2404_v52  ;;  %v2531_v34 = vsel %vm347_vm0, %v2500_v24, %v2356_v10 }
 0x1c3   :  { %v3054_v2 = vsel %vm2577_vm13, %v3024_v19, %v2864_v12  ;;  %v2584_v50 = vsel %vm6911_vm15, %v2531_v34, %v2372_v35 }
 0x1c4   :  { %v3104_v13 = vsel %vm6929_vm4, %v3054_v2, %v2452_v40  ;;  %v2615_v59 = vsel %vm2577_vm13, %v2584_v50, %v2404_v52 }
 0x1c5   :  { %v3134_v15 = vsel %vm2661_vm1, %v3104_v13, %v2896_v54  ;;  %v2668_v32 = vsel %vm6929_vm4, %v2615_v59, %v2420_v21 }
 0x1c6   :  { %v7158_v22 = vsel %vm6950_vm10, %v3134_v15, %v2912_v11  ;;  %v2699_v51 = vsel %vm2661_vm1, %v2668_v32, %v2452_v40  ;;  %v5306_v32 = vld [vmem:[%s8152_s3 + $0x80] sm:$0xff]  }
 0x1c7   :  { %v3225_v7 = vshrl.u32 %v7158_v22, 16  ;;  %5238 = vmatprep.subr.bf16.mxu1 %v5306_v32 }
 0x1c8   :  { %v2121_v61 = vpop.f32.mrb[20].mxu0  ;;  %5239 = vmatpush3.bf16.msra.mxu1 %v5306_v32 }
 0x1c9   :  { %v2122_v5 = vadd.f32 %v6882_v20, %v2121_v61  ;;  %v2123_v45 = vpop.f32.mrb[21].mxu0  ;;  %v3227_v19 = vrot.slane %v3225_v7, 7  ;;  %v2752_v61 = vsel %vm6950_vm10, %v2699_v51, %v2468_v0 }
 0x1ca   :  { %v2124_v44 = vpop.f32.mrb[22].mxu0 }
 0x1cb   :  { %v2125_v18 = vadd.f32 %v6882_v20, %v2124_v44  ;;  %v2126_v63 = vpop.f32.mrb[23].mxu0  ;;  %v2218_v49 = vmax.f32 %v2122_v5, 0.0  ;;  %v3228_v44 = vshll.u32 %v7158_v22, 16 }
 0x1cd   :  { %v2219_v41 = vmax.f32 %v2125_v18, 0.0 }
 0x1cf   :  { %v2245_v47 = vpack.c.bf16 %v2219_v41, %v2218_v49  ;;  %v3230_v49 = vor.u32 %v3228_v44, %v3227_v19 }
 0x1d1   :  { %v2277_v60 = vshll.u32 %v2245_v47, 16  ;;  %v2357_v17 = vrot.slane %v2245_v47, 1  ;;  %v2774_v62 = vshrl.u32 %v2245_v47, 16  ;;  %v2405_v27 = vrot.slane %v2245_v47, 2 }
 0x1d2   :  { %v2453_v43 = vrot.slane %v2245_v47, 3  ;;  %v2913_v8 = vrot.slane %v2245_v47, 4 }
 0x1d3   :  { %v2279_v42 = vrot.slane %v2277_v60, 1  ;;  %v2833_v4 = vrot.slane %v2774_v62, 1  ;;  %v2945_v53 = vsel %vm5466_vm2, %v2774_v62, %v2357_v17  ;;  %v2373_v39 = vrot.slane %v2277_v60, 2 }
 0x1d4   :  { %v2865_v38 = vrot.slane %v2774_v62, 2  ;;  %v2421_v29 = vrot.slane %v2277_v60, 3  ;;  %v2897_v10 = vrot.slane %v2774_v62, 3  ;;  %v2469_v26 = vrot.slane %v2277_v60, 4 }
 0x1d5   :  { %v2501_v25 = vsel %vm5466_vm2, %v2245_v47, %v2279_v42  ;;  %v2978_v1 = vsel %vm347_vm0, %v2945_v53, %v2833_v4  ;;  %v3328_v60 = vsel %vm5466_vm2, 0, %v3230_v49 }
 0x1d6   :  { %v2535_v30 = vsel %vm347_vm0, %v2501_v25, %v2357_v17  ;;  %v3025_v56 = vsel %vm6911_vm15, %v2978_v1, %v2405_v27 }
 0x1d7   :  { %v2585_v55 = vsel %vm6911_vm15, %v2535_v30, %v2373_v39  ;;  %v3058_v3 = vsel %vm2577_vm13, %v3025_v56, %v2865_v38  ;;  %v5307_v30 = vld [vmem:[%s8152_s3 + $0x88] sm:$0xff]  }
 0x1d8   :  { %v2619_v46 = vsel %vm2577_vm13, %v2585_v55, %v2405_v27  ;;  %v3105_v9 = vsel %vm6929_vm4, %v3058_v3, %v2453_v43  ;;  %5240 = vmatprep.subr.bf16.mxu1 %v5307_v30 }
 0x1d9   :  { %v2669_v28 = vsel %vm6929_vm4, %v2619_v46, %v2421_v29  ;;  %v3138_v52 = vsel %vm2661_vm1, %v3105_v9, %v2897_v10  ;;  %5241 = vmatpush3.bf16.msra.mxu1 %v5307_v30 }
 0x1da   :  { %v2703_v48 = vsel %vm2661_vm1, %v2669_v28, %v2453_v43  ;;  %v7188_v5 = vsel %vm6950_vm10, %v3138_v52, %v2913_v8 }
 0x1db   :  { %v2753_v12 = vsel %vm6950_vm10, %v2703_v48, %v2469_v26  ;;  %v3232_v2 = vshrl.u32 %v7188_v5, 16  ;;  %v4933_v18 = vcombine.low %v7158_v22, %v7188_v5  ;;  %v3235_v35 = vshll.u32 %v7188_v5, 16 }
 0x1dc   :  { %v2129_v45 = vpop.f32.mrb[24].mxu0  ;;  %v4932_v24 = vcombine.low %v2752_v61, %v2753_v12 }
 0x1dd   :  { %v2130_v63 = vadd.f32 %v6882_v20, %v2129_v45  ;;  %v2131_v40 = vpop.f32.mrb[25].mxu0  ;;  %v3234_v41 = vrot.slane %v3232_v2, 7 }
 0x1de   :  { %v2132_v34 = vpop.f32.mrb[26].mxu0  ;;  %3731 = vmatprep.mubr.bf16.mxu1 %v4932_v24 }
 0x1df   :  { %v2133_v13 = vadd.f32 %v6882_v20, %v2132_v34  ;;  %v2134_v54 = vpop.f32.mrb[27].mxu0  ;;  %v3237_v47 = vor.u32 %v3235_v35, %v3234_v41  ;;  %v2220_v50 = vmax.f32 %v2130_v63, 0.0 }
 0x1e1   :  { %v2221_v15 = vmax.f32 %v2133_v13, 0.0  ;;  %v3329_v17 = vsel %vm5466_vm2, 0, %v3237_v47 }
 0x1e2   :  { %v4931_v59 = vcombine.low %v3328_v60, %v3329_v17 }
 0x1e3   :  { %v7201_v11 = vpack.c.bf16 %v2221_v15, %v2220_v50 }
 0x1e4   :  { %3732 = vmatmul.mubr.bf16.gmra.mrb[8].mxu1 %v4931_v59 }
 0x1e5   :  { %v2358_v62 = vrot.slane %v7201_v11, 1  ;;  %v2776_v42 = vshrl.u32 %v7201_v11, 16  ;;  %v7206_v0 = vshll.u32 %v7201_v11, 16  ;;  %v2406_v27 = vrot.slane %v7201_v11, 2 }
 0x1e6   :  { %v2454_v10 = vrot.slane %v7201_v11, 3  ;;  %v2914_v24 = vrot.slane %v7201_v11, 4 }
 0x1e7   :  { %v2834_v21 = vrot.slane %v2776_v42, 1  ;;  %v2946_v4 = vsel %vm5466_vm2, %v2776_v42, %v2358_v62  ;;  %v2283_v39 = vrot.slane %v7206_v0, 1  ;;  %v2866_v1 = vrot.slane %v2776_v42, 2 }
 0x1e8   :  { %v2374_v8 = vrot.slane %v7206_v0, 2  ;;  %v2898_v48 = vrot.slane %v2776_v42, 3  ;;  %v2422_v40 = vrot.slane %v7206_v0, 3  ;;  %v2470_v49 = vrot.slane %v7206_v0, 4 }
 0x1e9   :  { %v2982_v53 = vsel %vm347_vm0, %v2946_v4, %v2834_v21  ;;  %v2502_v43 = vsel %vm5466_vm2, %v7201_v11, %v2283_v39 }
 0x1ea   :  { %v3026_v25 = vsel %vm6911_vm15, %v2982_v53, %v2406_v27  ;;  %v2539_v3 = vsel %vm347_vm0, %v2502_v43, %v2358_v62 }
 0x1eb   :  { %v3062_v56 = vsel %vm2577_vm13, %v3026_v25, %v2866_v1  ;;  %v2586_v19 = vsel %vm6911_vm15, %v2539_v3, %v2374_v8 }
 0x1ec   :  { %v3106_v9 = vsel %vm6929_vm4, %v3062_v56, %v2454_v10  ;;  %v2623_v44 = vsel %vm2577_vm13, %v2586_v19, %v2406_v27  ;;  %v5308_v56 = vld [vmem:[%s8152_s3 + $0x90] sm:$0xff]  }
 0x1ed   :  { %v3142_v61 = vsel %vm2661_vm1, %v3106_v9, %v2898_v48  ;;  %v2670_v50 = vsel %vm6929_vm4, %v2623_v44, %v2422_v40  ;;  %5242 = vmatprep.subr.bf16.mxu1 %v5308_v56  ;;  %v5309_v9 = vld [vmem:[%s8152_s3 + $0x98] sm:$0xff]  }
 0x1ee   :  { %v7240_v34 = vsel %vm6950_vm10, %v3142_v61, %v2914_v24  ;;  %v2707_v4 = vsel %vm2661_vm1, %v2670_v50, %v2454_v10  ;;  %5243 = vmatpush3.bf16.msra.mxu1 %v5308_v56 }
 0x1ef   :  { %v3239_v11 = vshrl.u32 %v7240_v34, 16  ;;  %v3242_v10 = vshll.u32 %v7240_v34, 16  ;;  %5244 = vmatprep.subr.bf16.mxu1 %v5309_v9 }
 0x1f0   :  { %v2137_v38 = vpop.f32.mrb[28].mxu0 }
 0x1f1   :  { %v2138_v7 = vadd.f32 %v6882_v20, %v2137_v38  ;;  %v2139_v29 = vpop.f32.mrb[29].mxu0 }
 0x1f2   :  { %v2140_v55 = vpop.f32.mrb[30].mxu0  ;;  %v2754_v29 = vsel %vm6950_vm10, %v2707_v4, %v2470_v49  ;;  %5245 = vmatpush3.bf16.msra.mxu1 %v5309_v9 }
 0x1f3   :  { %v2141_v46 = vadd.f32 %v6882_v20, %v2140_v55  ;;  %v2142_v51 = vpop.f32.mrb[31].mxu0  ;;  %v2222_v26 = vmax.f32 %v2138_v7, 0.0  ;;  %v3241_v7 = vrot.slane %v3239_v11, 7  ;;  %v5310_v11 = vld [vmem:[%s8152_s3 + $0xa0] sm:$0xff]  }
 0x1f4   :  { %5246 = vmatprep.subr.bf16.mxu1 %v5310_v11 }
 0x1f5   :  { %v2223_v28 = vmax.f32 %v2141_v46, 0.0 }
 0x1f6   :  { %5247 = vmatpush3.bf16.msra.mxu1 %v5310_v11 }
 0x1f7   :  { %v2247_v52 = vpack.c.bf16 %v2223_v28, %v2222_v26 }
 0x1f9   :  { %v2285_v12 = vshll.u32 %v2247_v52, 16  ;;  %v2359_v45 = vrot.slane %v2247_v52, 1  ;;  %v2778_v2 = vshrl.u32 %v2247_v52, 16  ;;  %v2407_v54 = vrot.slane %v2247_v52, 2 }
 0x1fa   :  { %v2455_v62 = vrot.slane %v2247_v52, 3  ;;  %v2915_v32 = vrot.slane %v2247_v52, 4 }
 0x1fb   :  { %v2287_v63 = vrot.slane %v2285_v12, 1  ;;  %v2835_v41 = vrot.slane %v2778_v2, 1  ;;  %v2947_v35 = vsel %vm5466_vm2, %v2778_v2, %v2359_v45  ;;  %v2375_v13 = vrot.slane %v2285_v12, 2 }
 0x1fc   :  { %v2867_v60 = vrot.slane %v2778_v2, 2  ;;  %v2423_v59 = vrot.slane %v2285_v12, 3  ;;  %v2899_v53 = vrot.slane %v2778_v2, 3  ;;  %v2471_v27 = vrot.slane %v2285_v12, 4 }
 0x1fd   :  { %v2503_v47 = vsel %vm5466_vm2, %v2247_v52, %v2287_v63  ;;  %v2986_v17 = vsel %vm347_vm0, %v2947_v35, %v2835_v41  ;;  %v3244_v52 = vor.u32 %v3242_v10, %v3241_v7 }
 0x1fe   :  { %v2543_v15 = vsel %vm347_vm0, %v2503_v47, %v2359_v45  ;;  %v3027_v21 = vsel %vm6911_vm15, %v2986_v17, %v2407_v54 }
 0x1ff   :  { %v2587_v42 = vsel %vm6911_vm15, %v2543_v15, %v2375_v13  ;;  %v3066_v39 = vsel %vm2577_vm13, %v3027_v21, %v2867_v60  ;;  %v3330_v63 = vsel %vm5466_vm2, 0, %v3244_v52  ;;  %v7313_v21 = vld [vmem:[%s8153_s2] ss:$0 sm:$0xff] }
 0x200   :  { %v2627_v0 = vsel %vm2577_vm13, %v2587_v42, %v2407_v54  ;;  %v3107_v30 = vsel %vm6929_vm4, %v3066_v39, %v2455_v62 }
 0x201   :  { %v2671_v25 = vsel %vm6929_vm4, %v2627_v0, %v2423_v59  ;;  %v3146_v1 = vsel %vm2661_vm1, %v3107_v30, %v2899_v53  ;;  %v5311_v59 = vld [vmem:[%s8152_s3 + $0xa8] sm:$0xff]  }
 0x202   :  { %v2711_v38 = vsel %vm2661_vm1, %v2671_v25, %v2455_v62  ;;  %v7271_v55 = vsel %vm6950_vm10, %v3146_v1, %v2915_v32  ;;  %5248 = vmatprep.subr.bf16.mxu1 %v5311_v59 }
 0x203   :  { %v2755_v43 = vsel %vm6950_vm10, %v2711_v38, %v2471_v27  ;;  %v3246_v3 = vshrl.u32 %v7271_v55, 16  ;;  %v4936_v26 = vcombine.low %v7240_v34, %v7271_v55  ;;  %v3249_v61 = vshll.u32 %v7271_v55, 16  ;;  %v5312_v38 = vld [vmem:[%s8152_s3 + $0xb0] sm:$0xff]   ;;  %5249 = vmatpush3.bf16.msra.mxu1 %v5311_v59  ;;  %v5317_v34 = vld [vmem:[%s8154_s5 + $0x108] sm:$0xff]  }
 0x204   :  { %v2145_v46 = vpop.f32.mrb[32].mxu0  ;;  %v4935_v51 = vcombine.low %v2754_v29, %v2755_v43  ;;  %5250 = vmatprep.subr.bf16.mxu1 %v5312_v38 }
 0x205   :  { %v2146_v28 = vadd.f32 %v6882_v20, %v2145_v46  ;;  %v2147_v8 = vpop.f32.mrb[33].mxu0  ;;  %v3248_v19 = vrot.slane %v3246_v3, 7 }
 0x206   :  { %v2148_v48 = vpop.f32.mrb[34].mxu0  ;;  %3739 = vmatprep.mubr.bf16.mxu1 %v4935_v51 }
 0x207   :  { %v2149_v12 = vadd.f32 %v6882_v20, %v2148_v48  ;;  %v2150_v45 = vpop.f32.mrb[35].mxu0  ;;  %v3251_v24 = vor.u32 %v3249_v61, %v3248_v19  ;;  %v2224_v44 = vmax.f32 %v2146_v28, 0.0  ;;  %5251 = vmatpush3.bf16.msra.mxu1 %v5312_v38 }
 0x209   :  { %v2225_v2 = vmax.f32 %v2149_v12, 0.0  ;;  %v3331_v40 = vsel %vm5466_vm2, 0, %v3251_v24 }
 0x20a   :  { %v4934_v41 = vcombine.low %v3330_v63, %v3331_v40 }
 0x20b   :  { %v7290_v49 = vpack.c.bf16 %v2225_v2, %v2224_v44 }
 0x20c   :  { %3740 = vmatmul.mubr.bf16.gmra.mrb[12].mxu1 %v4934_v41 }
 0x20d   :  { %v2360_v35 = vrot.slane %v7290_v49, 1  ;;  %v2780_v20 = vshrl.u32 %v7290_v49, 16  ;;  %v7295_v54 = vshll.u32 %v7290_v49, 16  ;;  %v2408_v60 = vrot.slane %v7290_v49, 2 }
 0x20e   :  { %v2456_v30 = vrot.slane %v7290_v49, 3  ;;  %v2916_v9 = vrot.slane %v7290_v49, 4 }
 0x20f   :  { %v2836_v13 = vrot.slane %v2780_v20, 1  ;;  %v2948_v47 = vsel %vm5466_vm2, %v2780_v20, %v2360_v35  ;;  %v2291_v15 = vrot.slane %v7295_v54, 1  ;;  %v2868_v42 = vrot.slane %v2780_v20, 2 }
 0x210   :  { %v2376_v43 = vrot.slane %v7295_v54, 2  ;;  %v2900_v46 = vrot.slane %v2780_v20, 3  ;;  %v2424_v61 = vrot.slane %v7295_v54, 3  ;;  %v2472_v45 = vrot.slane %v7295_v54, 4  ;;  %v5313_v54 = vld [vmem:[%s8152_s3 + $0xb8] sm:$0xff]  }
 0x211   :  { %v2990_v50 = vsel %vm347_vm0, %v2948_v47, %v2836_v13  ;;  %v2504_v53 = vsel %vm5466_vm2, %v7290_v49, %v2291_v15  ;;  %5252 = vmatprep.subr.bf16.mxu1 %v5313_v54 }
 0x212   :  { %v3028_v17 = vsel %vm6911_vm15, %v2990_v50, %v2408_v60  ;;  %v2547_v1 = vsel %vm347_vm0, %v2504_v53, %v2360_v35  ;;  %5253 = vmatpush3.bf16.msra.mxu1 %v5313_v54 }
 0x213   :  { %v3070_v27 = vsel %vm2577_vm13, %v3028_v17, %v2868_v42  ;;  %v2588_v10 = vsel %vm6911_vm15, %v2547_v1, %v2376_v43 }
 0x214   :  { %v3108_v56 = vsel %vm6929_vm4, %v3070_v27, %v2456_v30  ;;  %v2631_v48 = vsel %vm2577_vm13, %v2588_v10, %v2408_v60 }
 0x215   :  { %v3150_v3 = vsel %vm2661_vm1, %v3108_v56, %v2900_v46  ;;  %v2672_v49 = vsel %vm6929_vm4, %v2631_v48, %v2424_v61 }
 0x216   :  { %v7337_v12 = vsel %vm6950_vm10, %v3150_v3, %v2916_v9  ;;  %v2715_v11 = vsel %vm2661_vm1, %v2672_v49, %v2456_v30 }
 0x217   :  { %v3253_v13 = vshrl.u32 %v7337_v12, 16 }
 0x218   :  { %v2153_v62 = vpop.f32.mrb[36].mxu0 }
 0x219   :  { %v2154_v0 = vadd.f32 %v7313_v21, %v2153_v62  ;;  %v2155_v4 = vpop.f32.mrb[37].mxu0 }
 0x21a   :  { %v2156_v39 = vpop.f32.mrb[38].mxu0 }
 0x21b   :  { %v2157_v25 = vadd.f32 %v7313_v21, %v2156_v39  ;;  %v2158_v32 = vpop.f32.mrb[39].mxu0  ;;  %v2226_v7 = vmax.f32 %v2154_v0, 0.0 }
 0x21c   :  { %v2756_v32 = vsel %vm6950_vm10, %v2715_v11, %v2472_v45 }
 0x21d   :  { %v2227_v29 = vmax.f32 %v2157_v25, 0.0  ;;  %v3255_v25 = vrot.slane %v3253_v13, 7 }
 0x21f   :  { %v2249_v51 = vpack.c.bf16 %v2227_v29, %v2226_v7  ;;  %v3256_v29 = vshll.u32 %v7337_v12, 16 }
 0x221   :  { %v2293_v28 = vshll.u32 %v2249_v51, 16  ;;  %v2361_v8 = vrot.slane %v2249_v51, 1  ;;  %v2782_v52 = vshrl.u32 %v2249_v51, 16  ;;  %v2409_v63 = vrot.slane %v2249_v51, 2 }
 0x222   :  { %v2457_v50 = vrot.slane %v2249_v51, 3  ;;  %v2917_v4 = vrot.slane %v2249_v51, 4  ;;  %v3258_v3 = vor.u32 %v3256_v29, %v3255_v25 }
 0x223   :  { %v2295_v19 = vrot.slane %v2293_v28, 1  ;;  %v2837_v24 = vrot.slane %v2782_v52, 1  ;;  %v2949_v44 = vsel %vm5466_vm2, %v2782_v52, %v2361_v8  ;;  %v2377_v2 = vrot.slane %v2293_v28, 2 }
 0x224   :  { %v2869_v35 = vrot.slane %v2782_v52, 2  ;;  %v2425_v47 = vrot.slane %v2293_v28, 3  ;;  %v2901_v59 = vrot.slane %v2782_v52, 3  ;;  %v2473_v42 = vrot.slane %v2293_v28, 4 }
 0x225   :  { %v2505_v40 = vsel %vm5466_vm2, %v2249_v51, %v2295_v19  ;;  %v2994_v20 = vsel %vm347_vm0, %v2949_v44, %v2837_v24  ;;  %v3332_v45 = vsel %vm5466_vm2, 0, %v3258_v3 }
 0x226   :  { %v2551_v41 = vsel %vm347_vm0, %v2505_v40, %v2361_v8  ;;  %v3029_v60 = vsel %vm6911_vm15, %v2994_v20, %v2409_v63 }
 0x227   :  { %v2589_v15 = vsel %vm6911_vm15, %v2551_v41, %v2377_v2  ;;  %v3074_v62 = vsel %vm2577_vm13, %v3029_v60, %v2869_v35 }
 0x228   :  { %v2635_v17 = vsel %vm2577_vm13, %v2589_v15, %v2409_v63  ;;  %v3109_v53 = vsel %vm6929_vm4, %v3074_v62, %v2457_v50 }
 0x229   :  { %v2673_v0 = vsel %vm6929_vm4, %v2635_v17, %v2425_v47  ;;  %v3154_v27 = vsel %vm2661_vm1, %v3109_v53, %v2901_v59 }
 0x22a   :  { %v2719_v39 = vsel %vm2661_vm1, %v2673_v0, %v2457_v50  ;;  %v7371_v38 = vsel %vm6950_vm10, %v3154_v27, %v2917_v4 }
 0x22b   :  { %v2757_v30 = vsel %vm6950_vm10, %v2719_v39, %v2473_v42  ;;  %v3260_v43 = vshrl.u32 %v7371_v38, 16  ;;  %v4939_v56 = vcombine.low %v7337_v12, %v7371_v38  ;;  %v3263_v8 = vshll.u32 %v7371_v38, 16 }
 0x22c   :  { %v2161_v1 = vpop.f32.mrb[40].mxu0  ;;  %v4938_v7 = vcombine.low %v2756_v32, %v2757_v30 }
 0x22d   :  { %v2162_v46 = vadd.f32 %v7313_v21, %v2161_v1  ;;  %v2163_v51 = vpop.f32.mrb[41].mxu0  ;;  %v3262_v28 = vrot.slane %v3260_v43, 7 }
 0x22e   :  { %v2164_v10 = vpop.f32.mrb[42].mxu0  ;;  %3747 = vmatprep.mubr.bf16.mxu1 %v4938_v7 }
 0x22f   :  { %v2165_v9 = vadd.f32 %v7313_v21, %v2164_v10  ;;  %v2166_v48 = vpop.f32.mrb[43].mxu0  ;;  %v3265_v52 = vor.u32 %v3263_v8, %v3262_v28  ;;  %v2228_v19 = vmax.f32 %v2162_v46, 0.0 }
 0x231   :  { %v2229_v61 = vmax.f32 %v2165_v9, 0.0  ;;  %v3333_v24 = vsel %vm5466_vm2, 0, %v3265_v52 }
 0x232   :  { %v4937_v2 = vcombine.low %v3332_v45, %v3333_v24 }
 0x233   :  { %v2250_v44 = vpack.c.bf16 %v2229_v61, %v2228_v19 }
 0x234   :  { %3748 = vmatmul.mubr.bf16.gmra.mrb[16].mxu1 %v4937_v2 }
 0x235   :  { %v2362_v63 = vrot.slane %v2250_v44, 1  ;;  %v2784_v40 = vshrl.u32 %v2250_v44, 16  ;;  %v2297_v41 = vshll.u32 %v2250_v44, 16  ;;  %v2410_v54 = vrot.slane %v2250_v44, 2 }
 0x236   :  { %v2458_v4 = vrot.slane %v2250_v44, 3  ;;  %v2918_v51 = vrot.slane %v2250_v44, 4 }
 0x237   :  { %v2838_v49 = vrot.slane %v2784_v40, 1  ;;  %v2950_v35 = vsel %vm5466_vm2, %v2784_v40, %v2362_v63  ;;  %v2299_v13 = vrot.slane %v2297_v41, 1  ;;  %v2870_v15 = vrot.slane %v2784_v40, 2 }
 0x238   :  { %v2378_v25 = vrot.slane %v2297_v41, 2  ;;  %v2902_v30 = vrot.slane %v2784_v40, 3  ;;  %v2426_v8 = vrot.slane %v2297_v41, 3  ;;  %v2474_v48 = vrot.slane %v2297_v41, 4 }
 0x239   :  { %v2998_v20 = vsel %vm347_vm0, %v2950_v35, %v2838_v49  ;;  %v2506_v11 = vsel %vm5466_vm2, %v2250_v44, %v2299_v13 }
 0x23a   :  { %v3030_v47 = vsel %vm6911_vm15, %v2998_v20, %v2410_v54  ;;  %v2555_v53 = vsel %vm347_vm0, %v2506_v11, %v2362_v63 }
 0x23b   :  { %v3078_v62 = vsel %vm2577_vm13, %v3030_v47, %v2870_v15  ;;  %v2590_v7 = vsel %vm6911_vm15, %v2555_v53, %v2378_v25 }
 0x23c   :  { %v3110_v32 = vsel %vm6929_vm4, %v3078_v62, %v2458_v4  ;;  %v2639_v10 = vsel %vm2577_vm13, %v2590_v7, %v2410_v54 }
 0x23d   :  { %v3158_v29 = vsel %vm2661_vm1, %v3110_v32, %v2902_v30  ;;  %v2674_v44 = vsel %vm6929_vm4, %v2639_v10, %v2426_v8 }
 0x23e   :  { %v7403_v9 = vsel %vm6950_vm10, %v3158_v29, %v2918_v51  ;;  %v2723_v47 = vsel %vm2661_vm1, %v2674_v44, %v2458_v4 }
 0x23f   :  { %v3267_v49 = vshrl.u32 %v7403_v9, 16  ;;  %v2758_v53 = vsel %vm6950_vm10, %v2723_v47, %v2474_v48  ;;  %v3270_v32 = vshll.u32 %v7403_v9, 16 }
 0x240   :  { %v2169_v50 = vpop.f32.mrb[44].mxu0 }
 0x241   :  { %v2170_v60 = vadd.f32 %v7313_v21, %v2169_v50  ;;  %v2171_v17 = vpop.f32.mrb[45].mxu0 }
 0x242   :  { %v2172_v59 = vpop.f32.mrb[46].mxu0 }
 0x243   :  { %v2173_v42 = vadd.f32 %v7313_v21, %v2172_v59  ;;  %v2174_v0 = vpop.f32.mrb[47].mxu0  ;;  %v2230_v39 = vmax.f32 %v2170_v60, 0.0 }
 0x244   :  { %v3269_v0 = vrot.slane %v3267_v49, 7 }
 0x245   :  { %v2231_v27 = vmax.f32 %v2173_v42, 0.0 }
 0x247   :  { %v2251_v1 = vpack.c.bf16 %v2231_v27, %v2230_v39 }
 0x249   :  { %v2301_v43 = vshll.u32 %v2251_v1, 16  ;;  %v2363_v46 = vrot.slane %v2251_v1, 1  ;;  %v2786_v3 = vshrl.u32 %v2251_v1, 16  ;;  %v2411_v45 = vrot.slane %v2251_v1, 2 }
 0x24a   :  { %v2459_v35 = vrot.slane %v2251_v1, 3  ;;  %v2919_v11 = vrot.slane %v2251_v1, 4 }
 0x24b   :  { %v2303_v28 = vrot.slane %v2301_v43, 1  ;;  %v2839_v52 = vrot.slane %v2786_v3, 1  ;;  %v2951_v19 = vsel %vm5466_vm2, %v2786_v3, %v2363_v46  ;;  %v2379_v61 = vrot.slane %v2301_v43, 2 }
 0x24c   :  { %v2871_v63 = vrot.slane %v2786_v3, 2  ;;  %v2427_v41 = vrot.slane %v2301_v43, 3  ;;  %v2903_v50 = vrot.slane %v2786_v3, 3  ;;  %v2475_v60 = vrot.slane %v2301_v43, 4 }
 0x24d   :  { %v2507_v24 = vsel %vm5466_vm2, %v2251_v1, %v2303_v28  ;;  %v3002_v40 = vsel %vm347_vm0, %v2951_v19, %v2839_v52 }
 0x24e   :  { %v2559_v2 = vsel %vm347_vm0, %v2507_v24, %v2363_v46  ;;  %v3031_v13 = vsel %vm6911_vm15, %v3002_v40, %v2411_v45  ;;  %v3272_v46 = vor.u32 %v3270_v32, %v3269_v0 }
 0x24f   :  { %v2591_v20 = vsel %vm6911_vm15, %v2559_v2, %v2379_v61  ;;  %v3082_v15 = vsel %vm2577_vm13, %v3031_v13, %v2871_v63 }
 0x250   :  { %v2643_v54 = vsel %vm2577_vm13, %v2591_v20, %v2411_v45  ;;  %v3111_v59 = vsel %vm6929_vm4, %v3082_v15, %v2459_v35  ;;  %v3334_v19 = vsel %vm5466_vm2, 0, %v3272_v46 }
 0x251   :  { %v2675_v17 = vsel %vm6929_vm4, %v2643_v54, %v2427_v41  ;;  %v3162_v42 = vsel %vm2661_vm1, %v3111_v59, %v2903_v50 }
 0x252   :  { %v2727_v62 = vsel %vm2661_vm1, %v2675_v17, %v2459_v35  ;;  %v7433_v39 = vsel %vm6950_vm10, %v3162_v42, %v2919_v11 }
 0x253   :  { %v2759_v4 = vsel %vm6950_vm10, %v2727_v62, %v2475_v60  ;;  %v3274_v30 = vshrl.u32 %v7433_v39, 16  ;;  %v4942_v1 = vcombine.low %v7403_v9, %v7433_v39  ;;  %v3277_v10 = vshll.u32 %v7433_v39, 16  ;;  %v5320_v39 = vld [vmem:[%s8154_s5 + $0x40] sm:$0xff]  }
 0x254   :  { %v2177_v27 = vpop.f32.mrb[48].mxu0  ;;  %v4941_v25 = vcombine.low %v2758_v53, %v2759_v4  ;;  %5150 = vmatprep.subr.bf16.mxu1 %v5320_v39 }
 0x255   :  { %v2178_v7 = vadd.f32 %v7313_v21, %v2177_v27  ;;  %v2179_v29 = vpop.f32.mrb[49].mxu0  ;;  %v3276_v51 = vrot.slane %v3274_v30, 7 }
 0x256   :  { %v2180_v43 = vpop.f32.mrb[50].mxu0  ;;  %3755 = vmatprep.mubr.bf16.mxu1 %v4941_v25 }
 0x257   :  { %v2181_v3 = vadd.f32 %v7313_v21, %v2180_v43  ;;  %v2182_v28 = vpop.f32.mrb[51].mxu0  ;;  %v3279_v8 = vor.u32 %v3277_v10, %v3276_v51  ;;  %v2232_v48 = vmax.f32 %v2178_v7, 0.0 }
 0x259   :  { %v2233_v52 = vmax.f32 %v2181_v3, 0.0  ;;  %v3335_v61 = vsel %vm5466_vm2, 0, %v3279_v8 }
 0x25a   :  { %v4940_v24 = vcombine.low %v3334_v19, %v3335_v61 }
 0x25b   :  { %v7446_v45 = vpack.c.bf16 %v2233_v52, %v2232_v48 }
 0x25c   :  { %3756 = vmatmul.mubr.bf16.gmra.mrb[20].mxu1 %v4940_v24 }
 0x25d   :  { %v2364_v44 = vrot.slane %v7446_v45, 1  ;;  %v2788_v2 = vshrl.u32 %v7446_v45, 16  ;;  %v7451_v40 = vshll.u32 %v7446_v45, 16  ;;  %v2412_v20 = vrot.slane %v7446_v45, 2 }
 0x25e   :  { %v2460_v25 = vrot.slane %v7446_v45, 3  ;;  %v2920_v52 = vrot.slane %v7446_v45, 4 }
 0x25f   :  { %v2840_v63 = vrot.slane %v2788_v2, 1  ;;  %v2952_v49 = vsel %vm5466_vm2, %v2788_v2, %v2364_v44  ;;  %v2307_v35 = vrot.slane %v7451_v40, 1  ;;  %v2872_v50 = vrot.slane %v2788_v2, 2 }
 0x260   :  { %v2380_v43 = vrot.slane %v7451_v40, 2  ;;  %v2904_v51 = vrot.slane %v2788_v2, 3  ;;  %v2476_v2 = vrot.slane %v7451_v40, 4 }
 0x261   :  { %v3006_v41 = vsel %vm347_vm0, %v2952_v49, %v2840_v63  ;;  %v2508_v11 = vsel %vm5466_vm2, %v7446_v45, %v2307_v35 }
 0x262   :  { %v3032_v13 = vsel %vm6911_vm15, %v3006_v41, %v2412_v20  ;;  %v2563_v30 = vsel %vm347_vm0, %v2508_v11, %v2364_v44  ;;  %v2428_v44 = vrot.slane %v7451_v40, 3 }
 0x263   :  { %v3086_v0 = vsel %vm2577_vm13, %v3032_v13, %v2872_v50  ;;  %v2592_v3 = vsel %vm6911_vm15, %v2563_v30, %v2380_v43 }
 0x264   :  { %v3112_v46 = vsel %vm6929_vm4, %v3086_v0, %v2460_v25  ;;  %v2647_v19 = vsel %vm2577_vm13, %v2592_v3, %v2412_v20 }
 0x265   :  { %v3166_v28 = vsel %vm2661_vm1, %v3112_v46, %v2904_v51  ;;  %v2676_v20 = vsel %vm6929_vm4, %v2647_v19, %v2428_v44 }
 0x266   :  { %v7483_v63 = vsel %vm6950_vm10, %v3166_v28, %v2920_v52 }
 0x267   :  { %v5086_v54 = vpop.f32.mrb[0].mxu1 }
 0x268   :  { %v2185_v47 = vpop.f32.mrb[52].mxu0  ;;  %v5087_v60 = vpop.f32.mrb[1].mxu1 }
 0x269   :  { %v2186_v15 = vadd.f32 %v7313_v21, %v2185_v47  ;;  %v2187_v17 = vpop.f32.mrb[53].mxu0  ;;  %v7464_v59 = vadd.f32 %v5087_v60, %v5086_v54  ;;  %v5089_v62 = vpop.f32.mrb[2].mxu1 }
 0x26a   :  { %v2188_v42 = vpop.f32.mrb[54].mxu0  ;;  %v5090_v4 = vpop.f32.mrb[3].mxu1 }
 0x26b   :  { %v2189_v53 = vadd.f32 %v7313_v21, %v2188_v42  ;;  %v2190_v27 = vpop.f32.mrb[55].mxu0  ;;  %v7469_v32 = vadd.f32 %v5090_v4, %v5089_v62  ;;  %v2234_v7 = vmax.f32 %v2186_v15, 0.0  ;;  %v3281_v15 = vshrl.u32 %v7483_v63, 16 }
 0x26c   :  { %v2731_v42 = vsel %vm2661_vm1, %v2676_v20, %v2460_v25 }
 0x26d   :  { %v2235_v29 = vmax.f32 %v2189_v53, 0.0  ;;  %v3283_v46 = vrot.slane %v3281_v15, 7  ;;  %v2760_v51 = vsel %vm6950_vm10, %v2731_v42, %v2476_v2 }
 0x26f   :  { %v2253_v10 = vpack.c.bf16 %v2235_v29, %v2234_v7 }
 0x271   :  { %v2309_v8 = vshll.u32 %v2253_v10, 16  ;;  %v2365_v48 = vrot.slane %v2253_v10, 1  ;;  %v2790_v61 = vshrl.u32 %v2253_v10, 16  ;;  %v2413_v13 = vrot.slane %v2253_v10, 2 }
 0x272   :  { %v2461_v60 = vrot.slane %v2253_v10, 3  ;;  %v2921_v30 = vrot.slane %v2253_v10, 4 }
 0x273   :  { %v2311_v24 = vrot.slane %v2309_v8, 1  ;;  %v2841_v49 = vrot.slane %v2790_v61, 1  ;;  %v2953_v41 = vsel %vm5466_vm2, %v2790_v61, %v2365_v48  ;;  %v2381_v35 = vrot.slane %v2309_v8, 2 }
 0x274   :  { %v2873_v47 = vrot.slane %v2790_v61, 2  ;;  %v2429_v40 = vrot.slane %v2309_v8, 3  ;;  %v2905_v0 = vrot.slane %v2790_v61, 3  ;;  %v2477_v4 = vrot.slane %v2309_v8, 4 }
 0x275   :  { %v2509_v45 = vsel %vm5466_vm2, %v2253_v10, %v2311_v24  ;;  %v3010_v50 = vsel %vm347_vm0, %v2953_v41, %v2841_v49  ;;  %v3284_v8 = vshll.u32 %v7483_v63, 16 }
 0x276   :  { %v2567_v54 = vsel %vm347_vm0, %v2509_v45, %v2365_v48  ;;  %v3033_v11 = vsel %vm6911_vm15, %v3010_v50, %v2413_v13 }
 0x277   :  { %v2593_v17 = vsel %vm6911_vm15, %v2567_v54, %v2381_v35  ;;  %v3090_v53 = vsel %vm2577_vm13, %v3033_v11, %v2873_v47  ;;  %v3286_v44 = vor.u32 %v3284_v8, %v3283_v46 }
 0x278   :  { %v2651_v62 = vsel %vm2577_vm13, %v2593_v17, %v2413_v13  ;;  %v3113_v7 = vsel %vm6929_vm4, %v3090_v53, %v2461_v60 }
 0x279   :  { %v2677_v27 = vsel %vm6929_vm4, %v2651_v62, %v2429_v40  ;;  %v3170_v43 = vsel %vm2661_vm1, %v3113_v7, %v2905_v0  ;;  %v3336_v54 = vsel %vm5466_vm2, 0, %v3286_v44 }
 0x27a   :  { %v2735_v29 = vsel %vm2661_vm1, %v2677_v27, %v2461_v60  ;;  %v7514_v3 = vsel %vm6950_vm10, %v3170_v43, %v2921_v30 }
 0x27b   :  { %v2761_v25 = vsel %vm6950_vm10, %v2735_v29, %v2477_v4  ;;  %v3288_v48 = vshrl.u32 %v7514_v3, 16  ;;  %v4945_v52 = vcombine.low %v7483_v63, %v7514_v3  ;;  %v3291_v49 = vshll.u32 %v7514_v3, 16  ;;  %v5322_v63 = vld [vmem:[%s8154_s5 + $0x48] sm:$0xff]   ;;  %v5318_v3 = vld [vmem:[%s8154_s5 + $0x150] sm:$0xff]  }
 0x27c   :  { %v2193_v28 = vpop.f32.mrb[56].mxu0  ;;  %v4944_v10 = vcombine.low %v2760_v51, %v2761_v25 }
 0x27d   :  { %v2194_v19 = vadd.f32 %v7313_v21, %v2193_v28  ;;  %v2195_v61 = vpop.f32.mrb[57].mxu0  ;;  %v3290_v2 = vrot.slane %v3288_v48, 7 }
 0x27e   :  { %v2196_v24 = vpop.f32.mrb[58].mxu0  ;;  %3763 = vmatprep.mubr.bf16.mxu1 %v4944_v10 }
 0x27f   :  { %v2197_v41 = vadd.f32 %v7313_v21, %v2196_v24  ;;  %v2198_v35 = vpop.f32.mrb[59].mxu0  ;;  %v3293_v13 = vor.u32 %v3291_v49, %v3290_v2  ;;  %v2236_v45 = vmax.f32 %v2194_v19, 0.0 }
 0x281   :  { %v2237_v20 = vmax.f32 %v2197_v41, 0.0  ;;  %v3337_v47 = vsel %vm5466_vm2, 0, %v3293_v13 }
 0x282   :  { %v4943_v15 = vcombine.low %v3336_v54, %v3337_v47 }
 0x283   :  { %v7527_v50 = vpack.c.bf16 %v2237_v20, %v2236_v45 }
 0x284   :  { %3764 = vmatmul.mubr.bf16.gmra.mrb[24].mxu1 %v4943_v15 }
 0x285   :  { %v2366_v40 = vrot.slane %v7527_v50, 1  ;;  %v2792_v60 = vshrl.u32 %v7527_v50, 16  ;;  %v7532_v11 = vshll.u32 %v7527_v50, 16  ;;  %v2414_v53 = vrot.slane %v7527_v50, 2 }
 0x286   :  { %v2462_v24 = vrot.slane %v7527_v50, 3 }
 0x287   :  { %v2842_v17 = vrot.slane %v2792_v60, 1  ;;  %v2954_v62 = vsel %vm5466_vm2, %v2792_v60, %v2366_v40  ;;  %v2315_v0 = vrot.slane %v7532_v11, 1  ;;  %v2874_v7 = vrot.slane %v2792_v60, 2 }
 0x288   :  { %v2382_v35 = vrot.slane %v7532_v11, 2  ;;  %v2906_v45 = vrot.slane %v2792_v60, 3  ;;  %v2478_v60 = vrot.slane %v7532_v11, 4 }
 0x289   :  { %v3014_v42 = vsel %vm347_vm0, %v2954_v62, %v2842_v17  ;;  %v2510_v51 = vsel %vm5466_vm2, %v7527_v50, %v2315_v0  ;;  %v2922_v17 = vrot.slane %v7527_v50, 4  ;;  %v2430_v0 = vrot.slane %v7532_v11, 3 }
 0x28a   :  { %v3034_v4 = vsel %vm6911_vm15, %v3014_v42, %v2414_v53  ;;  %v2571_v2 = vsel %vm347_vm0, %v2510_v51, %v2366_v40 }
 0x28b   :  { %v3094_v8 = vsel %vm2577_vm13, %v3034_v4, %v2874_v7 }
 0x28c   :  { %v3114_v13 = vsel %vm6929_vm4, %v3094_v8, %v2462_v24 }
 0x28d   :  { %v3174_v54 = vsel %vm2661_vm1, %v3114_v13, %v2906_v45 }
 0x28e   :  { %v3194_v4 = vsel %vm6950_vm10, %v3174_v54, %v2922_v17 }
 0x28f   :  { %v5092_v27 = vpop.f32.mrb[4].mxu1 }
 0x290   :  { %v2201_v30 = vpop.f32.mrb[60].mxu0  ;;  %v5093_v43 = vpop.f32.mrb[5].mxu1 }
 0x291   :  { %v2202_v29 = vadd.f32 %v7313_v21, %v2201_v30  ;;  %v2203_v46 = vpop.f32.mrb[61].mxu0  ;;  %v7545_v25 = vadd.f32 %v5093_v43, %v5092_v27  ;;  %v5095_v28 = vpop.f32.mrb[6].mxu1 }
 0x292   :  { %v2204_v10 = vpop.f32.mrb[62].mxu0  ;;  %v5096_v19 = vpop.f32.mrb[7].mxu1 }
 0x293   :  { %v2205_v48 = vadd.f32 %v7313_v21, %v2204_v10  ;;  %v2206_v61 = vpop.f32.mrb[63].mxu0  ;;  %v7550_v44 = vadd.f32 %v5096_v19, %v5095_v28  ;;  %v2238_v49 = vmax.f32 %v2202_v29, 0.0  ;;  %v2594_v21 = vsel %vm6911_vm15, %v2571_v2, %v2382_v35 }
 0x294   :  { %v2655_v40 = vsel %vm2577_vm13, %v2594_v21, %v2414_v53  ;;  %v3295_v28 = vshrl.u32 %v3194_v4, 16 }
 0x295   :  { %v2239_v41 = vmax.f32 %v2205_v48, 0.0  ;;  %v2678_v53 = vsel %vm6929_vm4, %v2655_v40, %v2430_v0  ;;  %v3298_v40 = vshll.u32 %v3194_v4, 16 }
 0x296   :  { %v2739_v61 = vsel %vm2661_vm1, %v2678_v53, %v2462_v24  ;;  %v3297_v54 = vrot.slane %v3295_v28, 7  ;;  %v5326_v28 = vld [vmem:[%s8154_s5 + $0x58] sm:$0xff]  }
 0x297   :  { %v2255_v20 = vpack.c.bf16 %v2239_v41, %v2238_v49 }
 0x298   :  { %v3300_v57 = vor.u32 %v3298_v40, %v3297_v54  ;;  %v5341_v54 = vld [vmem:[%s8154_s5 + $0x130] sm:$0xff]  }
 0x299   :  { %v2317_v47 = vshll.u32 %v2255_v20, 16  ;;  %v2367_v15 = vrot.slane %v2255_v20, 1  ;;  %v2794_v62 = vshrl.u32 %v2255_v20, 16  ;;  %v2415_v29 = vrot.slane %v2255_v20, 2 }
 0x29a   :  { %v2463_v11 = vrot.slane %v2255_v20, 3  ;;  %v2923_v13 = vrot.slane %v2255_v20, 4 }
 0x29b   :  { %v2319_v42 = vrot.slane %v2317_v47, 1  ;;  %v2843_v27 = vrot.slane %v2794_v62, 1  ;;  %v2955_v30 = vsel %vm5466_vm2, %v2794_v62, %v2367_v15  ;;  %v2383_v7 = vrot.slane %v2317_v47, 2 }
 0x29c   :  { %v2875_v46 = vrot.slane %v2794_v62, 2  ;;  %v2431_v10 = vrot.slane %v2317_v47, 3  ;;  %v2907_v2 = vrot.slane %v2794_v62, 3  ;;  %v2479_v41 = vrot.slane %v2317_v47, 4 }
 0x29d   :  { %v2511_v50 = vsel %vm5466_vm2, %v2255_v20, %v2319_v42  ;;  %v3018_v51 = vsel %vm347_vm0, %v2955_v30, %v2843_v27  ;;  %v3338_v30 = vsel %vm5466_vm2, 0, %v3300_v57 }
 0x29e   :  { %v2575_v43 = vsel %vm347_vm0, %v2511_v50, %v2367_v15  ;;  %v3035_v48 = vsel %vm6911_vm15, %v3018_v51, %v2415_v29  ;;  %v2762_v15 = vsel %vm6950_vm10, %v2739_v61, %v2478_v60  ;;  %v5325_v51 = vld [vmem:[%s8154_s5 + $0x10] sm:$0xff]   ;;  %v5332_v61 = vld [vmem:[%s8154_s5 + $0x20] sm:$0xff]   ;;  %vm3958_vm0 = vcmask 1041409  }
 0x29f   :  { %v2595_v8 = vsel %vm6911_vm15, %v2575_v43, %v2383_v7  ;;  %v3098_v49 = vsel %vm2577_vm13, %v3035_v48, %v2875_v46  ;;  %v5319_v43 = vld [vmem:[%s8154_s5 + $0x110] sm:$0xff]   ;;  %v5330_v48 = vld [vmem:[%s8154_s5 + $0x60] sm:$0xff]  }
 0x2a0   :  { %v2659_v19 = vsel %vm2577_vm13, %v2595_v8, %v2415_v29  ;;  %v3115_v45 = vsel %vm6929_vm4, %v3098_v49, %v2463_v11  ;;  %v5324_v46 = vld [vmem:[%s8154_s5 + $0x50] sm:$0xff]   ;;  %v5329_v8 = vld [vmem:[%s8154_s5 + $0x118] sm:$0xff]   ;;  %v5334_v49 = vld [vmem:[%s8154_s5 + $0x68] sm:$0xff]  }
 0x2a1   :  { %v2679_v35 = vsel %vm6929_vm4, %v2659_v19, %v2431_v10  ;;  %v3178_v36 = vsel %vm2661_vm1, %v3115_v45, %v2907_v2  ;;  %v5327_v10 = vld [vmem:[%s8154_s5 + $0x158] sm:$0xff]   ;;  %v5331_v19 = vld [vmem:[%s8154_s5 + $0x160] sm:$0xff]   ;;  %v5338_v45 = vld [vmem:[%s8154_s5 + $0x70] sm:$0xff]  }
 0x2a2   :  { %v2743_v21 = vsel %vm2661_vm1, %v2679_v35, %v2463_v11  ;;  %v3195_v47 = vsel %vm6950_vm10, %v3178_v36, %v2923_v13  ;;  %v5328_v11 = vld [vmem:[%s8154_s5 + $0x18] sm:$0xff]   ;;  %v5333_v2 = vld [vmem:[%s8154_s5 + $0x120] sm:$0xff]   ;;  %v5336_v35 = vld [vmem:[%s8154_s5 + $0x28] sm:$0xff]  }
 0x2a3   :  { %v2763_v24 = vsel %vm6950_vm10, %v2743_v21, %v2479_v41  ;;  %v3302_v20 = vshrl.u32 %v3195_v47, 16  ;;  %v4948_v62 = vcombine.low %v3194_v4, %v3195_v47  ;;  %v3305_v0 = vshll.u32 %v3195_v47, 16  ;;  %v5335_v41 = vld [vmem:[%s8154_s5 + $0x168] sm:$0xff]   ;;  %v5339_v21 = vld [vmem:[%s8154_s5 + $0x170] sm:$0xff]   ;;  %v5344_v47 = vld [vmem:[%s8154_s5 + $0x38] sm:$0xff]  }
 0x2a4   :  { %v4947_v17 = vcombine.low %v2762_v15, %v2763_v24  ;;  %v5337_v13 = vld [vmem:[%s8154_s5 + $0x128] sm:$0xff]   ;;  %v5340_v36 = vld [vmem:[%s8154_s5 + $0x30] sm:$0xff]   ;;  %v5342_v15 = vld [vmem:[%s8154_s5 + $0x78] sm:$0xff]   ;;  %vm3976_vm10 = vcmask 1047559  }
 0x2a5   :  { %v3304_v42 = vrot.slane %v3302_v20, 7  ;;  %v5343_v24 = vld [vmem:[%s8154_s5 + $0x178] sm:$0xff]  }
 0x2a6   :  { %3771 = vmatprep.mubr.bf16.mxu1 %v4947_v17  ;;  %v5345_v17 = vld [vmem:[%s8154_s5 + $0x138] sm:$0xff]  }
 0x2a7   :  { %v3307_v27 = vor.u32 %v3305_v0, %v3304_v42  ;;  %v5346_v0 = vld [vmem:[%s8154_s5 + $0xc0] sm:$0xff]  }
 0x2a9   :  { %v3339_v60 = vsel %vm5466_vm2, 0, %v3307_v27  ;;  %vm3961_vm2 = vcmask 1042434  }
 0x2aa   :  { %v4946_v7 = vcombine.low %v3338_v30, %v3339_v60 }
 0x2ac   :  { %3772 = vmatmul.mubr.bf16.gmra.mrb[28].mxu1 %v4946_v7 }
 0x2ad   :  { %5254 = vmatprep.mubr.bf16.mxu1 %v4927_v31 }
 0x2b4   :  { %5255 = vmatmul.mubr.bf16.vlgmr.msra.gmra.mrb[32].mxu1 %v4930_v16 }
 0x2b5   :  { %5258 = vmatprep.mubr.bf16.mxu1 %v4933_v18  ;;  %v5316_v18 = vld [vmem:[%s8154_s5 + $0x148] sm:$0xff]  }
 0x2b6   :  { %5196 = vmatprep.subr.bf16.mxu0 %v5316_v18 }
 0x2b7   :  { %v5098_v37 = vpop.f32.mrb[8].mxu1  ;;  %5197 = vmatpush3.bf16.msra.mxu0 %v5317_v34 }
 0x2b8   :  { %v5099_v4 = vpop.f32.mrb[9].mxu1  ;;  %5198 = vmatprep.subr.bf16.mxu0 %v5318_v3 }
 0x2b9   :  { %v7605_v29 = vadd.f32 %v5099_v4, %v5098_v37  ;;  %v5101_v23 = vpop.f32.mrb[10].mxu1 }
 0x2ba   :  { %v5102_v50 = vpop.f32.mrb[11].mxu1 }
 0x2bb   :  { %v7607_v53 = vadd.f32 %v5102_v50, %v5101_v23  ;;  %5199 = vmatpush3.bf16.msra.mxu0 %v5319_v43 }
 0x2bc   :  { %5259 = vmatmul.mubr.bf16.gmra.mrb[36].mxu1 %v4936_v26  ;;  %5200 = vmatprep.subr.bf16.mxu0 %v5327_v10 }
 0x2bd   :  { %5262 = vmatprep.mubr.bf16.mxu1 %v4939_v56 }
 0x2bf   :  { %5201 = vmatpush3.bf16.msra.mxu0 %v5329_v8 }
 0x2c0   :  { %5202 = vmatprep.subr.bf16.mxu0 %v5331_v19 }
 0x2c3   :  { %5203 = vmatpush3.bf16.msra.mxu0 %v5333_v2 }
 0x2c4   :  { %5263 = vmatmul.mubr.bf16.gmra.mrb[40].mxu1 %v4942_v1  ;;  %v5321_v1 = vld [vmem:[%s8154_s5] sm:$0xff]   ;;  %5204 = vmatprep.subr.bf16.mxu0 %v5335_v41 }
 0x2c5   :  { %5266 = vmatprep.mubr.bf16.mxu1 %v4945_v52  ;;  %5151 = vmatpush3.bf16.msra.mxu1 %v5321_v1  ;;  %v5323_v52 = vld [vmem:[%s8154_s5 + $0x8] sm:$0xff]  }
 0x2c6   :  { %5152 = vmatprep.subr.bf16.mxu1 %v5322_v63 }
 0x2c7   :  { %5205 = vmatpush3.bf16.msra.mxu0 %v5337_v13 }
 0x2c8   :  { %5206 = vmatprep.subr.bf16.mxu0 %v5339_v21 }
 0x2c9   :  { %5153 = vmatpush3.bf16.msra.mxu1 %v5323_v52 }
 0x2ca   :  { %5154 = vmatprep.subr.bf16.mxu1 %v5324_v46 }
 0x2cb   :  { %5207 = vmatpush3.bf16.msra.mxu0 %v5341_v54 }
 0x2cc   :  { %5267 = vmatmul.mubr.bf16.gmra.mrb[44].mxu1 %v4948_v62  ;;  %5208 = vmatprep.subr.bf16.mxu0 %v5343_v24 }
 0x2cd   :  { %5155 = vmatpush3.bf16.msra.mxu1 %v5325_v51 }
 0x2ce   :  { %5156 = vmatprep.subr.bf16.mxu1 %v5326_v28 }
 0x2cf   :  { %5209 = vmatpush3.bf16.msra.mxu0 %v5345_v17 }
 0x2d1   :  { %5157 = vmatpush3.bf16.msra.mxu1 %v5328_v11 }
 0x2d2   :  { %5158 = vmatprep.subr.bf16.mxu1 %v5330_v48 }
 0x2d5   :  { %5159 = vmatpush3.bf16.msra.mxu1 %v5332_v61 }
 0x2d6   :  { %5160 = vmatprep.subr.bf16.mxu1 %v5334_v49 }
 0x2d9   :  { %5161 = vmatpush3.bf16.msra.mxu1 %v5336_v35 }
 0x2da   :  { %5162 = vmatprep.subr.bf16.mxu1 %v5338_v45 }
 0x2dd   :  { %5163 = vmatpush3.bf16.msra.mxu1 %v5340_v36 }
 0x2de   :  { %5164 = vmatprep.subr.bf16.mxu1 %v5342_v15 }
 0x2df   :  { %v5104_v31 = vpop.f32.mrb[12].mxu1 }
 0x2e0   :  { %v5105_v33 = vpop.f32.mrb[13].mxu1 }
 0x2e1   :  { %v7627_v58 = vadd.f32 %v5105_v33, %v5104_v31  ;;  %v5107_v16 = vpop.f32.mrb[14].mxu1  ;;  %5165 = vmatpush3.bf16.msra.mxu1 %v5344_v47 }
 0x2e2   :  { %v5108_v22 = vpop.f32.mrb[15].mxu1  ;;  %5172 = vmatprep.subr.bf16.mxu1 %v5346_v0 }
 0x2e3   :  { %v7629_v5 = vadd.f32 %v5108_v22, %v5107_v16  ;;  %v4924_v22 = vld [vmem:[%s8155_s4] ss:$0 sm:$0xff] }
 0x2e4   :  { %v3726_v18 = vadd.f32 %v7545_v25, %v4924_v22  ;;  %v3721_v39 = vadd.f32 %v7469_v32, %v4924_v22  ;;  %v3742_v3 = vadd.f32 %v7627_v58, %v4924_v22  ;;  %v3734_v52 = vadd.f32 %v7605_v29, %v4924_v22 }
 0x2e5   :  { %v3737_v43 = vadd.f32 %v7607_v53, %v4924_v22  ;;  %v3745_v28 = vadd.f32 %v7629_v5, %v4924_v22 }
 0x307   :  { %v5110_v55 = vpop.f32.mrb[16].mxu1 }
 0x308   :  { %v5111_v26 = vpop.f32.mrb[17].mxu1 }
 0x309   :  { %v7637_v12 = vadd.f32 %v5111_v26, %v5110_v55  ;;  %v5113_v38 = vpop.f32.mrb[18].mxu1  ;;  %v3718_v55 = vadd.f32 %v7464_v59, %v4924_v22 }
 0x30a   :  { %v5114_v56 = vpop.f32.mrb[19].mxu1 }
 0x30b   :  { %v7639_v9 = vadd.f32 %v5114_v56, %v5113_v38  ;;  %v3729_v56 = vadd.f32 %v7550_v44, %v4924_v22  ;;  %v7740_v59 = vadd.f32 %v7637_v12, %v4924_v22 }
 0x30d   :  { %v7743_v32 = vadd.f32 %v7639_v9, %v4924_v22 }
 0x32f   :  { %v5116_v40 = vpop.f32.mrb[20].mxu1 }
 0x330   :  { %v5117_v20 = vpop.f32.mrb[21].mxu1 }
 0x331   :  { %v5118_v62 = vadd.f32 %v5117_v20, %v5116_v40  ;;  %v5119_v57 = vpop.f32.mrb[22].mxu1 }
 0x332   :  { %v5120_v42 = vpop.f32.mrb[23].mxu1 }
 0x333   :  { %v5121_v27 = vadd.f32 %v5120_v42, %v5119_v57  ;;  %v3758_v8 = vadd.f32 %v5118_v62, %v4924_v22 }
 0x335   :  { %v3761_v48 = vadd.f32 %v5121_v27, %v4924_v22 }
 0x357   :  { %v5122_v30 = vpop.f32.mrb[24].mxu1 }
 0x358   :  { %v5123_v60 = vpop.f32.mrb[25].mxu1 }
 0x359   :  { %v5124_v7 = vadd.f32 %v5123_v60, %v5122_v30  ;;  %v5125_v37 = vpop.f32.mrb[26].mxu1 }
 0x35a   :  { %v5126_v4 = vpop.f32.mrb[27].mxu1 }
 0x35b   :  { %v5127_v23 = vadd.f32 %v5126_v4, %v5125_v37  ;;  %v7747_v61 = vadd.f32 %v5124_v7, %v4924_v22 }
 0x35d   :  { %v7749_v12 = vadd.f32 %v5127_v23, %v4924_v22 }
 0x37f   :  { %v5128_v50 = vpop.f32.mrb[28].mxu1 }
 0x380   :  { %v5129_v14 = vpop.f32.mrb[29].mxu1 }
 0x381   :  { %v5130_v6 = vadd.f32 %v5129_v14, %v5128_v50  ;;  %v5131_v31 = vpop.f32.mrb[30].mxu1 }
 0x382   :  { %v5132_v33 = vpop.f32.mrb[31].mxu1 }
 0x383   :  { %v5133_v16 = vadd.f32 %v5132_v33, %v5131_v31  ;;  %v7753_v41 = vadd.f32 %v5130_v6, %v4924_v22 }
 0x385   :  { %v7755_v35 = vadd.f32 %v5133_v16, %v4924_v22 }
 0x387   :  { %v5256_v34 = vpop.f32.mrb[32].mxu1 }
 0x388   :  { %v3823_v26 = vadd.f32 %v5256_v34, %v3726_v18  ;;  %v3814_v38 = vpop.f32.mrb[33].mxu1 }
 0x389   :  { %v3815_v1 = vadd.f32 %v3814_v38, %v3718_v55  ;;  %v5257_v63 = vpop.f32.mrb[34].mxu1 }
 0x38a   :  { %v3879_v46 = vmax.f32 %v3823_v26, 0.0  ;;  %v3826_v51 = vadd.f32 %v5257_v63, %v3729_v56  ;;  %v3817_v25 = vpop.f32.mrb[35].mxu1 }
 0x38b   :  { %v3877_v10 = vmax.f32 %v3815_v1, 0.0  ;;  %v3818_v44 = vadd.f32 %v3817_v25, %v3721_v39 }
 0x38c   :  { %v5056_v11 = vpack.c.bf16 %v3879_v46, %v3879_v46  ;;  %v3880_v58 = vmax.f32 %v3826_v51, 0.0 }
 0x38d   :  { %v5054_v29 = vpack.c.bf16 %v3877_v10, %v3877_v10  ;;  %v3878_v53 = vmax.f32 %v3818_v44, 0.0 }
 0x38e   :  { %v7745_v19 = vunpack.c.l.b16 %v5056_v11  ;;  %v5057_v5 = vpack.c.bf16 %v3880_v58, %v3880_v58 }
 0x38f   :  { %v7751_v2 = vunpack.c.l.b16 %v5054_v29  ;;  %v5055_v9 = vpack.c.bf16 %v3878_v53, %v3878_v53  ;;  %v5260_v49 = vpop.f32.mrb[36].mxu1 }
 0x390   :  { %v7757_v13 = vunpack.c.l.b16 %v5057_v5  ;;  %v3839_v45 = vadd.f32 %v5260_v49, %v3742_v3  ;;  %v3830_v21 = vpop.f32.mrb[37].mxu1  ;;  %v4117_v36 = vrot.slane %v7745_v19, 3  ;;  %v3996_v54 = vrot.slane %v7745_v19, 7 }
 0x391   :  { %v7761_v15 = vunpack.c.l.b16 %v5055_v9  ;;  %v3831_v24 = vadd.f32 %v3830_v21, %v3734_v52  ;;  %v5261_v47 = vpop.f32.mrb[38].mxu1  ;;  %v4114_v17 = vrot.slane %v7751_v2, 5  ;;  %v3994_v40 = vrot.slane %v7751_v2, 1 }
 0x392   :  { %v3883_v20 = vmax.f32 %v3839_v45, 0.0  ;;  %v3842_v62 = vadd.f32 %v5261_v47, %v3745_v28  ;;  %v3833_v57 = vpop.f32.mrb[39].mxu1  ;;  %v4119_v42 = vrot.slane %v7757_v13, 2  ;;  %v3998_v0 = vrot.slane %v7757_v13, 6 }
 0x393   :  { %v3881_v27 = vmax.f32 %v3831_v24, 0.0  ;;  %v3834_v30 = vadd.f32 %v3833_v57, %v3737_v43  ;;  %v4115_v60 = vrot.slane %v7761_v15, 4  ;;  %v3995_v7 = vsel %vm3958_vm0, %v7761_v15, %v3994_v40 }
 0x394   :  { %v5060_v37 = vpack.c.bf16 %v3883_v20, %v3883_v20  ;;  %v3884_v4 = vmax.f32 %v3842_v62, 0.0  ;;  %v3997_v23 = vsel %vm3961_vm2, %v3996_v54, %v3995_v7  ;;  %v4084_v50 = vrot.slane %v7751_v2, 4 }
 0x395   :  { %v5058_v14 = vpack.c.bf16 %v3881_v27, %v3881_v27  ;;  %v3882_v6 = vmax.f32 %v3834_v30, 0.0  ;;  %v4116_v31 = vsel %vm3958_vm0, %v4115_v60, %v4114_v17  ;;  %v3999_v33 = vsel %vm3964_vm5, %v3998_v0, %v3997_v23 }
 0x396   :  { %v7774_v16 = vunpack.c.l.b16 %v5060_v37  ;;  %v5061_v22 = vpack.c.bf16 %v3884_v4, %v3884_v4  ;;  %v4118_v18 = vsel %vm3961_vm2, %v4117_v36, %v4116_v31  ;;  %v4085_v34 = vrot.slane %v7761_v15, 3 }
 0x397   :  { %v7778_v55 = vunpack.c.l.b16 %v5058_v14  ;;  %v5059_v26 = vpack.c.bf16 %v3882_v6, %v3882_v6  ;;  %v5264_v38 = vpop.f32.mrb[40].mxu1  ;;  %v4120_v56 = vsel %vm3964_vm5, %v4119_v42, %v4118_v18  ;;  %v4087_v39 = vrot.slane %v7745_v19, 2 }
 0x398   :  { %v7782_v1 = vunpack.c.l.b16 %v5061_v22  ;;  %v3855_v63 = vadd.f32 %v5264_v38, %v3758_v8  ;;  %v3846_v3 = vpop.f32.mrb[41].mxu1  ;;  %v4124_v52 = vrot.slane %v7774_v16, 7  ;;  %v4004_v43 = vrot.slane %v7774_v16, 3 }
 0x399   :  { %v7786_v46 = vunpack.c.l.b16 %v5059_v26  ;;  %v3847_v51 = vadd.f32 %v3846_v3, %v7740_v59  ;;  %v5265_v25 = vpop.f32.mrb[42].mxu1  ;;  %v4121_v28 = vrot.slane %v7778_v55, 1  ;;  %v4000_v10 = vrot.slane %v7778_v55, 5 }
 0x39a   :  { %v3887_v44 = vmax.f32 %v3855_v63, 0.0  ;;  %v3858_v11 = vadd.f32 %v5265_v25, %v3761_v48  ;;  %v3849_v58 = vpop.f32.mrb[43].mxu1  ;;  %v4126_v29 = vrot.slane %v7782_v1, 6  ;;  %v4006_v53 = vrot.slane %v7782_v1, 2 }
 0x39b   :  { %v3885_v8 = vmax.f32 %v3847_v51, 0.0  ;;  %v3850_v5 = vadd.f32 %v3849_v58, %v7743_v32  ;;  %v4122_v9 = vsel %vm3967_vm8, %v4121_v28, %v4120_v56  ;;  %v4001_v49 = vsel %vm3967_vm8, %v4000_v10, %v3999_v33 }
 0x39c   :  { %v5064_v59 = vpack.c.bf16 %v3887_v44, %v3887_v44  ;;  %v3888_v45 = vmax.f32 %v3858_v11, 0.0  ;;  %v4123_v21 = vsel %vm3970_vm6, %v7786_v46, %v4122_v9  ;;  %v4002_v36 = vrot.slane %v7786_v46, 4 }
 0x39d   :  { %v5062_v48 = vpack.c.bf16 %v3885_v8, %v3885_v8  ;;  %v3886_v54 = vmax.f32 %v3850_v5, 0.0  ;;  %v4125_v24 = vsel %vm3973_vm9, %v4124_v52, %v4123_v21  ;;  %v4086_v47 = vsel %vm3958_vm0, %v4085_v34, %v4084_v50 }
 0x39e   :  { %v7801_v17 = vunpack.c.l.b16 %v5064_v59  ;;  %v5065_v32 = vpack.c.bf16 %v3888_v45, %v3888_v45  ;;  %v7804_v40 = vsel %vm3976_vm10, %v4126_v29, %v4125_v24  ;;  %v4003_v20 = vsel %vm3970_vm6, %v4002_v36, %v4001_v49 }
 0x39f   :  { %v7807_v62 = vunpack.c.l.b16 %v5062_v48  ;;  %v5063_v57 = vpack.c.bf16 %v3886_v54, %v3886_v54  ;;  %v5268_v42 = vpop.f32.mrb[44].mxu1  ;;  %v4005_v0 = vsel %vm3973_vm9, %v4004_v43, %v4003_v20  ;;  %v4088_v27 = vsel %vm3961_vm2, %v4087_v39, %v4086_v47 }
 0x3a0   :  { %v7811_v30 = vunpack.c.l.b16 %v5065_v32  ;;  %v3871_v60 = vadd.f32 %v5268_v42, %v7753_v41  ;;  %v3862_v7 = vpop.f32.mrb[45].mxu1  ;;  %v4131_v37 = vrot.slane %v7801_v17, 3  ;;  %v7816_v4 = vsel %vm3976_vm10, %v4006_v53, %v4005_v0 }
 0x3a1   :  { %v7818_v23 = vunpack.c.l.b16 %v5063_v57  ;;  %v3863_v50 = vadd.f32 %v3862_v7, %v7747_v61  ;;  %v5269_v14 = vpop.f32.mrb[46].mxu1  ;;  %v4128_v6 = vrot.slane %v7807_v62, 5  ;;  %v4008_v31 = vrot.slane %v7807_v62, 1 }
 0x3a2   :  { %v3891_v33 = vmax.f32 %v3871_v60, 0.0  ;;  %v3874_v22 = vadd.f32 %v5269_v14, %v7755_v35  ;;  %v3865_v18 = vpop.f32.mrb[47].mxu1  ;;  %v4133_v41 = vrot.slane %v7811_v30, 2  ;;  %v4010_v34 = vrot.slane %v7801_v17, 7 }
 0x3a3   :  { %v3889_v26 = vmax.f32 %v3863_v50, 0.0  ;;  %v3866_v38 = vadd.f32 %v3865_v18, %v7749_v12  ;;  %v4129_v56 = vrot.slane %v7818_v23, 4  ;;  %v4009_v61 = vsel %vm3958_vm0, %v7818_v23, %v4008_v31 }
 0x3a4   :  { %v5068_v39 = vpack.c.bf16 %v3891_v33, %v3891_v33  ;;  %v3892_v63 = vmax.f32 %v3874_v22, 0.0  ;;  %v4011_v3 = vsel %vm3961_vm2, %v4010_v34, %v4009_v61  ;;  %v4012_v52 = vrot.slane %v7811_v30, 6 }
 0x3a5   :  { %v5066_v35 = vpack.c.bf16 %v3889_v26, %v3889_v26  ;;  %v3890_v43 = vmax.f32 %v3866_v38, 0.0  ;;  %v4130_v51 = vsel %vm3958_vm0, %v4129_v56, %v4128_v6  ;;  %v4089_v25 = vrot.slane %v7757_v13, 1 }
 0x3a6   :  { %v7834_v28 = vunpack.c.l.b16 %v5068_v39  ;;  %v5069_v12 = vpack.c.bf16 %v3892_v63, %v3892_v63  ;;  %v4132_v10 = vsel %vm3961_vm2, %v4131_v37, %v4130_v51  ;;  %v4013_v44 = vsel %vm3964_vm5, %v4012_v52, %v4011_v3 }
 0x3a7   :  { %v7838_v11 = vunpack.c.l.b16 %v5066_v35  ;;  %v5067_v58 = vpack.c.bf16 %v3890_v43, %v3890_v43  ;;  %v4134_v29 = vsel %vm3964_vm5, %v4133_v41, %v4132_v10  ;;  %v4090_v53 = vsel %vm3964_vm5, %v4089_v25, %v4088_v27 }
 0x3a8   :  { %v7842_v8 = vunpack.c.l.b16 %v5069_v12  ;;  %v4138_v5 = vrot.slane %v7834_v28, 7  ;;  %v4018_v9 = vrot.slane %v7834_v28, 3  ;;  %v4091_v49 = vsel %vm3967_vm8, %v7778_v55, %v4090_v53 }
 0x3a9   :  { %v7848_v59 = vunpack.c.l.b16 %v5067_v58  ;;  %v4135_v45 = vrot.slane %v7838_v11, 1  ;;  %v4014_v21 = vrot.slane %v7838_v11, 5  ;;  %v4092_v36 = vrot.slane %v7786_v46, 7 }
 0x3aa   :  { %v4140_v48 = vrot.slane %v7842_v8, 6  ;;  %v4020_v54 = vrot.slane %v7842_v8, 2  ;;  %v4094_v24 = vrot.slane %v7774_v16, 6  ;;  %v4096_v47 = vrot.slane %v7782_v1, 5 }
 0x3ab   :  { %v4136_v32 = vsel %vm3967_vm8, %v4135_v45, %v4134_v29  ;;  %v4015_v20 = vsel %vm3967_vm8, %v4014_v21, %v4013_v44  ;;  %v4016_v57 = vrot.slane %v7848_v59, 4  ;;  %v4093_v42 = vsel %vm3970_vm6, %v4092_v36, %v4091_v49 }
 0x3ac   :  { %v4137_v0 = vsel %vm3970_vm6, %v7848_v59, %v4136_v32  ;;  %v4095_v27 = vsel %vm3973_vm9, %v4094_v24, %v4093_v42  ;;  %v4098_v60 = vrot.slane %v7807_v62, 4  ;;  %v4099_v7 = vrot.slane %v7818_v23, 3 }
 0x3ad   :  { %v4139_v37 = vsel %vm3973_vm9, %v4138_v5, %v4137_v0  ;;  %v4017_v50 = vsel %vm3970_vm6, %v4016_v57, %v4015_v20  ;;  %v4097_v14 = vsel %vm3976_vm10, %v4096_v47, %v4095_v27  ;;  %v4101_v6 = vrot.slane %v7801_v17, 2 }
 0x3ae   :  { %v4141_v31 = vsel %vm3976_vm10, %v4140_v48, %v4139_v37  ;;  %v4019_v33 = vsel %vm3973_vm9, %v4018_v9, %v4017_v50  ;;  %v4100_v22 = vsel %vm3958_vm0, %v4099_v7, %v4098_v60  ;;  %v4103_v18 = vrot.slane %v7811_v30, 1 }
 0x3af   :  { %v4142_v41 = vpack.c.b16 %v4141_v31, %v7804_v40  ;;  %v4021_v34 = vsel %vm3976_vm10, %v4020_v54, %v4019_v33  ;;  %v4102_v26 = vsel %vm3961_vm2, %v4101_v6, %v4100_v22  ;;  %v4106_v38 = vrot.slane %v7848_v59, 7 }
 0x3b0   :  { %v4022_v56 = vpack.c.b16 %v4021_v34, %v7816_v4  ;;  %v4104_v61 = vsel %vm3964_vm5, %v4103_v18, %v4102_v26  ;;  %v4108_v39 = vrot.slane %v7834_v28, 6  ;;  %v4110_v63 = vrot.slane %v7842_v8, 5  ;;  %v5347_v34 = vld [vmem:[%s8154_s5 + $0x80] sm:$0xff]  }
 0x3b1   :  { %4837 = vmatprep.mubr.bf16.mxu0 %v4142_v41  ;;  %v4105_v3 = vsel %vm3967_vm8, %v7838_v11, %v4104_v61  ;;  %v3957_v40 = vrot.slane %v7761_v15, 7  ;;  %v3960_v52 = vrot.slane %v7745_v19, 6  ;;  %v3963_v35 = vrot.slane %v7757_v13, 5 }
 0x3b2   :  { %4755 = vmatprep.mubr.bf16.mxu1 %v4022_v56  ;;  %v4107_v43 = vsel %vm3970_vm6, %v4106_v38, %v4105_v3  ;;  %v3966_v4 = vrot.slane %v7778_v55, 4  ;;  %v3969_v51 = vrot.slane %v7786_v46, 3  ;;  %v3972_v25 = vrot.slane %v7774_v16, 2 }
 0x3b3   :  { %v4109_v12 = vsel %vm3973_vm9, %v4108_v39, %v4107_v43  ;;  %v3959_v10 = vsel %vm3958_vm0, %v3957_v40, %v7751_v2  ;;  %v3975_v44 = vrot.slane %v7782_v1, 1  ;;  %v3978_v58 = vrot.slane %v7818_v23, 7  ;;  %v5348_v40 = vld [vmem:[%s8154_s5 + $0xc8] sm:$0xff]  }
 0x3b4   :  { %v4111_v29 = vsel %vm3976_vm10, %v4110_v63, %v4109_v12  ;;  %v3962_v53 = vsel %vm3961_vm2, %v3960_v52, %v3959_v10  ;;  %v3980_v5 = vrot.slane %v7801_v17, 6  ;;  %v3982_v9 = vrot.slane %v7811_v30, 5 }
 0x3b5   :  { %v4112_v49 = vpack.c.b16 %v4111_v29, %v4097_v14  ;;  %v3965_v45 = vsel %vm3964_vm5, %v3963_v35, %v3962_v53  ;;  %v3979_v21 = vsel %vm3958_vm0, %v3978_v58, %v7807_v62  ;;  %v3984_v36 = vrot.slane %v7838_v11, 4  ;;  %v5349_v29 = vld [vmem:[%s8154_s5 + $0x88] sm:$0xff]  }
 0x3b6   :  { %v3968_v48 = vsel %vm3967_vm8, %v3966_v4, %v3965_v45  ;;  %v3981_v54 = vsel %vm3961_vm2, %v3980_v5, %v3979_v21  ;;  %v3986_v24 = vrot.slane %v7848_v59, 3  ;;  %v3988_v47 = vrot.slane %v7834_v28, 2  ;;  %v5350_v45 = vld [vmem:[%s8154_s5 + $0xd0] sm:$0xff]  }
 0x3b7   :  { %4838 = vmatmul.mubr.bf16.vlgmr.msra.gmra.mrb[64].mxu0 %v4112_v49  ;;  %v3971_v32 = vsel %vm3970_vm6, %v3969_v51, %v3968_v48  ;;  %v3983_v20 = vsel %vm3964_vm5, %v3982_v9, %v3981_v54  ;;  %v3990_v57 = vrot.slane %v7842_v8, 1  ;;  %v4054_v42 = vrot.slane %v7751_v2, 3 }
 0x3b8   :  { %v3974_v0 = vsel %vm3973_vm9, %v3972_v25, %v3971_v32  ;;  %v3985_v27 = vsel %vm3967_vm8, %v3984_v36, %v3983_v20  ;;  %v4055_v60 = vrot.slane %v7761_v15, 2  ;;  %v4057_v7 = vrot.slane %v7745_v19, 1 }
 0x3b9   :  { %v3977_v37 = vsel %vm3976_vm10, %v3975_v44, %v3974_v0  ;;  %v3987_v50 = vsel %vm3970_vm6, %v3986_v24, %v3985_v27  ;;  %v4060_v14 = vrot.slane %v7778_v55, 7  ;;  %v4062_v6 = vrot.slane %v7786_v46, 6  ;;  %v5351_v27 = vld [vmem:[%s8154_s5 + $0x90] sm:$0xff]  }
 0x3ba   :  { %v3989_v31 = vsel %vm3973_vm9, %v3988_v47, %v3987_v50  ;;  %v4056_v33 = vsel %vm3958_vm0, %v4055_v60, %v4054_v42  ;;  %v4064_v22 = vrot.slane %v7774_v16, 5  ;;  %v4066_v18 = vrot.slane %v7782_v1, 4 }
 0x3bb   :  { %v3991_v41 = vsel %vm3976_vm10, %v3990_v57, %v3989_v31  ;;  %v4058_v26 = vsel %vm3961_vm2, %v4057_v7, %v4056_v33  ;;  %v4068_v38 = vrot.slane %v7807_v62, 3  ;;  %v4069_v56 = vrot.slane %v7818_v23, 2 }
 0x3bc   :  { %v3992_v61 = vpack.c.b16 %v3991_v41, %v3977_v37  ;;  %v4059_v39 = vsel %vm3964_vm5, %v7757_v13, %v4058_v26  ;;  %v4071_v63 = vrot.slane %v7801_v17, 1  ;;  %v4074_v3 = vrot.slane %v7838_v11, 7 }
 0x3bd   :  { %v4061_v52 = vsel %vm3967_vm8, %v4060_v14, %v4059_v39  ;;  %v4070_v35 = vsel %vm3958_vm0, %v4069_v56, %v4068_v38  ;;  %v4076_v43 = vrot.slane %v7848_v59, 6  ;;  %v4078_v4 = vrot.slane %v7834_v28, 5  ;;  %v5352_v14 = vld [vmem:[%s8154_s5 + $0xd8] sm:$0xff]  }
 0x3be   :  { %4756 = vmatmul.mubr.bf16.vlgmr.msra.gmra.mrb[48].mxu1 %v3992_v61  ;;  %v4063_v51 = vsel %vm3970_vm6, %v4062_v6, %v4061_v52  ;;  %v4072_v25 = vsel %vm3961_vm2, %v4071_v63, %v4070_v35  ;;  %v4080_v12 = vrot.slane %v7842_v8, 4  ;;  %v4024_v10 = vrot.slane %v7751_v2, 2  ;;  %v5353_v39 = vld [vmem:[%s8154_s5 + $0x98] sm:$0xff]   ;;  %v5354_v35 = vld [vmem:[%s8154_s5 + $0xe0] sm:$0xff]  }
 0x3bf   :  { %5173 = vmatpush3.bf16.msra.mxu1 %v5347_v34  ;;  %v4065_v44 = vsel %vm3973_vm9, %v4064_v22, %v4063_v51  ;;  %v4073_v58 = vsel %vm3964_vm5, %v7811_v30, %v4072_v25  ;;  %v4025_v53 = vrot.slane %v7761_v15, 1  ;;  %v4028_v5 = vrot.slane %v7757_v13, 7 }
 0x3c0   :  { %v4067_v9 = vsel %vm3976_vm10, %v4066_v18, %v4065_v44  ;;  %v4075_v49 = vsel %vm3967_vm8, %v4074_v3, %v4073_v58  ;;  %5174 = vmatprep.subr.bf16.mxu1 %v5348_v40  ;;  %v4030_v21 = vrot.slane %v7778_v55, 6  ;;  %v4032_v36 = vrot.slane %v7786_v46, 5 }
 0x3c1   :  { %v4077_v48 = vsel %vm3970_vm6, %v4076_v43, %v4075_v49  ;;  %v4026_v54 = vsel %vm3958_vm0, %v4025_v53, %v4024_v10  ;;  %v4034_v24 = vrot.slane %v7774_v16, 4  ;;  %v4036_v47 = vrot.slane %v7782_v1, 3  ;;  %v5355_v49 = vld [vmem:[%s8154_s5 + $0xa0] sm:$0xff]  }
 0x3c2   :  { %v4079_v32 = vsel %vm3973_vm9, %v4078_v4, %v4077_v48  ;;  %v4027_v20 = vsel %vm3961_vm2, %v7745_v19, %v4026_v54  ;;  %v4038_v57 = vrot.slane %v7807_v62, 2  ;;  %v4039_v42 = vrot.slane %v7818_v23, 1  ;;  %v5356_v54 = vld [vmem:[%s8154_s5 + $0xe8] sm:$0xff]  }
 0x3c3   :  { %v4081_v0 = vsel %vm3976_vm10, %v4080_v12, %v4079_v32  ;;  %5175 = vmatpush3.bf16.msra.mxu1 %v5349_v29  ;;  %v4029_v60 = vsel %vm3964_vm5, %v4028_v5, %v4027_v20  ;;  %v4042_v7 = vrot.slane %v7811_v30, 7  ;;  %v4044_v37 = vrot.slane %v7838_v11, 6 }
 0x3c4   :  { %v4082_v50 = vpack.c.b16 %v4081_v0, %v4067_v9  ;;  %5176 = vmatprep.subr.bf16.mxu1 %v5350_v45  ;;  %v4031_v6 = vsel %vm3967_vm8, %v4030_v21, %v4029_v60  ;;  %v4040_v31 = vsel %vm3958_vm0, %v4039_v42, %v4038_v57  ;;  %v4046_v33 = vrot.slane %v7848_v59, 5 }
 0x3c5   :  { %v4033_v22 = vsel %vm3970_vm6, %v4032_v36, %v4031_v6  ;;  %v4041_v18 = vsel %vm3961_vm2, %v7801_v17, %v4040_v31  ;;  %v4048_v41 = vrot.slane %v7834_v28, 4  ;;  %v4050_v34 = vrot.slane %v7842_v8, 3 }
 0x3c6   :  { %4796 = vmatprep.mubr.bf16.mxu1 %v4082_v50  ;;  %v4035_v26 = vsel %vm3973_vm9, %v4034_v24, %v4033_v22  ;;  %v4043_v38 = vsel %vm3964_vm5, %v4042_v7, %v4041_v18  ;;  %v4174_v56 = vrot.slane %v7751_v2, 7  ;;  %v4175_v61 = vrot.slane %v7761_v15, 6 }
 0x3c7   :  { %5177 = vmatpush3.bf16.msra.mxu1 %v5351_v27  ;;  %v7996_v63 = vsel %vm3976_vm10, %v4036_v47, %v4035_v26  ;;  %v4045_v3 = vsel %vm3967_vm8, %v4044_v37, %v4043_v38  ;;  %v4177_v40 = vrot.slane %v7745_v19, 5  ;;  %v4179_v52 = vrot.slane %v7757_v13, 4 }
 0x3c8   :  { %5178 = vmatprep.subr.bf16.mxu1 %v5352_v14  ;;  %v4047_v43 = vsel %vm3970_vm6, %v4046_v33, %v4045_v3  ;;  %v4176_v4 = vsel %vm3958_vm0, %v4175_v61, %v4174_v56  ;;  %v4181_v51 = vrot.slane %v7778_v55, 3  ;;  %v4183_v25 = vrot.slane %v7786_v46, 2  ;;  %v5357_v14 = vld [vmem:[%s8154_s5 + $0xa8] sm:$0xff]   ;;  %v5360_v3 = vld [vmem:[%s8154_s5 + $0xf8] sm:$0xff]  }
 0x3c9   :  { %v4049_v12 = vsel %vm3973_vm9, %v4048_v41, %v4047_v43  ;;  %v4178_v10 = vsel %vm3961_vm2, %v4177_v40, %v4176_v4  ;;  %v4185_v44 = vrot.slane %v7774_v16, 1  ;;  %v4188_v58 = vrot.slane %v7807_v62, 7 }
 0x3ca   :  { %v8013_v29 = vsel %vm3976_vm10, %v4050_v34, %v4049_v12  ;;  %v4180_v53 = vsel %vm3964_vm5, %v4179_v52, %v4178_v10  ;;  %v4189_v5 = vrot.slane %v7818_v23, 6  ;;  %v4191_v9 = vrot.slane %v7801_v17, 5  ;;  %v5363_v10 = vld [vmem:[%s8154_s5 + $0x180] sm:$0xff]  }
 0x3cb   :  { %5179 = vmatpush3.bf16.msra.mxu1 %v5353_v39  ;;  %v4052_v45 = vpack.c.b16 %v8013_v29, %v7996_v63  ;;  %v4182_v21 = vsel %vm3967_vm8, %v4181_v51, %v4180_v53  ;;  %v4193_v36 = vrot.slane %v7811_v30, 4  ;;  %v4195_v48 = vrot.slane %v7838_v11, 3  ;;  %v5368_v63 = vld [vmem:[%s8154_s5 + $0x1d8] sm:$0xff]   ;;  %v5370_v53 = vld [vmem:[%s8154_s5 + $0x1e0] sm:$0xff]  }
 0x3cc   :  { %5180 = vmatprep.subr.bf16.mxu1 %v5354_v35  ;;  %v4184_v24 = vsel %vm3970_vm6, %v4183_v25, %v4182_v21  ;;  %v4190_v47 = vsel %vm3958_vm0, %v4189_v5, %v4188_v58  ;;  %v4197_v32 = vrot.slane %v7848_v59, 2  ;;  %v4199_v20 = vrot.slane %v7834_v28, 1  ;;  %v5367_v58 = vld [vmem:[%s8154_s5 + $0x190] sm:$0xff]   ;;  %v5369_v29 = vld [vmem:[%s8154_s5 + $0x198] sm:$0xff]   ;;  %v5371_v5 = vld [vmem:[%s8154_s5 + $0x1a0] sm:$0xff]  }
 0x3cd   :  { %v4186_v57 = vsel %vm3973_vm9, %v4185_v44, %v4184_v24  ;;  %v4192_v42 = vsel %vm3961_vm2, %v4191_v9, %v4190_v47  ;;  %v4144_v0 = vrot.slane %v7751_v2, 6  ;;  %v4145_v27 = vrot.slane %v7761_v15, 5  ;;  %v5366_v44 = vld [vmem:[%s8154_s5 + $0x1d0] sm:$0xff]   ;;  %v5372_v9 = vld [vmem:[%s8154_s5 + $0x1e8] sm:$0xff]  }
 0x3ce   :  { %v4187_v60 = vsel %vm3976_vm10, %v7782_v1, %v4186_v57  ;;  %v4194_v7 = vsel %vm3964_vm5, %v4193_v36, %v4192_v42  ;;  %v4147_v37 = vrot.slane %v7745_v19, 4  ;;  %v4149_v50 = vrot.slane %v7757_v13, 3  ;;  %v5358_v19 = vld [vmem:[%s8154_s5 + $0xf0] sm:$0xff]   ;;  %v5376_v36 = vld [vmem:[%s8154_s5 + $0x1f8] sm:$0xff]  }
 0x3cf   :  { %5181 = vmatpush3.bf16.msra.mxu1 %v5355_v49  ;;  %v4196_v6 = vsel %vm3967_vm8, %v4195_v48, %v4194_v7  ;;  %v4146_v2 = vsel %vm3958_vm0, %v4145_v27, %v4144_v0  ;;  %v4151_v15 = vrot.slane %v7778_v55, 2  ;;  %v4153_v31 = vrot.slane %v7786_v46, 1  ;;  %v5373_v49 = vld [vmem:[%s8154_s5 + $0x1a8] sm:$0xff]   ;;  %v5375_v21 = vld [vmem:[%s8154_s5 + $0x1b0] sm:$0xff]   ;;  %v5377_v48 = vld [vmem:[%s8154_s5 + $0x1b8] sm:$0xff]  }
 0x3d0   :  { %5182 = vmatprep.subr.bf16.mxu1 %v5356_v54  ;;  %v4198_v13 = vsel %vm3970_vm6, %v4197_v32, %v4196_v6  ;;  %v4148_v33 = vsel %vm3961_vm2, %v4147_v37, %v4146_v2  ;;  %v4156_v22 = vrot.slane %v7782_v1, 7  ;;  %v4158_v18 = vrot.slane %v7807_v62, 6  ;;  %v5359_v1 = vld [vmem:[%s8154_s5 + $0xb0] sm:$0xff]  }
 0x3d1   :  { %v4200_v41 = vsel %vm3973_vm9, %v4199_v20, %v4198_v13  ;;  %v4150_v34 = vsel %vm3964_vm5, %v4149_v50, %v4148_v33  ;;  %v4159_v55 = vrot.slane %v7818_v23, 5  ;;  %v4161_v46 = vrot.slane %v7801_v17, 4  ;;  %v4989_v50 = vld [vmem:[%s8156_s6] ss:$0 sm:$0xff] }
 0x3d2   :  { %v4201_v26 = vsel %vm3976_vm10, %v7842_v8, %v4200_v41  ;;  %v4152_v38 = vsel %vm3967_vm8, %v4151_v15, %v4150_v34  ;;  %v4163_v56 = vrot.slane %v7811_v30, 3  ;;  %v4165_v61 = vrot.slane %v7838_v11, 2 }
 0x3d3   :  { %5183 = vmatpush3.bf16.msra.mxu1 %v5357_v14  ;;  %v4202_v62 = vpack.c.b16 %v4201_v26, %v4187_v60  ;;  %v4154_v39 = vsel %vm3970_vm6, %v4153_v31, %v4152_v38  ;;  %v4160_v23 = vsel %vm3958_vm0, %v4159_v55, %v4158_v18  ;;  %v4167_v17 = vrot.slane %v7848_v59, 1  ;;  %v5361_v59 = vld [vmem:[%s8154_s5 + $0xb8] sm:$0xff]  }
 0x3d4   :  { %5184 = vmatprep.subr.bf16.mxu1 %v5358_v19  ;;  %v4155_v30 = vsel %vm3973_vm9, %v7774_v16, %v4154_v39  ;;  %v4162_v11 = vsel %vm3961_vm2, %v4161_v46, %v4160_v23  ;;  %v4170_v4 = vrot.slane %v7842_v8, 7  ;;  %v5362_v16 = vld [vmem:[%s8154_s5 + $0x1c0] sm:$0xff]   ;;  %v5364_v8 = vld [vmem:[%s8154_s5 + $0x1c8] sm:$0xff]  }
 0x3d5   :  { %v4157_v40 = vsel %vm3976_vm10, %v4156_v22, %v4155_v30  ;;  %v4164_v52 = vsel %vm3964_vm5, %v4163_v56, %v4162_v11 }
 0x3d6   :  { %v4166_v35 = vsel %vm3967_vm8, %v4165_v61, %v4164_v52 }
 0x3d7   :  { %5185 = vmatpush3.bf16.msra.mxu1 %v5359_v1  ;;  %v4168_v43 = vsel %vm3970_vm6, %v4167_v17, %v4166_v35 }
 0x3d8   :  { %5186 = vmatprep.subr.bf16.mxu1 %v5360_v3  ;;  %v4169_v51 = vsel %vm3973_vm9, %v7834_v28, %v4168_v43  ;;  %v5365_v28 = vld [vmem:[%s8154_s5 + $0x188] sm:$0xff]  }
 0x3d9   :  { %v4171_v25 = vsel %vm3976_vm10, %v4170_v4, %v4169_v51 }
 0x3da   :  { %v4172_v12 = vpack.c.b16 %v4171_v25, %v4157_v40 }
 0x3db   :  { %5187 = vmatpush3.bf16.msra.mxu1 %v5361_v59 }
 0x3dc   :  { %5216 = vmatprep.subr.bf16.mxu1 %v5362_v16 }
 0x3de   :  { %4797 = vmatmul.mubr.bf16.vlgmr.msra.gmra.mrb[52].mxu1 %v4052_v45  ;;  %v5374_v45 = vld [vmem:[%s8154_s5 + $0x1f0] sm:$0xff]  }
 0x3df   :  { %5217 = vmatpush3.bf16.msra.mxu1 %v5363_v10  ;;  %4878 = vmatprep.mubr.bf16.mxu1 %v4202_v62 }
 0x3e0   :  { %5218 = vmatprep.subr.bf16.mxu1 %v5364_v8 }
 0x3e3   :  { %5219 = vmatpush3.bf16.msra.mxu1 %v5365_v28 }
 0x3e4   :  { %5220 = vmatprep.subr.bf16.mxu1 %v5366_v44 }
 0x3e7   :  { %5221 = vmatpush3.bf16.msra.mxu1 %v5367_v58 }
 0x3e8   :  { %5222 = vmatprep.subr.bf16.mxu1 %v5368_v63 }
 0x3eb   :  { %5223 = vmatpush3.bf16.msra.mxu1 %v5369_v29 }
 0x3ec   :  { %5224 = vmatprep.subr.bf16.mxu1 %v5370_v53 }
 0x3ef   :  { %5225 = vmatpush3.bf16.msra.mxu1 %v5371_v5 }
 0x3f0   :  { %5226 = vmatprep.subr.bf16.mxu1 %v5372_v9 }
 0x3f3   :  { %5227 = vmatpush3.bf16.msra.mxu1 %v5373_v49 }
 0x3f4   :  { %5228 = vmatprep.subr.bf16.mxu1 %v5374_v45 }
 0x3f7   :  { %5229 = vmatpush3.bf16.msra.mxu1 %v5375_v21 }
 0x3f8   :  { %5230 = vmatprep.subr.bf16.mxu1 %v5376_v36 }
 0x3fb   :  { %5231 = vmatpush3.bf16.msra.mxu1 %v5377_v48 }
 0x3fe   :  { %4879 = vmatmul.mubr.bf16.vlgmr.msra.gmra.mrb[56].mxu1 %v4172_v12 }
 0x48a   :  { %v5210_v54 = vpop.f32.mrb[64].mxu0 }
 0x48b   :  { %v5211_v24 = vpop.f32.mrb[65].mxu0 }
 0x48c   :  { %v5212_v47 = vadd.f32 %v5211_v24, %v5210_v54  ;;  %v5213_v32 = vpop.f32.mrb[66].mxu0 }
 0x48d   :  { %v5214_v20 = vpop.f32.mrb[67].mxu0 }
 0x48e   :  { %v5215_v57 = vadd.f32 %v5214_v20, %v5213_v32 }
 0x491   :  { %v5166_v42 = vpop.f32.mrb[48].mxu1 }
 0x492   :  { %v5167_v0 = vpop.f32.mrb[49].mxu1 }
 0x493   :  { %v5168_v27 = vadd.f32 %v5167_v0, %v5166_v42  ;;  %v5169_v60 = vpop.f32.mrb[50].mxu1 }
 0x494   :  { %v5170_v7 = vpop.f32.mrb[51].mxu1 }
 0x495   :  { %v5171_v37 = vadd.f32 %v5170_v7, %v5169_v60  ;;  %v4758_v2 = vadd.f32 %v5168_v27, %v4989_v50 }
 0x497   :  { %v4761_v13 = vadd.f32 %v5171_v37, %v4989_v50 }
 0x4b1   :  { %v5188_v14 = vpop.f32.mrb[52].mxu1 }
 0x4b2   :  { %v5189_v6 = vpop.f32.mrb[53].mxu1 }
 0x4b3   :  { %v5190_v15 = vadd.f32 %v5189_v6, %v5188_v14  ;;  %v5191_v31 = vpop.f32.mrb[54].mxu1 }
 0x4b4   :  { %v5192_v19 = vpop.f32.mrb[55].mxu1 }
 0x4b5   :  { %v4799_v33 = vadd.f32 %v5190_v15, %v4758_v2  ;;  %v5193_v22 = vadd.f32 %v5192_v19, %v5191_v31 }
 0x4b7   :  { %v4802_v18 = vadd.f32 %v5193_v22, %v4761_v13  ;;  %v4840_v41 = vadd.f32 %v5212_v47, %v4799_v33 }
 0x4b9   :  { %v4843_v34 = vadd.f32 %v5215_v57, %v4802_v18 }
 0x4d1   :  { %v5232_v55 = vpop.f32.mrb[56].mxu1 }
 0x4d2   :  { %v5233_v46 = vpop.f32.mrb[57].mxu1 }
 0x4d3   :  { %v5234_v26 = vadd.f32 %v5233_v46, %v5232_v55  ;;  %v5235_v38 = vpop.f32.mrb[58].mxu1 }
 0x4d4   :  { %v5236_v56 = vpop.f32.mrb[59].mxu1 }
 0x4d5   :  { %v4881_v61 = vadd.f32 %v5234_v26, %v4840_v41  ;;  %v5237_v1 = vadd.f32 %v5236_v56, %v5235_v38 }
 0x4d7   :  { %v4887_v62 = vsel %vm1586_vm7, %v4881_v61, 0.0  ;;  %v4884_v39 = vadd.f32 %v5237_v1, %v4843_v34 }
 0x4d8   :  { %4889 = vst [vmem:[%s8157_s7] sm:$0xff] %v4887_v62 }
 0x4d9   :  { %v4888_v23 = vsel %vm1586_vm7, %v4884_v39, 0.0 }
 0x4da   :  { %4890 = vst [vmem:[%s8157_s7 + $0x8] sm:$0xff] %v4888_v23 }

</bundles_post_ra>
